<compile_context>
chip_gen: v5e
topology: v5e:2x2
jax: 0.10.0
libtpu: 0.0.40
codegen_flags: <defaults>
</compile_context>

<pallas_src>
import functools

import jax
import jax.numpy as jnp
from jax.experimental import pallas as pl
from jax.experimental.pallas import tpu as pltpu

KSIZE = 5
PAD = 2
KK = KSIZE * KSIZE


def _round_up(x, m):
    return (x + m - 1) // m * m


def _conv5x5_kernel(x_ref, w_ref, b_ref, o_ref, *, wp):
    """Single grid step: full 5x5 conv over the batch-folded padded slab.

    x_ref: (Cin, Lin)      bf16 spatially padded activations, batch folded into
                           the lane axis (zero tail past N*Hp*Wp).
    w_ref: (25, Cout, Cin) bf16 per-tap weight slabs, tap index t = kh*5 + kw.
    b_ref: (Cout, 1)       f32 bias.
    o_ref: (Cout, Pout)    f32 output, Pout a multiple of 128 (lane-dense).
    """
    cout, pout = o_ref.shape
    x = x_ref[...]                       # one VMEM load of the padded slab
    w = w_ref[...]
    acc = jnp.zeros((cout, pout), dtype=jnp.float32)
    for kh in range(KSIZE):
        for kw in range(KSIZE):
            # In-kernel im2col: tap (kh, kw) is a static lane shift of the
            # flattened padded image (index p + kh*Wp + kw). Garbage columns
            # (padded w-positions / batch-boundary bleed) are discarded by the
            # wrapper, so cross-row contamination there is harmless.
            s = kh * wp + kw
            tap = x[:, s:s + pout]                           # (Cin, Pout)
            acc = acc + jax.lax.dot_general(
                w[kh * KSIZE + kw], tap,
                dimension_numbers=(((1,), (0,)), ((), ())),
                preferred_element_type=jnp.float32)          # (Cout, Pout)
    o_ref[...] = (acc + b_ref[...]).astype(o_ref.dtype)


def local_context_ex(x_nchw, weight_oihw, bias):
    """Forward pass of LocalContextEX: Conv2d(kernel=5, stride=1, padding=2).

    x_nchw:      (N, Cin, H, W)    float32
    weight_oihw: (Cout, Cin, 5, 5) float32 (PyTorch Conv2d layout)
    bias:        (Cout,)           float32
    returns:     (N, Cout, H, W)   float32
    """
    N, Cin, H, W = x_nchw.shape
    Cout = weight_oihw.shape[0]
    Hp, Wp = H + 2 * PAD, W + 2 * PAD
    per_img = Hp * Wp
    total = N * per_img
    # Lane-dense output width; the input slab needs (KSIZE-1)*Wp + (KSIZE-1)
    # extra lanes of zero slack so the largest tap shift stays in bounds.
    pout = _round_up(total, 128)
    lin = _round_up(pout + (KSIZE - 1) * Wp + (KSIZE - 1), 128)

    # Wrapper prep is layout-only: spatial zero-pad (~1.5x activation bytes at
    # 16x16, ->1x at large H*W; NOT the 25x im2col), fold batch into the lane
    # axis, cast MXU operands to bf16.
    x_pad = jnp.pad(x_nchw, ((0, 0), (0, 0), (PAD, PAD), (PAD, PAD)))
    x_flat = jnp.transpose(x_pad, (1, 0, 2, 3)).reshape(Cin, total)
    x_flat = jnp.pad(x_flat, ((0, 0), (0, lin - total))).astype(jnp.bfloat16)

    # OIHW -> (kh*5+kw, Cout, Cin), matching the kernel's tap order.
    w_taps = jnp.transpose(weight_oihw, (2, 3, 0, 1)).reshape(KK, Cout, Cin)
    w_taps = w_taps.astype(jnp.bfloat16)
    b2 = bias.reshape(Cout, 1).astype(jnp.float32)

    out2d = pl.pallas_call(
        functools.partial(_conv5x5_kernel, wp=Wp),
        out_shape=jax.ShapeDtypeStruct((Cout, pout), jnp.float32),
        grid=(1,),
        in_specs=[
            pl.BlockSpec((Cin, lin), lambda i: (0, 0)),
            pl.BlockSpec((KK, Cout, Cin), lambda i: (0, 0, 0)),
            pl.BlockSpec((Cout, 1), lambda i: (0, 0)),
        ],
        out_specs=pl.BlockSpec((Cout, pout), lambda i: (0, 0)),
        compiler_params=pltpu.CompilerParams(
            dimension_semantics=("arbitrary",)),
    )(x_flat, w_taps, b2)

    # Undo the batch fold: valid outputs sit at p = n*Hp*Wp + h*Wp + w.
    out = out2d[:, :total].reshape(Cout, N, Hp, Wp)[:, :, :H, :W]
    return jnp.transpose(out, (1, 0, 2, 3)).astype(x_nchw.dtype)   # NCHW


if __name__ == "__main__":
    key = jax.random.PRNGKey(0)
    k_x, k_w, k_b = jax.random.split(key, 3)

    # Small shapes consistent with the module: LocalContextEX(in_dim=4, out_dim=8).
    N, Cin, Cout, H, W = 2, 4, 8, 16, 16

    x = jax.random.normal(k_x, (N, Cin, H, W), dtype=jnp.float32)
    fan_in = Cin * KSIZE * KSIZE
    bound = 1.0 / (fan_in ** 0.5)
    weight = jax.random.uniform(k_w, (Cout, Cin, KSIZE, KSIZE),
                                minval=-bound, maxval=bound, dtype=jnp.float32)
    bias = jax.random.uniform(k_b, (Cout,), minval=-bound, maxval=bound,
                              dtype=jnp.float32)

    out = jax.block_until_ready(local_context_ex(x, weight, bias))
    assert out.shape == (N, Cout, H, W)

    # Reference: XLA conv on the same bf16-rounded operands (the kernel
    # multiplies bf16 operands and accumulates in f32), so the only remaining
    # difference is f32 accumulation order.
    x_q = x.astype(jnp.bfloat16).astype(jnp.float32)
    w_q = weight.astype(jnp.bfloat16).astype(jnp.float32)
    ref = jax.lax.conv_general_dilated(
        x_q, w_q, window_strides=(1, 1), padding=((PAD, PAD), (PAD, PAD)),
        dimension_numbers=("NCHW", "OIHW", "NCHW"),
        precision=jax.lax.Precision.HIGHEST)
    ref = ref + bias[None, :, None, None]
    assert jnp.allclose(out, ref, atol=1e-3, rtol=1e-3), float(
        jnp.max(jnp.abs(out - ref)))

    print("KERNEL_OK")
</pallas_src>

<mosaic_0001>
module attributes {stable_mosaic.version = 11 : i64} {
  func.func @_conv5x5_kernel(%arg0: i32, %arg1: memref<4x1024xbf16, #tpu.memory_space<vmem>>, %arg2: memref<25x8x4xbf16, #tpu.memory_space<vmem>>, %arg3: memref<8x1xf32, #tpu.memory_space<vmem>>, %arg4: memref<8x896xf32, #tpu.memory_space<vmem>>) attributes {dimension_semantics = [#tpu.dimension_semantics<arbitrary>], iteration_bounds = array<i64: 1>, scalar_prefetch = 0 : i64, scratch_operands = 0 : i64, tpu.core_type = #tpu.core_type<tc>, window_params = [{pipeline_mode = #tpu.pipeline_mode<synchronous>, transform_indices = @transform_0, window_bounds = array<i64: 4, 1024>}, {pipeline_mode = #tpu.pipeline_mode<synchronous>, transform_indices = @transform_1, window_bounds = array<i64: 25, 8, 4>}, {pipeline_mode = #tpu.pipeline_mode<synchronous>, transform_indices = @transform_2, window_bounds = array<i64: 8, 1>}, {pipeline_mode = #tpu.pipeline_mode<synchronous>, transform_indices = @transform_3, window_bounds = array<i64: 8, 896>}]} {
    %c0 = arith.constant 0 : index
    %c0_0 = arith.constant 0 : index
    %0 = vector.load %arg1[%c0, %c0_0] : memref<4x1024xbf16, #tpu.memory_space<vmem>>, vector<4x1024xbf16>
    %c0_1 = arith.constant 0 : index
    %c0_2 = arith.constant 0 : index
    %c0_3 = arith.constant 0 : index
    %1 = vector.load %arg2[%c0_1, %c0_2, %c0_3] : memref<25x8x4xbf16, #tpu.memory_space<vmem>>, vector<25x8x4xbf16>
    %cst = arith.constant 0.000000e+00 : f32
    %2 = vector.broadcast %cst : f32 to vector<8x896xf32>
    %3 = vector.extract_strided_slice %0 {offsets = [0, 0], sizes = [4, 896], strides = [1, 1]} : vector<4x1024xbf16> to vector<4x896xbf16>
    %4 = vector.extract_strided_slice %1 {offsets = [0, 0, 0], sizes = [1, 8, 4], strides = [1, 1, 1]} : vector<25x8x4xbf16> to vector<1x8x4xbf16>
    %5 = vector.shape_cast %4 : vector<1x8x4xbf16> to vector<8x4xbf16>
    %cst_4 = arith.constant dense<0.000000e+00> : vector<8x896xf32>
    %6 = tpu.matmul %5, %3, %cst_4 {dimension_numbers = #tpu.dot_dimension_numbers<[1], [0], [0], [1], [0, 0, 1, 1], [], []>} : vector<8x4xbf16>, vector<4x896xbf16>, vector<8x896xf32> -> vector<8x896xf32>
    %7 = arith.addf %2, %6 : vector<8x896xf32>
    %8 = vector.extract_strided_slice %0 {offsets = [0, 1], sizes = [4, 896], strides = [1, 1]} : vector<4x1024xbf16> to vector<4x896xbf16>
    %9 = vector.extract_strided_slice %1 {offsets = [1, 0, 0], sizes = [1, 8, 4], strides = [1, 1, 1]} : vector<25x8x4xbf16> to vector<1x8x4xbf16>
    %10 = vector.shape_cast %9 : vector<1x8x4xbf16> to vector<8x4xbf16>
    %cst_5 = arith.constant dense<0.000000e+00> : vector<8x896xf32>
    %11 = tpu.matmul %10, %8, %cst_5 {dimension_numbers = #tpu.dot_dimension_numbers<[1], [0], [0], [1], [0, 0, 1, 1], [], []>} : vector<8x4xbf16>, vector<4x896xbf16>, vector<8x896xf32> -> vector<8x896xf32>
    %12 = arith.addf %7, %11 : vector<8x896xf32>
    %13 = vector.extract_strided_slice %0 {offsets = [0, 2], sizes = [4, 896], strides = [1, 1]} : vector<4x1024xbf16> to vector<4x896xbf16>
    %14 = vector.extract_strided_slice %1 {offsets = [2, 0, 0], sizes = [1, 8, 4], strides = [1, 1, 1]} : vector<25x8x4xbf16> to vector<1x8x4xbf16>
    %15 = vector.shape_cast %14 : vector<1x8x4xbf16> to vector<8x4xbf16>
    %cst_6 = arith.constant dense<0.000000e+00> : vector<8x896xf32>
    %16 = tpu.matmul %15, %13, %cst_6 {dimension_numbers = #tpu.dot_dimension_numbers<[1], [0], [0], [1], [0, 0, 1, 1], [], []>} : vector<8x4xbf16>, vector<4x896xbf16>, vector<8x896xf32> -> vector<8x896xf32>
    %17 = arith.addf %12, %16 : vector<8x896xf32>
    %18 = vector.extract_strided_slice %0 {offsets = [0, 3], sizes = [4, 896], strides = [1, 1]} : vector<4x1024xbf16> to vector<4x896xbf16>
    %19 = vector.extract_strided_slice %1 {offsets = [3, 0, 0], sizes = [1, 8, 4], strides = [1, 1, 1]} : vector<25x8x4xbf16> to vector<1x8x4xbf16>
    %20 = vector.shape_cast %19 : vector<1x8x4xbf16> to vector<8x4xbf16>
    %cst_7 = arith.constant dense<0.000000e+00> : vector<8x896xf32>
    %21 = tpu.matmul %20, %18, %cst_7 {dimension_numbers = #tpu.dot_dimension_numbers<[1], [0], [0], [1], [0, 0, 1, 1], [], []>} : vector<8x4xbf16>, vector<4x896xbf16>, vector<8x896xf32> -> vector<8x896xf32>
    %22 = arith.addf %17, %21 : vector<8x896xf32>
    %23 = vector.extract_strided_slice %0 {offsets = [0, 4], sizes = [4, 896], strides = [1, 1]} : vector<4x1024xbf16> to vector<4x896xbf16>
    %24 = vector.extract_strided_slice %1 {offsets = [4, 0, 0], sizes = [1, 8, 4], strides = [1, 1, 1]} : vector<25x8x4xbf16> to vector<1x8x4xbf16>
    %25 = vector.shape_cast %24 : vector<1x8x4xbf16> to vector<8x4xbf16>
    %cst_8 = arith.constant dense<0.000000e+00> : vector<8x896xf32>
    %26 = tpu.matmul %25, %23, %cst_8 {dimension_numbers = #tpu.dot_dimension_numbers<[1], [0], [0], [1], [0, 0, 1, 1], [], []>} : vector<8x4xbf16>, vector<4x896xbf16>, vector<8x896xf32> -> vector<8x896xf32>
    %27 = arith.addf %22, %26 : vector<8x896xf32>
    %28 = vector.extract_strided_slice %0 {offsets = [0, 20], sizes = [4, 896], strides = [1, 1]} : vector<4x1024xbf16> to vector<4x896xbf16>
    %29 = vector.extract_strided_slice %1 {offsets = [5, 0, 0], sizes = [1, 8, 4], strides = [1, 1, 1]} : vector<25x8x4xbf16> to vector<1x8x4xbf16>
    %30 = vector.shape_cast %29 : vector<1x8x4xbf16> to vector<8x4xbf16>
    %cst_9 = arith.constant dense<0.000000e+00> : vector<8x896xf32>
    %31 = tpu.matmul %30, %28, %cst_9 {dimension_numbers = #tpu.dot_dimension_numbers<[1], [0], [0], [1], [0, 0, 1, 1], [], []>} : vector<8x4xbf16>, vector<4x896xbf16>, vector<8x896xf32> -> vector<8x896xf32>
    %32 = arith.addf %27, %31 : vector<8x896xf32>
    %33 = vector.extract_strided_slice %0 {offsets = [0, 21], sizes = [4, 896], strides = [1, 1]} : vector<4x1024xbf16> to vector<4x896xbf16>
    %34 = vector.extract_strided_slice %1 {offsets = [6, 0, 0], sizes = [1, 8, 4], strides = [1, 1, 1]} : vector<25x8x4xbf16> to vector<1x8x4xbf16>
    %35 = vector.shape_cast %34 : vector<1x8x4xbf16> to vector<8x4xbf16>
    %cst_10 = arith.constant dense<0.000000e+00> : vector<8x896xf32>
    %36 = tpu.matmul %35, %33, %cst_10 {dimension_numbers = #tpu.dot_dimension_numbers<[1], [0], [0], [1], [0, 0, 1, 1], [], []>} : vector<8x4xbf16>, vector<4x896xbf16>, vector<8x896xf32> -> vector<8x896xf32>
    %37 = arith.addf %32, %36 : vector<8x896xf32>
    %38 = vector.extract_strided_slice %0 {offsets = [0, 22], sizes = [4, 896], strides = [1, 1]} : vector<4x1024xbf16> to vector<4x896xbf16>
    %39 = vector.extract_strided_slice %1 {offsets = [7, 0, 0], sizes = [1, 8, 4], strides = [1, 1, 1]} : vector<25x8x4xbf16> to vector<1x8x4xbf16>
    %40 = vector.shape_cast %39 : vector<1x8x4xbf16> to vector<8x4xbf16>
    %cst_11 = arith.constant dense<0.000000e+00> : vector<8x896xf32>
    %41 = tpu.matmul %40, %38, %cst_11 {dimension_numbers = #tpu.dot_dimension_numbers<[1], [0], [0], [1], [0, 0, 1, 1], [], []>} : vector<8x4xbf16>, vector<4x896xbf16>, vector<8x896xf32> -> vector<8x896xf32>
    %42 = arith.addf %37, %41 : vector<8x896xf32>
    %43 = vector.extract_strided_slice %0 {offsets = [0, 23], sizes = [4, 896], strides = [1, 1]} : vector<4x1024xbf16> to vector<4x896xbf16>
    %44 = vector.extract_strided_slice %1 {offsets = [8, 0, 0], sizes = [1, 8, 4], strides = [1, 1, 1]} : vector<25x8x4xbf16> to vector<1x8x4xbf16>
    %45 = vector.shape_cast %44 : vector<1x8x4xbf16> to vector<8x4xbf16>
    %cst_12 = arith.constant dense<0.000000e+00> : vector<8x896xf32>
    %46 = tpu.matmul %45, %43, %cst_12 {dimension_numbers = #tpu.dot_dimension_numbers<[1], [0], [0], [1], [0, 0, 1, 1], [], []>} : vector<8x4xbf16>, vector<4x896xbf16>, vector<8x896xf32> -> vector<8x896xf32>
    %47 = arith.addf %42, %46 : vector<8x896xf32>
    %48 = vector.extract_strided_slice %0 {offsets = [0, 24], sizes = [4, 896], strides = [1, 1]} : vector<4x1024xbf16> to vector<4x896xbf16>
    %49 = vector.extract_strided_slice %1 {offsets = [9, 0, 0], sizes = [1, 8, 4], strides = [1, 1, 1]} : vector<25x8x4xbf16> to vector<1x8x4xbf16>
    %50 = vector.shape_cast %49 : vector<1x8x4xbf16> to vector<8x4xbf16>
    %cst_13 = arith.constant dense<0.000000e+00> : vector<8x896xf32>
    %51 = tpu.matmul %50, %48, %cst_13 {dimension_numbers = #tpu.dot_dimension_numbers<[1], [0], [0], [1], [0, 0, 1, 1], [], []>} : vector<8x4xbf16>, vector<4x896xbf16>, vector<8x896xf32> -> vector<8x896xf32>
    %52 = arith.addf %47, %51 : vector<8x896xf32>
    %53 = vector.extract_strided_slice %0 {offsets = [0, 40], sizes = [4, 896], strides = [1, 1]} : vector<4x1024xbf16> to vector<4x896xbf16>
    %54 = vector.extract_strided_slice %1 {offsets = [10, 0, 0], sizes = [1, 8, 4], strides = [1, 1, 1]} : vector<25x8x4xbf16> to vector<1x8x4xbf16>
    %55 = vector.shape_cast %54 : vector<1x8x4xbf16> to vector<8x4xbf16>
    %cst_14 = arith.constant dense<0.000000e+00> : vector<8x896xf32>
    %56 = tpu.matmul %55, %53, %cst_14 {dimension_numbers = #tpu.dot_dimension_numbers<[1], [0], [0], [1], [0, 0, 1, 1], [], []>} : vector<8x4xbf16>, vector<4x896xbf16>, vector<8x896xf32> -> vector<8x896xf32>
    %57 = arith.addf %52, %56 : vector<8x896xf32>
    %58 = vector.extract_strided_slice %0 {offsets = [0, 41], sizes = [4, 896], strides = [1, 1]} : vector<4x1024xbf16> to vector<4x896xbf16>
    %59 = vector.extract_strided_slice %1 {offsets = [11, 0, 0], sizes = [1, 8, 4], strides = [1, 1, 1]} : vector<25x8x4xbf16> to vector<1x8x4xbf16>
    %60 = vector.shape_cast %59 : vector<1x8x4xbf16> to vector<8x4xbf16>
    %cst_15 = arith.constant dense<0.000000e+00> : vector<8x896xf32>
    %61 = tpu.matmul %60, %58, %cst_15 {dimension_numbers = #tpu.dot_dimension_numbers<[1], [0], [0], [1], [0, 0, 1, 1], [], []>} : vector<8x4xbf16>, vector<4x896xbf16>, vector<8x896xf32> -> vector<8x896xf32>
    %62 = arith.addf %57, %61 : vector<8x896xf32>
    %63 = vector.extract_strided_slice %0 {offsets = [0, 42], sizes = [4, 896], strides = [1, 1]} : vector<4x1024xbf16> to vector<4x896xbf16>
    %64 = vector.extract_strided_slice %1 {offsets = [12, 0, 0], sizes = [1, 8, 4], strides = [1, 1, 1]} : vector<25x8x4xbf16> to vector<1x8x4xbf16>
    %65 = vector.shape_cast %64 : vector<1x8x4xbf16> to vector<8x4xbf16>
    %cst_16 = arith.constant dense<0.000000e+00> : vector<8x896xf32>
    %66 = tpu.matmul %65, %63, %cst_16 {dimension_numbers = #tpu.dot_dimension_numbers<[1], [0], [0], [1], [0, 0, 1, 1], [], []>} : vector<8x4xbf16>, vector<4x896xbf16>, vector<8x896xf32> -> vector<8x896xf32>
    %67 = arith.addf %62, %66 : vector<8x896xf32>
    %68 = vector.extract_strided_slice %0 {offsets = [0, 43], sizes = [4, 896], strides = [1, 1]} : vector<4x1024xbf16> to vector<4x896xbf16>
    %69 = vector.extract_strided_slice %1 {offsets = [13, 0, 0], sizes = [1, 8, 4], strides = [1, 1, 1]} : vector<25x8x4xbf16> to vector<1x8x4xbf16>
    %70 = vector.shape_cast %69 : vector<1x8x4xbf16> to vector<8x4xbf16>
    %cst_17 = arith.constant dense<0.000000e+00> : vector<8x896xf32>
    %71 = tpu.matmul %70, %68, %cst_17 {dimension_numbers = #tpu.dot_dimension_numbers<[1], [0], [0], [1], [0, 0, 1, 1], [], []>} : vector<8x4xbf16>, vector<4x896xbf16>, vector<8x896xf32> -> vector<8x896xf32>
    %72 = arith.addf %67, %71 : vector<8x896xf32>
    %73 = vector.extract_strided_slice %0 {offsets = [0, 44], sizes = [4, 896], strides = [1, 1]} : vector<4x1024xbf16> to vector<4x896xbf16>
    %74 = vector.extract_strided_slice %1 {offsets = [14, 0, 0], sizes = [1, 8, 4], strides = [1, 1, 1]} : vector<25x8x4xbf16> to vector<1x8x4xbf16>
    %75 = vector.shape_cast %74 : vector<1x8x4xbf16> to vector<8x4xbf16>
    %cst_18 = arith.constant dense<0.000000e+00> : vector<8x896xf32>
    %76 = tpu.matmul %75, %73, %cst_18 {dimension_numbers = #tpu.dot_dimension_numbers<[1], [0], [0], [1], [0, 0, 1, 1], [], []>} : vector<8x4xbf16>, vector<4x896xbf16>, vector<8x896xf32> -> vector<8x896xf32>
    %77 = arith.addf %72, %76 : vector<8x896xf32>
    %78 = vector.extract_strided_slice %0 {offsets = [0, 60], sizes = [4, 896], strides = [1, 1]} : vector<4x1024xbf16> to vector<4x896xbf16>
    %79 = vector.extract_strided_slice %1 {offsets = [15, 0, 0], sizes = [1, 8, 4], strides = [1, 1, 1]} : vector<25x8x4xbf16> to vector<1x8x4xbf16>
    %80 = vector.shape_cast %79 : vector<1x8x4xbf16> to vector<8x4xbf16>
    %cst_19 = arith.constant dense<0.000000e+00> : vector<8x896xf32>
    %81 = tpu.matmul %80, %78, %cst_19 {dimension_numbers = #tpu.dot_dimension_numbers<[1], [0], [0], [1], [0, 0, 1, 1], [], []>} : vector<8x4xbf16>, vector<4x896xbf16>, vector<8x896xf32> -> vector<8x896xf32>
    %82 = arith.addf %77, %81 : vector<8x896xf32>
    %83 = vector.extract_strided_slice %0 {offsets = [0, 61], sizes = [4, 896], strides = [1, 1]} : vector<4x1024xbf16> to vector<4x896xbf16>
    %84 = vector.extract_strided_slice %1 {offsets = [16, 0, 0], sizes = [1, 8, 4], strides = [1, 1, 1]} : vector<25x8x4xbf16> to vector<1x8x4xbf16>
    %85 = vector.shape_cast %84 : vector<1x8x4xbf16> to vector<8x4xbf16>
    %cst_20 = arith.constant dense<0.000000e+00> : vector<8x896xf32>
    %86 = tpu.matmul %85, %83, %cst_20 {dimension_numbers = #tpu.dot_dimension_numbers<[1], [0], [0], [1], [0, 0, 1, 1], [], []>} : vector<8x4xbf16>, vector<4x896xbf16>, vector<8x896xf32> -> vector<8x896xf32>
    %87 = arith.addf %82, %86 : vector<8x896xf32>
    %88 = vector.extract_strided_slice %0 {offsets = [0, 62], sizes = [4, 896], strides = [1, 1]} : vector<4x1024xbf16> to vector<4x896xbf16>
    %89 = vector.extract_strided_slice %1 {offsets = [17, 0, 0], sizes = [1, 8, 4], strides = [1, 1, 1]} : vector<25x8x4xbf16> to vector<1x8x4xbf16>
    %90 = vector.shape_cast %89 : vector<1x8x4xbf16> to vector<8x4xbf16>
    %cst_21 = arith.constant dense<0.000000e+00> : vector<8x896xf32>
    %91 = tpu.matmul %90, %88, %cst_21 {dimension_numbers = #tpu.dot_dimension_numbers<[1], [0], [0], [1], [0, 0, 1, 1], [], []>} : vector<8x4xbf16>, vector<4x896xbf16>, vector<8x896xf32> -> vector<8x896xf32>
    %92 = arith.addf %87, %91 : vector<8x896xf32>
    %93 = vector.extract_strided_slice %0 {offsets = [0, 63], sizes = [4, 896], strides = [1, 1]} : vector<4x1024xbf16> to vector<4x896xbf16>
    %94 = vector.extract_strided_slice %1 {offsets = [18, 0, 0], sizes = [1, 8, 4], strides = [1, 1, 1]} : vector<25x8x4xbf16> to vector<1x8x4xbf16>
    %95 = vector.shape_cast %94 : vector<1x8x4xbf16> to vector<8x4xbf16>
    %cst_22 = arith.constant dense<0.000000e+00> : vector<8x896xf32>
    %96 = tpu.matmul %95, %93, %cst_22 {dimension_numbers = #tpu.dot_dimension_numbers<[1], [0], [0], [1], [0, 0, 1, 1], [], []>} : vector<8x4xbf16>, vector<4x896xbf16>, vector<8x896xf32> -> vector<8x896xf32>
    %97 = arith.addf %92, %96 : vector<8x896xf32>
    %98 = vector.extract_strided_slice %0 {offsets = [0, 64], sizes = [4, 896], strides = [1, 1]} : vector<4x1024xbf16> to vector<4x896xbf16>
    %99 = vector.extract_strided_slice %1 {offsets = [19, 0, 0], sizes = [1, 8, 4], strides = [1, 1, 1]} : vector<25x8x4xbf16> to vector<1x8x4xbf16>
    %100 = vector.shape_cast %99 : vector<1x8x4xbf16> to vector<8x4xbf16>
    %cst_23 = arith.constant dense<0.000000e+00> : vector<8x896xf32>
    %101 = tpu.matmul %100, %98, %cst_23 {dimension_numbers = #tpu.dot_dimension_numbers<[1], [0], [0], [1], [0, 0, 1, 1], [], []>} : vector<8x4xbf16>, vector<4x896xbf16>, vector<8x896xf32> -> vector<8x896xf32>
    %102 = arith.addf %97, %101 : vector<8x896xf32>
    %103 = vector.extract_strided_slice %0 {offsets = [0, 80], sizes = [4, 896], strides = [1, 1]} : vector<4x1024xbf16> to vector<4x896xbf16>
    %104 = vector.extract_strided_slice %1 {offsets = [20, 0, 0], sizes = [1, 8, 4], strides = [1, 1, 1]} : vector<25x8x4xbf16> to vector<1x8x4xbf16>
    %105 = vector.shape_cast %104 : vector<1x8x4xbf16> to vector<8x4xbf16>
    %cst_24 = arith.constant dense<0.000000e+00> : vector<8x896xf32>
    %106 = tpu.matmul %105, %103, %cst_24 {dimension_numbers = #tpu.dot_dimension_numbers<[1], [0], [0], [1], [0, 0, 1, 1], [], []>} : vector<8x4xbf16>, vector<4x896xbf16>, vector<8x896xf32> -> vector<8x896xf32>
    %107 = arith.addf %102, %106 : vector<8x896xf32>
    %108 = vector.extract_strided_slice %0 {offsets = [0, 81], sizes = [4, 896], strides = [1, 1]} : vector<4x1024xbf16> to vector<4x896xbf16>
    %109 = vector.extract_strided_slice %1 {offsets = [21, 0, 0], sizes = [1, 8, 4], strides = [1, 1, 1]} : vector<25x8x4xbf16> to vector<1x8x4xbf16>
    %110 = vector.shape_cast %109 : vector<1x8x4xbf16> to vector<8x4xbf16>
    %cst_25 = arith.constant dense<0.000000e+00> : vector<8x896xf32>
    %111 = tpu.matmul %110, %108, %cst_25 {dimension_numbers = #tpu.dot_dimension_numbers<[1], [0], [0], [1], [0, 0, 1, 1], [], []>} : vector<8x4xbf16>, vector<4x896xbf16>, vector<8x896xf32> -> vector<8x896xf32>
    %112 = arith.addf %107, %111 : vector<8x896xf32>
    %113 = vector.extract_strided_slice %0 {offsets = [0, 82], sizes = [4, 896], strides = [1, 1]} : vector<4x1024xbf16> to vector<4x896xbf16>
    %114 = vector.extract_strided_slice %1 {offsets = [22, 0, 0], sizes = [1, 8, 4], strides = [1, 1, 1]} : vector<25x8x4xbf16> to vector<1x8x4xbf16>
    %115 = vector.shape_cast %114 : vector<1x8x4xbf16> to vector<8x4xbf16>
    %cst_26 = arith.constant dense<0.000000e+00> : vector<8x896xf32>
    %116 = tpu.matmul %115, %113, %cst_26 {dimension_numbers = #tpu.dot_dimension_numbers<[1], [0], [0], [1], [0, 0, 1, 1], [], []>} : vector<8x4xbf16>, vector<4x896xbf16>, vector<8x896xf32> -> vector<8x896xf32>
    %117 = arith.addf %112, %116 : vector<8x896xf32>
    %118 = vector.extract_strided_slice %0 {offsets = [0, 83], sizes = [4, 896], strides = [1, 1]} : vector<4x1024xbf16> to vector<4x896xbf16>
    %119 = vector.extract_strided_slice %1 {offsets = [23, 0, 0], sizes = [1, 8, 4], strides = [1, 1, 1]} : vector<25x8x4xbf16> to vector<1x8x4xbf16>
    %120 = vector.shape_cast %119 : vector<1x8x4xbf16> to vector<8x4xbf16>
    %cst_27 = arith.constant dense<0.000000e+00> : vector<8x896xf32>
    %121 = tpu.matmul %120, %118, %cst_27 {dimension_numbers = #tpu.dot_dimension_numbers<[1], [0], [0], [1], [0, 0, 1, 1], [], []>} : vector<8x4xbf16>, vector<4x896xbf16>, vector<8x896xf32> -> vector<8x896xf32>
    %122 = arith.addf %117, %121 : vector<8x896xf32>
    %123 = vector.extract_strided_slice %0 {offsets = [0, 84], sizes = [4, 896], strides = [1, 1]} : vector<4x1024xbf16> to vector<4x896xbf16>
    %124 = vector.extract_strided_slice %1 {offsets = [24, 0, 0], sizes = [1, 8, 4], strides = [1, 1, 1]} : vector<25x8x4xbf16> to vector<1x8x4xbf16>
    %125 = vector.shape_cast %124 : vector<1x8x4xbf16> to vector<8x4xbf16>
    %cst_28 = arith.constant dense<0.000000e+00> : vector<8x896xf32>
    %126 = tpu.matmul %125, %123, %cst_28 {dimension_numbers = #tpu.dot_dimension_numbers<[1], [0], [0], [1], [0, 0, 1, 1], [], []>} : vector<8x4xbf16>, vector<4x896xbf16>, vector<8x896xf32> -> vector<8x896xf32>
    %127 = arith.addf %122, %126 : vector<8x896xf32>
    %c0_29 = arith.constant 0 : index
    %c0_30 = arith.constant 0 : index
    %128 = vector.load %arg3[%c0_29, %c0_30] : memref<8x1xf32, #tpu.memory_space<vmem>>, vector<8x1xf32>
    %129 = vector.broadcast %128 : vector<8x1xf32> to vector<8x896xf32>
    %130 = arith.addf %127, %129 : vector<8x896xf32>
    %c0_31 = arith.constant 0 : index
    %c0_32 = arith.constant 0 : index
    %131 = vector.load %arg4[%c0_31, %c0_32] : memref<8x896xf32, #tpu.memory_space<vmem>>, vector<8x896xf32>
    tpu.vector_store %arg4[%c0_31, %c0_32], %130 {strides = array<i32>} : memref<8x896xf32, #tpu.memory_space<vmem>>, vector<8x896xf32>,
    return
  }
  func.func @transform_0(%arg0: i32) -> (i32, i32) {
    %c0_i32 = arith.constant 0 : i32
    %c0_i32_0 = arith.constant 0 : i32
    %c0_i32_1 = arith.constant 0 : i32
    return %c0_i32, %c0_i32_0 : i32, i32
  }
  func.func @transform_1(%arg0: i32) -> (i32, i32, i32) {
    %c0_i32 = arith.constant 0 : i32
    %c0_i32_0 = arith.constant 0 : i32
    %c0_i32_1 = arith.constant 0 : i32
    %c0_i32_2 = arith.constant 0 : i32
    return %c0_i32, %c0_i32_0, %c0_i32_1 : i32, i32, i32
  }
  func.func @transform_2(%arg0: i32) -> (i32, i32) {
    %c0_i32 = arith.constant 0 : i32
    %c0_i32_0 = arith.constant 0 : i32
    %c0_i32_1 = arith.constant 0 : i32
    return %c0_i32, %c0_i32_0 : i32, i32
  }
  func.func @transform_3(%arg0: i32) -> (i32, i32) {
    %c0_i32 = arith.constant 0 : i32
    %c0_i32_0 = arith.constant 0 : i32
    %c0_i32_1 = arith.constant 0 : i32
    return %c0_i32, %c0_i32_0 : i32, i32
  }
}

</mosaic_0001>

<bundles_post_ra>
// kernel: tpu_custom_call.1
= control target key start
LH: loop header
LB: loop body
LE: loop exit
PB: predicated region body
PF: predicated region fallthrough
CT: control target
= control target key end

     0   :  { %s5756_s0 = inlined_call_operand.vmem [shape: bf16[4,1024], index: 0, kind: input, shape index: {}]   ;;  %s5757_s1 = inlined_call_operand.vmem [shape: bf16[25,8,4], index: 1, kind: input, shape index: {}]   ;;  %s5758_s2 = inlined_call_operand.vmem [shape: f32[8,1], index: 2, kind: input, shape index: {}]   ;;  %s5759_s3 = inlined_call_operand.hbm [shape: f32[8,896], index: 3, kind: output, shape index: {}]  }
   0x1   :  { %v4431_v0 = vld [vmem:[%s5756_s0] sm:$0xff]  ;;  %v4436_v1 = vld [vmem:[%s5756_s0 + $0x8] sm:$0xff] }
   0x2   :  { %8 = vsyncpa [#allocation3], 0  ;;  %44 = vst [vmem:[#allocation1] ss:$4 sm:$0xff] %v4431_v0  ;;  %s4382_s16 = smov 127   ;;  %s4383_s0 = smov 126  }
   0x3   :  { %47 = vst [vmem:[#allocation1 + $0x20] ss:$4 sm:$0xff] %v4436_v1  ;;  %s4384_s17 = smov 125   ;;  %s4385_s18 = smov 124   ;;  %vm80_vm0 = vcmask 1039360   ;;  %vm92_vm1 = vcmask 1041408  }
   0x4   :  { %s4386_s19 = smov 108   ;;  %s4387_s20 = smov 107   ;;  %vm88_vm2 = vcmask 31744   ;;  %vm358_vm3 = vcmask 1031168   ;;  %vm523_vm4 = vcmask 1022976   ;;  %vm688_vm5 = vcmask 1014784  }
   0x5   :  { %s4388_s25 = smov 106   ;;  %s4389_s28 = smov 105   ;;  %vm853_vm6 = vcmask 883712   ;;  %vm1018_vm7 = vcmask 875520   ;;  %vm1183_vm8 = vcmask 867328   ;;  %vm1348_vm9 = vcmask 859136  }
   0x6   :  { %s4390_s4 = smov 104   ;;  %s4391_s7 = smov 88   ;;  %vm1513_vm10 = vcmask 850944   ;;  %vm1678_vm11 = vcmask 719872   ;;  %vm1843_vm12 = vcmask 711680   ;;  %vm2008_vm13 = vcmask 703488  }
   0x7   :  { %s4392_s10 = smov 87   ;;  %s4393_s13 = smov 86   ;;  %vm2173_vm14 = vcmask 695296   ;;  %vm2338_vm15 = vcmask 687104  }
   0x8   :  { %s4396_s21 = smov 68   ;;  %s4397_s24 = smov 67  }
   0x9   :  { %v52_v2 = vld.sshfl [vmem:[#allocation1 + $0x10] sm:$0xff pattern:$0x73625140]  ;;  %v48_v3 = vld.sshfl [vmem:[#allocation1] sm:$0xff pattern:$0x73625140] }
   0xa   :  { %68 = vrot.lane.b32.xlu0 %v52_v2, %s4382_s16  ;;  %64 = vrot.lane.b32.xlu1 %v48_v3, %s4382_s16  ;;  %v54_v4 = vld.sshfl [vmem:[#allocation1 + $0x18] sm:$0xff pattern:$0x73625140]  ;;  %v50_v5 = vld.sshfl [vmem:[#allocation1 + $0x8] sm:$0xff pattern:$0x73625140] }
   0xb   :  { %205 = vst [vmem:[#allocation1] ss:$4 sm:$0xff] %v4431_v0  ;;  %v62_v6 = vld.sshfl [vmem:[#allocation1 + $0x38] sm:$0xff pattern:$0x73625140]  ;;  %s4398_s27 = smov 66  }
   0xc   :  { %v56_v7 = vld.sshfl [vmem:[#allocation1 + $0x20] sm:$0xff pattern:$0x73625140]  ;;  %v58_v8 = vld.sshfl [vmem:[#allocation1 + $0x28] sm:$0xff pattern:$0x73625140] }
   0xd   :  { %72 = vrot.lane.b32.xlu2 %v56_v7, %s4382_s16  ;;  %v60_v9 = vld.sshfl [vmem:[#allocation1 + $0x30] sm:$0xff pattern:$0x73625140]  ;;  %v19_v2 = vld [vmem:[%s5757_s1 + $0x4] sm:$0xf]  ;;  %s4400_s6 = smov 64  }
   0xe   :  { %207 = vst [vmem:[#allocation1 + $0x20] ss:$4 sm:$0xff] %v4436_v1  ;;  %s4401_s9 = smov 48   ;;  %s4402_s12 = smov 47  }
   0xf   :  { %s4403_s15 = smov 46  }
  0x12   :  { %70 = vrot.lane.b32.xlu0 %v54_v4, %s4382_s16  ;;  %66 = vrot.lane.b32.xlu1 %v50_v5, %s4382_s16  ;;  %v4442_v10 = vld.sshfl [vmem:[#allocation1] sm:$0xff pattern:$0x73625140]  ;;  %v4444_v11 = vld.sshfl [vmem:[#allocation1 + $0x8] sm:$0xff pattern:$0x73625140] }
  0x13   :  { %v4446_v12 = vld.sshfl [vmem:[#allocation1 + $0x10] sm:$0xff pattern:$0x73625140]  ;;  %v4448_v13 = vld.sshfl [vmem:[#allocation1 + $0x18] sm:$0xff pattern:$0x73625140] }
  0x14   :  { %323 = vst [vmem:[#allocation1] ss:$4 sm:$0xff] %v4431_v0  ;;  %v218_v55 = vsel %vm92_vm1, %v4442_v10, 0 }
  0x15   :  { %76 = vrot.lane.b32.xlu2 %v60_v9, %s4382_s16  ;;  %v4451_v14 = vld.sshfl [vmem:[#allocation1 + $0x20] sm:$0xff pattern:$0x73625140]  ;;  %v4453_v15 = vld.sshfl [vmem:[#allocation1 + $0x28] sm:$0xff pattern:$0x73625140] }
  0x16   :  { %v4455_v16 = vld.sshfl [vmem:[#allocation1 + $0x30] sm:$0xff pattern:$0x73625140]  ;;  %v226_v4 = vsel %vm92_vm1, %v4451_v14, 0 }
  0x17   :  { %325 = vst [vmem:[#allocation1 + $0x20] ss:$4 sm:$0xff] %v4436_v1 }
  0x1a   :  { %78 = vrot.lane.b32.xlu0 %v62_v6, %s4382_s16  ;;  %74 = vrot.lane.b32.xlu1 %v58_v8, %s4382_s16  ;;  %v224_v8 = vsel %vm92_vm1, %v4448_v13, 0  ;;  %s4394_s16 = smov 85  }
  0x1b   :  { %v330_v17 = vld.sshfl [vmem:[#allocation1 + $0x10] sm:$0xff pattern:$0x73625140]  ;;  %v326_v18 = vld.sshfl [vmem:[#allocation1] sm:$0xff pattern:$0x73625140] }
  0x1c   :  { %v328_v19 = vld.sshfl [vmem:[#allocation1 + $0x8] sm:$0xff pattern:$0x73625140]  ;;  %v332_v20 = vld.sshfl [vmem:[#allocation1 + $0x18] sm:$0xff pattern:$0x73625140] }
  0x1d   :  { %488 = vst [vmem:[#allocation1] ss:$4 sm:$0xff] %v4431_v0  ;;  %342 = vrot.lane.b32.xlu2 %v326_v18, %s4383_s0  ;;  %v220_v18 = vsel %vm92_vm1, %v4444_v11, 0 }
  0x1e   :  { %v336_v21 = vld.sshfl [vmem:[#allocation1 + $0x28] sm:$0xff pattern:$0x73625140]  ;;  %v340_v22 = vld.sshfl [vmem:[#allocation1 + $0x38] sm:$0xff pattern:$0x73625140] }
  0x1f   :  { %v334_v23 = vld.sshfl [vmem:[#allocation1 + $0x20] sm:$0xff pattern:$0x73625140]  ;;  %v338_v24 = vld.sshfl [vmem:[#allocation1 + $0x30] sm:$0xff pattern:$0x73625140] }
  0x20   :  { %490 = vst [vmem:[#allocation1 + $0x20] ss:$4 sm:$0xff] %v4436_v1 }
  0x22   :  { %346 = vrot.lane.b32.xlu1 %v330_v17, %s4383_s0  ;;  %344 = vrot.lane.b32.xlu0 %v328_v19, %s4383_s0 }
  0x24   :  { %v493_v25 = vld.sshfl [vmem:[#allocation1 + $0x8] sm:$0xff pattern:$0x73625140]  ;;  %v495_v26 = vld.sshfl [vmem:[#allocation1 + $0x10] sm:$0xff pattern:$0x73625140] }
  0x25   :  { %v491_v27 = vld.sshfl [vmem:[#allocation1] sm:$0xff pattern:$0x73625140]  ;;  %350 = vrot.lane.b32.xlu2 %v334_v23, %s4383_s0  ;;  %v497_v28 = vld.sshfl [vmem:[#allocation1 + $0x18] sm:$0xff pattern:$0x73625140] }
  0x26   :  { %653 = vst [vmem:[#allocation1] ss:$4 sm:$0xff] %v4431_v0 }
  0x27   :  { %v505_v33 = vld.sshfl [vmem:[#allocation1 + $0x38] sm:$0xff pattern:$0x73625140]  ;;  %v499_v34 = vld.sshfl [vmem:[#allocation1 + $0x20] sm:$0xff pattern:$0x73625140] }
  0x28   :  { %v503_v35 = vld.sshfl [vmem:[#allocation1 + $0x30] sm:$0xff pattern:$0x73625140]  ;;  %v501_v36 = vld.sshfl [vmem:[#allocation1 + $0x28] sm:$0xff pattern:$0x73625140] }
  0x29   :  { %655 = vst [vmem:[#allocation1 + $0x20] ss:$4 sm:$0xff] %v4436_v1 }
  0x2a   :  { %348 = vrot.lane.b32.xlu1 %v332_v20, %s4383_s0  ;;  %352 = vrot.lane.b32.xlu0 %v336_v21, %s4383_s0  ;;  %v222_v21 = vsel %vm92_vm1, %v4446_v12, 0  ;;  %v4523_v12 = vld [vmem:[%s5757_s1] sm:$0xf] }
  0x2d   :  { %354 = vrot.lane.b32.xlu2 %v338_v24, %s4383_s0  ;;  %v660_v29 = vld.sshfl [vmem:[#allocation1 + $0x10] sm:$0xff pattern:$0x73625140]  ;;  %v656_v30 = vld.sshfl [vmem:[#allocation1] sm:$0xff pattern:$0x73625140] }
  0x2e   :  { %v662_v31 = vld.sshfl [vmem:[#allocation1 + $0x18] sm:$0xff pattern:$0x73625140]  ;;  %v658_v32 = vld.sshfl [vmem:[#allocation1 + $0x8] sm:$0xff pattern:$0x73625140] }
  0x2f   :  { %818 = vst [vmem:[#allocation1] ss:$4 sm:$0xff] %v4431_v0 }
  0x30   :  { %v664_v37 = vld.sshfl [vmem:[#allocation1 + $0x20] sm:$0xff pattern:$0x73625140]  ;;  %v668_v38 = vld.sshfl [vmem:[#allocation1 + $0x30] sm:$0xff pattern:$0x73625140] }
  0x31   :  { %v666_v39 = vld.sshfl [vmem:[#allocation1 + $0x28] sm:$0xff pattern:$0x73625140]  ;;  %v670_v40 = vld.sshfl [vmem:[#allocation1 + $0x38] sm:$0xff pattern:$0x73625140] }
  0x32   :  { %509 = vrot.lane.b32.xlu0 %v493_v25, %s4384_s17  ;;  %511 = vrot.lane.b32.xlu1 %v495_v26, %s4384_s17  ;;  %820 = vst [vmem:[#allocation1 + $0x20] ss:$4 sm:$0xff] %v4436_v1 }
  0x35   :  { %356 = vrot.lane.b32.xlu2 %v340_v22, %s4383_s0  ;;  %s4395_s0 = smov 84  }
  0x36   :  { %v823_v41 = vld.sshfl [vmem:[#allocation1 + $0x8] sm:$0xff pattern:$0x73625140]  ;;  %v821_v42 = vld.sshfl [vmem:[#allocation1] sm:$0xff pattern:$0x73625140] }
  0x37   :  { %v827_v43 = vld.sshfl [vmem:[#allocation1 + $0x18] sm:$0xff pattern:$0x73625140]  ;;  %v825_v44 = vld.sshfl [vmem:[#allocation1 + $0x10] sm:$0xff pattern:$0x73625140] }
  0x38   :  { %983 = vst [vmem:[#allocation1] ss:$4 sm:$0xff] %v4431_v0 }
  0x39   :  { %v829_v45 = vld.sshfl [vmem:[#allocation1 + $0x20] sm:$0xff pattern:$0x73625140]  ;;  %v831_v46 = vld.sshfl [vmem:[#allocation1 + $0x28] sm:$0xff pattern:$0x73625140] }
  0x3a   :  { %507 = vrot.lane.b32.xlu0 %v491_v27, %s4384_s17  ;;  %513 = vrot.lane.b32.xlu1 %v497_v28, %s4384_s17  ;;  %v4477_v49 = vld.sshfl [vmem:[#allocation1 + $0x38] sm:$0xff pattern:$0x73625140]  ;;  %v833_v51 = vld.sshfl [vmem:[#allocation1 + $0x30] sm:$0xff pattern:$0x73625140] }
  0x3b   :  { %985 = vst [vmem:[#allocation1 + $0x20] ss:$4 sm:$0xff] %v4436_v1 }
  0x3d   :  { %517 = vrot.lane.b32.xlu2 %v501_v36, %s4384_s17 }
  0x3f   :  { %v988_v50 = vld.sshfl [vmem:[#allocation1 + $0x8] sm:$0xff pattern:$0x73625140]  ;;  %v990_v5 = vld.sshfl [vmem:[#allocation1 + $0x10] sm:$0xff pattern:$0x73625140] }
  0x40   :  { %v992_v23 = vld.sshfl [vmem:[#allocation1 + $0x18] sm:$0xff pattern:$0x73625140] }
  0x42   :  { %515 = vrot.lane.b32.xlu1 %v499_v34, %s4384_s17  ;;  %519 = vrot.lane.b32.xlu0 %v503_v35, %s4384_s17  ;;  %v994_v9 = vld.sshfl [vmem:[#allocation1 + $0x20] sm:$0xff pattern:$0x73625140]  ;;  %v1000_v35 = vld.sshfl [vmem:[#allocation1 + $0x38] sm:$0xff pattern:$0x73625140] }
  0x45   :  { %521 = vrot.lane.b32.xlu2 %v505_v33, %s4384_s17  ;;  %v986_v33 = vld.sshfl [vmem:[#allocation1] sm:$0xff pattern:$0x73625140]  ;;  %s4404_s17 = smov 45  }
  0x46   :  { %1148 = vst [vmem:[#allocation1] ss:$4 sm:$0xff] %v4431_v0 }
  0x4a   :  { %676 = vrot.lane.b32.xlu0 %v660_v29, %s4385_s18  ;;  %678 = vrot.lane.b32.xlu1 %v662_v31, %s4385_s18  ;;  %v230_v31 = vsel %vm92_vm1, %v4455_v16, 0 }
  0x4d   :  { %672 = vrot.lane.b32.xlu2 %v656_v30, %s4385_s18  ;;  %v228_v30 = vsel %vm92_vm1, %v4453_v15, 0  ;;  %v1155_v16 = vld.sshfl [vmem:[#allocation1 + $0x10] sm:$0xff pattern:$0x73625140] }
  0x52   :  { %674 = vrot.lane.b32.xlu0 %v658_v32, %s4385_s18  ;;  %680 = vrot.lane.b32.xlu1 %v664_v37, %s4385_s18  ;;  %v998_v32 = vld.sshfl [vmem:[#allocation1 + $0x30] sm:$0xff pattern:$0x73625140] }
  0x55   :  { %684 = vrot.lane.b32.xlu2 %v668_v38, %s4385_s18 }
  0x5a   :  { %682 = vrot.lane.b32.xlu1 %v666_v39, %s4385_s18  ;;  %686 = vrot.lane.b32.xlu0 %v670_v40, %s4385_s18 }
  0x5d   :  { %837 = vrot.lane.b32.xlu2 %v821_v42, %s4386_s19 }
  0x62   :  { %839 = vrot.lane.b32.xlu0 %v823_v41, %s4386_s19  ;;  %843 = vrot.lane.b32.xlu1 %v827_v43, %s4386_s19 }
  0x65   :  { %845 = vrot.lane.b32.xlu2 %v829_v45, %s4386_s19 }
  0x67   :  { %v73_v52 = vpop.permute.xlu2 %72 }
  0x6a   :  { %841 = vrot.lane.b32.xlu0 %v825_v44, %s4386_s19  ;;  %847 = vrot.lane.b32.xlu1 %v831_v46, %s4386_s19 }
  0x6d   :  { %1002 = vrot.lane.b32.xlu2 %v986_v33, %s4387_s20  ;;  %v21_v33 = vld [vmem:[%s5757_s1 + $0xc] sm:$0xf] }
  0x6f   :  { %v77_v3 = vpop.permute.xlu2 %76 }
  0x72   :  { %1004 = vrot.lane.b32.xlu0 %v988_v50, %s4387_s20  ;;  %849 = vrot.lane.b32.xlu1 %v833_v51, %s4386_s19  ;;  %v1153_v51 = vld.sshfl [vmem:[#allocation1 + $0x8] sm:$0xff pattern:$0x73625140] }
  0x75   :  { %851 = vrot.lane.b32.xlu2 %v4477_v49, %s4386_s19 }
  0x77   :  { %v343_v22 = vpop.permute.xlu2 %342 }
  0x7a   :  { %1006 = vrot.lane.b32.xlu0 %v990_v5, %s4387_s20  ;;  %1010 = vrot.lane.b32.xlu1 %v994_v9, %s4387_s20  ;;  %v1151_v5 = vld.sshfl [vmem:[#allocation1] sm:$0xff pattern:$0x73625140] }
  0x7c   :  { %v69_v47 = vpop.permute.xlu0 %68  ;;  %v65_v48 = vpop.permute.xlu1 %64 }
  0x7f   :  { %v351_v29 = vpop.permute.xlu2 %350 }
  0x82   :  { %1008 = vrot.lane.b32.xlu0 %v992_v23, %s4387_s20  ;;  %1014 = vrot.lane.b32.xlu1 %v998_v32, %s4387_s20 }
  0x84   :  { %v71_v53 = vpop.permute.xlu0 %70  ;;  %v67_v54 = vpop.permute.xlu1 %66 }
  0x85   :  { %v81_v56 = vsel %vm80_vm0, %v65_v48, %v67_v54  ;;  %v82_v57 = vsel %vm80_vm0, %v67_v54, %v69_v47  ;;  %v83_v58 = vsel %vm80_vm0, %v69_v47, %v71_v53  ;;  %v84_v59 = vsel %vm80_vm0, %v71_v53, %v73_v52  ;;  %v1157_v47 = vld.sshfl [vmem:[#allocation1 + $0x18] sm:$0xff pattern:$0x73625140]  ;;  %v996_v48 = vld.sshfl [vmem:[#allocation1 + $0x28] sm:$0xff pattern:$0x73625140] }
  0x86   :  { %v94_v60 = vsel %vm92_vm1, %v81_v56, 0  ;;  %v97_v61 = vsel %vm92_vm1, %v82_v57, 0  ;;  %v100_v62 = vsel %vm92_vm1, %v83_v58, 0  ;;  %v103_v63 = vsel %vm92_vm1, %v84_v59, 0  ;;  %1150 = vst [vmem:[#allocation1 + $0x20] ss:$4 sm:$0xff] %v4436_v1  ;;  %1012 = vrot.lane.b32.xlu2 %v996_v48, %s4387_s20 }
  0x87   :  { %121 = vmatpush.bf16.msra.mxu0 %v94_v60  ;;  %134 = vmatpush.bf16.msra.mxu1 %v97_v61  ;;  %v355_v36 = vpop.permute.xlu2 %354  ;;  %v4572_v59 = vld [vmem:[%s5757_s1 + $0x8] sm:$0xf]  ;;  %1313 = vst [vmem:[#allocation1] ss:$4 sm:$0xff] %v4431_v0 }
  0x88   :  { %147 = vmatpush.bf16.msra.mxu2 %v100_v62  ;;  %160 = vmatpush.bf16.msra.mxu3 %v103_v63 }
  0x8a   :  { %4154 = vmatmul.msk.bf16.vlgmr.msra.gmra.mxu0 %vm88_vm2, %v19_v2  ;;  %4155 = vmatmul.msk.bf16.vlgmr.msra.gmra.mxu1 %vm88_vm2, %v19_v2 }
  0x8b   :  { %4156 = vmatmul.msk.bf16.vlgmr.msra.gmra.mxu2 %vm88_vm2, %v19_v2  ;;  %4157 = vmatmul.msk.bf16.vlgmr.msra.gmra.mxu3 %vm88_vm2, %v19_v2 }
  0x8c   :  { %239 = vmatpush.bf16.msrb.mxu3 %v218_v55  ;;  %v79_v6 = vpop.permute.xlu0 %78  ;;  %v75_v7 = vpop.permute.xlu1 %74  ;;  %1171 = vrot.lane.b32.xlu0 %v1155_v16, %s4388_s25 }
  0x8d   :  { %v85_v10 = vsel %vm80_vm0, %v73_v52, %v75_v7  ;;  %v86_v14 = vsel %vm80_vm0, %v75_v7, %v77_v3  ;;  %v87_v17 = vsel %vm80_vm0, %v77_v3, %v79_v6  ;;  %1016 = vrot.lane.b32.xlu1 %v1000_v35, %s4387_s20  ;;  %v1161_v53 = vld.sshfl [vmem:[#allocation1 + $0x28] sm:$0xff pattern:$0x73625140]  ;;  %v1159_v54 = vld.sshfl [vmem:[#allocation1 + $0x20] sm:$0xff pattern:$0x73625140] }
  0x8e   :  { %v106_v19 = vsel %vm92_vm1, %v85_v10, 0  ;;  %v109_v20 = vsel %vm92_vm1, %v86_v14, 0  ;;  %v112_v13 = vsel %vm92_vm1, %v87_v17, 0  ;;  %1169 = vrot.lane.b32.xlu2 %v1153_v51, %s4388_s25  ;;  %v1163_v62 = vld.sshfl [vmem:[#allocation1 + $0x30] sm:$0xff pattern:$0x73625140] }
  0x8f   :  { %173 = vmatpush.bf16.msrb.mxu0 %v106_v19  ;;  %186 = vmatpush.bf16.msrb.mxu1 %v109_v20  ;;  %v357_v49 = vpop.permute.xlu2 %356  ;;  %v1322_v9 = vld.sshfl [vmem:[#allocation1 + $0x18] sm:$0xff pattern:$0x73625140]  ;;  %vm2503_vm0 = vcmask 556032   ;;  %s4405_s20 = smov 44  }
  0x90   :  { %291 = vmatpush.bf16.msra.mxu3 %v226_v4  ;;  %199 = vmatpush.bf16.msrb.mxu2 %v112_v13  ;;  %v365_v55 = vsel %vm358_vm3, %v355_v36, %v357_v49  ;;  %v1165_v4 = vld.sshfl [vmem:[#allocation1 + $0x38] sm:$0xff pattern:$0x73625140] }
  0x91   :  { %v388_v60 = vsel %vm92_vm1, %v365_v55, 0  ;;  %1315 = vst [vmem:[#allocation1 + $0x20] ss:$4 sm:$0xff] %v4436_v1 }
  0x93   :  { %252 = vmatpush.bf16.msra.mxu0 %v220_v18  ;;  %265 = vmatpush.bf16.msra.mxu1 %v222_v21 }
  0x94   :  { %278 = vmatpush.bf16.msra.mxu2 %v224_v8  ;;  %v347_v11 = vpop.permute.xlu1 %346  ;;  %v345_v24 = vpop.permute.xlu0 %344  ;;  %1173 = vrot.lane.b32.xlu0 %v1157_v47, %s4388_s25 }
  0x95   :  { %v360_v25 = vsel %vm358_vm3, %v345_v24, %v347_v11  ;;  %v359_v26 = vsel %vm358_vm3, %v343_v22, %v345_v24  ;;  %1177 = vrot.lane.b32.xlu1 %v1161_v53, %s4388_s25  ;;  %v1316_v24 = vld.sshfl [vmem:[#allocation1] sm:$0xff pattern:$0x73625140] }
  0x96   :  { %v370_v27 = vsel %vm92_vm1, %v359_v26, 0  ;;  %v373_v28 = vsel %vm92_vm1, %v360_v25, 0  ;;  %1167 = vrot.lane.b32.xlu2 %v1151_v5, %s4388_s25  ;;  %v1320_v25 = vld.sshfl [vmem:[#allocation1 + $0x10] sm:$0xff pattern:$0x73625140] }
  0x97   :  { %v518_v3 = vpop.permute.xlu2 %517 }
  0x9a   :  { %4158 = vmatmul.msk.bf16.vlgmr.msrb.gmra.mxu0 %vm88_vm2, %v19_v2  ;;  %4159 = vmatmul.msk.bf16.vlgmr.msrb.gmra.mxu1 %vm88_vm2, %v19_v2 }
  0x9b   :  { %4160 = vmatmul.msk.bf16.vlgmr.msrb.gmra.mxu2 %vm88_vm2, %v19_v2  ;;  %4161 = vmatmul.msk.bf16.vlgmr.msrb.gmra.mxu3 %vm88_vm2, %v4523_v12 }
  0x9c   :  { %397 = vmatpush.bf16.msrb.mxu2 %v370_v27  ;;  %410 = vmatpush.bf16.msrb.mxu3 %v373_v28  ;;  %v353_v15 = vpop.permute.xlu0 %352  ;;  %v349_v34 = vpop.permute.xlu1 %348  ;;  %v1326_v28 = vld.sshfl [vmem:[#allocation1 + $0x28] sm:$0xff pattern:$0x73625140] }
  0x9d   :  { %304 = vmatpush.bf16.msrb.mxu0 %v228_v30  ;;  %317 = vmatpush.bf16.msrb.mxu1 %v230_v31  ;;  %v361_v37 = vsel %vm358_vm3, %v347_v11, %v349_v34  ;;  %v362_v38 = vsel %vm358_vm3, %v349_v34, %v351_v29  ;;  %v363_v39 = vsel %vm358_vm3, %v351_v29, %v353_v15  ;;  %v1324_v11 = vld.sshfl [vmem:[#allocation1 + $0x20] sm:$0xff pattern:$0x73625140] }
  0x9e   :  { %v364_v40 = vsel %vm358_vm3, %v353_v15, %v355_v36  ;;  %v376_v41 = vsel %vm92_vm1, %v361_v37, 0  ;;  %v379_v42 = vsel %vm92_vm1, %v362_v38, 0  ;;  %v382_v44 = vsel %vm92_vm1, %v363_v39, 0  ;;  %1175 = vrot.lane.b32.xlu0 %v1159_v54, %s4388_s25  ;;  %1181 = vrot.lane.b32.xlu1 %v1165_v4, %s4388_s25  ;;  %v1330_v15 = vld.sshfl [vmem:[#allocation1 + $0x38] sm:$0xff pattern:$0x73625140] }
  0x9f   :  { %v385_v45 = vsel %vm92_vm1, %v364_v40, 0  ;;  %v522_v8 = vpop.permute.xlu2 %521  ;;  %1179 = vrot.lane.b32.xlu2 %v1163_v62, %s4388_s25  ;;  %v1328_v37 = vld.sshfl [vmem:[#allocation1 + $0x30] sm:$0xff pattern:$0x73625140]  ;;  %vm2668_vm3 = vcmask 547840  }
  0xa0   :  { %v1318_v38 = vld.sshfl [vmem:[#allocation1 + $0x8] sm:$0xff pattern:$0x73625140]  ;;  %1480 = vst [vmem:[#allocation1 + $0x20] ss:$4 sm:$0xff] %v4436_v1 }
  0xa1   :  { %1478 = vst [vmem:[#allocation1] ss:$4 sm:$0xff] %v4431_v0 }
  0xa4   :  { %v510_v43 = vpop.permute.xlu0 %509  ;;  %v512_v46 = vpop.permute.xlu1 %511 }
  0xa5   :  { %v525_v57 = vsel %vm523_vm4, %v510_v43, %v512_v46 }
  0xa6   :  { %v538_v63 = vsel %vm92_vm1, %v525_v57, 0  ;;  %1338 = vrot.lane.b32.xlu0 %v1322_v9, %s4389_s28  ;;  %1332 = vrot.lane.b32.xlu1 %v1316_v24, %s4389_s28 }
  0xa7   :  { %1336 = vrot.lane.b32.xlu2 %v1320_v25, %s4389_s28  ;;  %v673_v26 = vpop.permute.xlu2 %672  ;;  %v1491_v55 = vld.sshfl [vmem:[#allocation1 + $0x28] sm:$0xff pattern:$0x73625140]  ;;  %v1493_v5 = vld.sshfl [vmem:[#allocation1 + $0x30] sm:$0xff pattern:$0x73625140] }
  0xa8   :  { %v1485_v57 = vld.sshfl [vmem:[#allocation1 + $0x10] sm:$0xff pattern:$0x73625140] }
  0xaa   :  { %4162 = vmatmul.msk.bf16.vlgmr.msra.gmra.mxu0 %vm88_vm2, %v4523_v12  ;;  %4163 = vmatmul.msk.bf16.vlgmr.msra.gmra.mxu1 %vm88_vm2, %v4523_v12 }
  0xab   :  { %4164 = vmatmul.msk.bf16.vlgmr.msra.gmra.mxu2 %vm88_vm2, %v4523_v12  ;;  %4165 = vmatmul.msk.bf16.vlgmr.msra.gmra.mxu3 %vm88_vm2, %v4523_v12 }
  0xac   :  { %423 = vmatpush.bf16.msra.mxu0 %v376_v41  ;;  %436 = vmatpush.bf16.msra.mxu1 %v379_v42  ;;  %v508_v50 = vpop.permute.xlu0 %507  ;;  %v514_v52 = vpop.permute.xlu1 %513  ;;  %v1487_v42 = vld.sshfl [vmem:[#allocation1 + $0x18] sm:$0xff pattern:$0x73625140] }
  0xad   :  { %449 = vmatpush.bf16.msra.mxu2 %v382_v44  ;;  %462 = vmatpush.bf16.msra.mxu3 %v385_v45  ;;  %v524_v56 = vsel %vm523_vm4, %v508_v50, %v510_v43  ;;  %v526_v58 = vsel %vm523_vm4, %v512_v46, %v514_v52  ;;  %v1481_v44 = vld.sshfl [vmem:[#allocation1] sm:$0xff pattern:$0x73625140] }
  0xae   :  { %v535_v61 = vsel %vm92_vm1, %v524_v56, 0  ;;  %v541_v2 = vsel %vm92_vm1, %v526_v58, 0  ;;  %1340 = vrot.lane.b32.xlu0 %v1324_v11, %s4389_s28  ;;  %1344 = vrot.lane.b32.xlu1 %v1328_v37, %s4389_s28  ;;  %v1489_v56 = vld.sshfl [vmem:[#allocation1 + $0x20] sm:$0xff pattern:$0x73625140] }
  0xaf   :  { %v685_v40 = vpop.permute.xlu2 %684  ;;  %1334 = vrot.lane.b32.xlu2 %v1318_v38, %s4389_s28 }
  0xb4   :  { %v520_v6 = vpop.permute.xlu0 %519  ;;  %v516_v7 = vpop.permute.xlu1 %515 }
  0xb5   :  { %v527_v10 = vsel %vm523_vm4, %v514_v52, %v516_v7  ;;  %v528_v14 = vsel %vm523_vm4, %v516_v7, %v518_v3  ;;  %v529_v17 = vsel %vm523_vm4, %v518_v3, %v520_v6  ;;  %v530_v18 = vsel %vm523_vm4, %v520_v6, %v522_v8 }
  0xb6   :  { %v544_v19 = vsel %vm92_vm1, %v527_v10, 0  ;;  %v547_v20 = vsel %vm92_vm1, %v528_v14, 0  ;;  %v553_v22 = vsel %vm92_vm1, %v530_v18, 0  ;;  %v550_v23 = vsel %vm92_vm1, %v529_v17, 0  ;;  %1342 = vrot.lane.b32.xlu0 %v1326_v28, %s4389_s28  ;;  %1497 = vrot.lane.b32.xlu1 %v1481_v44, %s4390_s4 }
  0xb7   :  { %v838_v45 = vpop.permute.xlu2 %837  ;;  %1346 = vrot.lane.b32.xlu2 %v1330_v15, %s4389_s28  ;;  %v1495_v18 = vld.sshfl [vmem:[#allocation1 + $0x38] sm:$0xff pattern:$0x73625140]  ;;  %s4399_s28 = smov 65   ;;  %vm2833_vm4 = vcmask 539648  }
  0xb8   :  { %1645 = vst [vmem:[#allocation1 + $0x20] ss:$4 sm:$0xff] %v4436_v1 }
  0xba   :  { %4166 = vmatmul.msk.bf16.vlgmr.msrb.gmra.mxu0 %vm88_vm2, %v4523_v12  ;;  %4167 = vmatmul.msk.bf16.vlgmr.msrb.gmra.mxu1 %vm88_vm2, %v4523_v12 }
  0xbb   :  { %4168 = vmatmul.msk.bf16.vlgmr.msrb.gmra.mxu2 %vm88_vm2, %v4572_v59  ;;  %4169 = vmatmul.msk.bf16.vlgmr.msrb.gmra.mxu3 %vm88_vm2, %v4572_v59 }
  0xbc   :  { %475 = vmatpush.bf16.msrb.mxu0 %v388_v60  ;;  %562 = vmatpush.bf16.msrb.mxu1 %v535_v61  ;;  %v677_v13 = vpop.permute.xlu0 %676  ;;  %v679_v21 = vpop.permute.xlu1 %678  ;;  %v1483_v60 = vld.sshfl [vmem:[#allocation1 + $0x8] sm:$0xff pattern:$0x73625140] }
  0xbd   :  { %575 = vmatpush.bf16.msrb.mxu2 %v538_v63  ;;  %588 = vmatpush.bf16.msrb.mxu3 %v541_v2  ;;  %v691_v29 = vsel %vm688_vm5, %v677_v13, %v679_v21  ;;  %1643 = vst [vmem:[#allocation1] ss:$4 sm:$0xff] %v4431_v0  ;;  %v22_v2 = vld [vmem:[%s5757_s1 + $0x10] sm:$0xf] }
  0xbe   :  { %v706_v16 = vsel %vm92_vm1, %v691_v29, 0  ;;  %1503 = vrot.lane.b32.xlu0 %v1487_v42, %s4390_s4  ;;  %1505 = vrot.lane.b32.xlu1 %v1489_v56, %s4390_s4 }
  0xbf   :  { %v846_v58 = vpop.permute.xlu2 %845  ;;  %1499 = vrot.lane.b32.xlu2 %v1483_v60, %s4390_s4  ;;  %v1656_v15 = vld.sshfl [vmem:[#allocation1 + $0x28] sm:$0xff pattern:$0x73625140] }
  0xc4   :  { %v675_v12 = vpop.permute.xlu0 %674  ;;  %v681_v27 = vpop.permute.xlu1 %680  ;;  %v1646_v14 = vld.sshfl [vmem:[#allocation1] sm:$0xff pattern:$0x73625140]  ;;  %v1652_v28 = vld.sshfl [vmem:[#allocation1 + $0x18] sm:$0xff pattern:$0x73625140] }
  0xc5   :  { %v690_v30 = vsel %vm688_vm5, %v675_v12, %v677_v13  ;;  %v692_v31 = vsel %vm688_vm5, %v679_v21, %v681_v27  ;;  %v689_v32 = vsel %vm688_vm5, %v673_v26, %v675_v12  ;;  %v1654_v26 = vld.sshfl [vmem:[#allocation1 + $0x20] sm:$0xff pattern:$0x73625140]  ;;  %v4682_v12 = vld [vmem:[%s5757_s1 + $0x14] sm:$0xf] }
  0xc6   :  { %v703_v34 = vsel %vm92_vm1, %v690_v30, 0  ;;  %v709_v35 = vsel %vm92_vm1, %v692_v31, 0  ;;  %v700_v36 = vsel %vm92_vm1, %v689_v32, 0  ;;  %1507 = vrot.lane.b32.xlu0 %v1491_v55, %s4390_s4  ;;  %1662 = vrot.lane.b32.xlu1 %v1646_v14, %s4391_s7 }
  0xc7   :  { %v1003_v17 = vpop.permute.xlu2 %1002  ;;  %1501 = vrot.lane.b32.xlu2 %v1485_v57, %s4390_s4 }
  0xca   :  { %4170 = vmatmul.msk.bf16.vlgmr.msra.gmra.mxu0 %vm88_vm2, %v4572_v59  ;;  %4171 = vmatmul.msk.bf16.vlgmr.msra.gmra.mxu1 %vm88_vm2, %v4572_v59 }
  0xcb   :  { %4172 = vmatmul.msk.bf16.vlgmr.msra.gmra.mxu2 %vm88_vm2, %v4572_v59  ;;  %4173 = vmatmul.msk.bf16.vlgmr.msra.gmra.mxu3 %vm88_vm2, %v4572_v59 }
  0xcc   :  { %601 = vmatpush.bf16.msra.mxu0 %v544_v19  ;;  %614 = vmatpush.bf16.msra.mxu1 %v547_v20  ;;  %v687_v39 = vpop.permute.xlu0 %686  ;;  %v683_v41 = vpop.permute.xlu1 %682 }
  0xcd   :  { %627 = vmatpush.bf16.msra.mxu2 %v550_v23  ;;  %640 = vmatpush.bf16.msra.mxu3 %v553_v22  ;;  %v693_v46 = vsel %vm688_vm5, %v681_v27, %v683_v41  ;;  %v694_v47 = vsel %vm688_vm5, %v683_v41, %v685_v40  ;;  %v695_v48 = vsel %vm688_vm5, %v685_v40, %v687_v39  ;;  %v1650_v27 = vld.sshfl [vmem:[#allocation1 + $0x10] sm:$0xff pattern:$0x73625140]  ;;  %vm2998_vm5 = vcmask 531456  }
  0xce   :  { %v712_v50 = vsel %vm92_vm1, %v693_v46, 0  ;;  %v715_v51 = vsel %vm92_vm1, %v694_v47, 0  ;;  %v718_v52 = vsel %vm92_vm1, %v695_v48, 0  ;;  %1509 = vrot.lane.b32.xlu0 %v1493_v5, %s4390_s4  ;;  %1511 = vrot.lane.b32.xlu1 %v1495_v18, %s4390_s4 }
  0xcf   :  { %v852_v13 = vpop.permute.xlu2 %851 }
  0xd4   :  { %v840_v43 = vpop.permute.xlu0 %839  ;;  %v844_v53 = vpop.permute.xlu1 %843 }
  0xd5   :  { %v854_v49 = vsel %vm853_vm6, %v838_v45, %v840_v43  ;;  %v857_v3 = vsel %vm853_vm6, %v844_v53, %v846_v58 }
  0xd6   :  { %v865_v54 = vsel %vm92_vm1, %v854_v49, 0  ;;  %v874_v8 = vsel %vm92_vm1, %v857_v3, 0  ;;  %1670 = vrot.lane.b32.xlu0 %v1654_v26, %s4391_s7  ;;  %1672 = vrot.lane.b32.xlu1 %v1656_v15, %s4391_s7 }
  0xda   :  { %4174 = vmatmul.msk.bf16.vlgmr.msrb.gmra.mxu0 %vm88_vm2, %v4572_v59  ;;  %4175 = vmatmul.msk.bf16.vlgmr.msrb.gmra.mxu1 %vm88_vm2, %v21_v33 }
  0xdb   :  { %4176 = vmatmul.msk.bf16.vlgmr.msrb.gmra.mxu2 %vm88_vm2, %v21_v33  ;;  %4177 = vmatmul.msk.bf16.vlgmr.msrb.gmra.mxu3 %vm88_vm2, %v21_v33 }
  0xdc   :  { %740 = vmatpush.bf16.msrb.mxu1 %v703_v34  ;;  %753 = vmatpush.bf16.msrb.mxu2 %v706_v16  ;;  %v842_v59 = vpop.permute.xlu0 %841  ;;  %v848_v61 = vpop.permute.xlu1 %847  ;;  %v1648_v34 = vld.sshfl [vmem:[#allocation1 + $0x8] sm:$0xff pattern:$0x73625140] }
  0xdd   :  { %766 = vmatpush.bf16.msrb.mxu3 %v709_v35  ;;  %727 = vmatpush.bf16.msrb.mxu0 %v700_v36  ;;  %v855_v62 = vsel %vm853_vm6, %v840_v43, %v842_v59  ;;  %v856_v63 = vsel %vm853_vm6, %v842_v59, %v844_v53  ;;  %v858_v4 = vsel %vm853_vm6, %v846_v58, %v848_v61  ;;  %v1658_v35 = vld.sshfl [vmem:[#allocation1 + $0x30] sm:$0xff pattern:$0x73625140] }
  0xde   :  { %v868_v6 = vsel %vm92_vm1, %v855_v62, 0  ;;  %v871_v7 = vsel %vm92_vm1, %v856_v63, 0  ;;  %v877_v9 = vsel %vm92_vm1, %v858_v4, 0  ;;  %1808 = vst [vmem:[#allocation1] ss:$4 sm:$0xff] %v4431_v0  ;;  %1664 = vrot.lane.b32.xlu2 %v1648_v34, %s4391_s7  ;;  %1674 = vrot.lane.b32.xlu0 %v1658_v35, %s4391_s7 }
  0xe0   :  { %v1013_v16 = vpop.permute.xlu2 %1012 }
  0xe4   :  { %v1005_v10 = vpop.permute.xlu0 %1004  ;;  %v850_v19 = vpop.permute.xlu1 %849 }
  0xe5   :  { %v859_v21 = vsel %vm853_vm6, %v848_v61, %v850_v19  ;;  %v1019_v22 = vsel %vm1018_vm7, %v1003_v17, %v1005_v10  ;;  %v860_v25 = vsel %vm853_vm6, %v850_v19, %v852_v13  ;;  %v1813_v41 = vld.sshfl [vmem:[#allocation1 + $0x8] sm:$0xff pattern:$0x73625140]  ;;  %v1811_v58 = vld.sshfl [vmem:[#allocation1] sm:$0xff pattern:$0x73625140] }
  0xe6   :  { %v1030_v29 = vsel %vm92_vm1, %v1019_v22, 0  ;;  %v880_v30 = vsel %vm92_vm1, %v859_v21, 0  ;;  %v883_v32 = vsel %vm92_vm1, %v860_v25, 0  ;;  %1829 = vrot.lane.b32.xlu1 %v1813_v41, %s4392_s10  ;;  %1666 = vrot.lane.b32.xlu2 %v1650_v27, %s4391_s7  ;;  %v4744_v13 = vld [vmem:[%s5757_s1 + $0x18] sm:$0xf]  ;;  %vm3163_vm6 = vcmask 523264  }
  0xe7   :  { %v1817_v22 = vld.sshfl [vmem:[#allocation1 + $0x18] sm:$0xff pattern:$0x73625140] }
  0xea   :  { %4178 = vmatmul.msk.bf16.vlgmr.msra.gmra.mxu0 %vm88_vm2, %v21_v33  ;;  %4179 = vmatmul.msk.bf16.vlgmr.msra.gmra.mxu1 %vm88_vm2, %v21_v33 }
  0xeb   :  { %4180 = vmatmul.msk.bf16.vlgmr.msra.gmra.mxu2 %vm88_vm2, %v21_v33  ;;  %4181 = vmatmul.msk.bf16.vlgmr.msra.gmra.mxu3 %vm88_vm2, %v21_v33 }
  0xec   :  { %779 = vmatpush.bf16.msra.mxu0 %v712_v50  ;;  %792 = vmatpush.bf16.msra.mxu1 %v715_v51  ;;  %v1007_v20 = vpop.permute.xlu0 %1006  ;;  %v1011_v33 = vpop.permute.xlu1 %1010  ;;  %v1660_v51 = vld.sshfl [vmem:[#allocation1 + $0x38] sm:$0xff pattern:$0x73625140] }
  0xed   :  { %805 = vmatpush.bf16.msra.mxu2 %v718_v52  ;;  %892 = vmatpush.bf16.msra.mxu3 %v865_v54  ;;  %v1020_v24 = vsel %vm1018_vm7, %v1005_v10, %v1007_v20  ;;  %v1023_v49 = vsel %vm1018_vm7, %v1011_v33, %v1013_v16  ;;  %v1170_v54 = vpop.permute.xlu2 %1169  ;;  %1810 = vst [vmem:[#allocation1 + $0x20] ss:$4 sm:$0xff] %v4436_v1 }
  0xee   :  { %v1033_v31 = vsel %vm92_vm1, %v1020_v24, 0  ;;  %1676 = vrot.lane.b32.xlu0 %v1660_v51, %s4391_s7  ;;  %v1042_v56 = vsel %vm92_vm1, %v1023_v49, 0  ;;  %1827 = vrot.lane.b32.xlu1 %v1811_v58, %s4392_s10 }
  0xef   :  { %1668 = vrot.lane.b32.xlu2 %v1652_v28, %s4391_s7  ;;  %v1815_v28 = vld.sshfl [vmem:[#allocation1 + $0x10] sm:$0xff pattern:$0x73625140] }
  0xf0   :  { %1973 = vst [vmem:[#allocation1] ss:$4 sm:$0xff] %v4431_v0 }
  0xf4   :  { %v1009_v40 = vpop.permute.xlu0 %1008  ;;  %v1015_v42 = vpop.permute.xlu1 %1014  ;;  %v1823_v21 = vld.sshfl [vmem:[#allocation1 + $0x30] sm:$0xff pattern:$0x73625140]  ;;  %v1825_v27 = vld.sshfl [vmem:[#allocation1 + $0x38] sm:$0xff pattern:$0x73625140] }
  0xf5   :  { %v1021_v45 = vsel %vm1018_vm7, %v1007_v20, %v1009_v40  ;;  %v1022_v46 = vsel %vm1018_vm7, %v1009_v40, %v1011_v33  ;;  %v1024_v50 = vsel %vm1018_vm7, %v1013_v16, %v1015_v42  ;;  %v1168_v4 = vpop.permute.xlu2 %1167 }
  0xf6   :  { %v1036_v52 = vsel %vm92_vm1, %v1021_v45, 0  ;;  %v1039_v53 = vsel %vm92_vm1, %v1022_v46, 0  ;;  %v1045_v55 = vsel %vm92_vm1, %v1024_v50, 0  ;;  %1839 = vrot.lane.b32.xlu1 %v1823_v21, %s4392_s10 }
  0xf7   :  { %1831 = vrot.lane.b32.xlu2 %v1815_v28, %s4392_s10  ;;  %v1980_v16 = vld.sshfl [vmem:[#allocation1 + $0x10] sm:$0xff pattern:$0x73625140] }
  0xfa   :  { %4183 = vmatmul.msk.bf16.vlgmr.msrb.gmra.mxu1 %vm88_vm2, %v22_v2  ;;  %4182 = vmatmul.msk.bf16.vlgmr.msrb.gmra.mxu0 %vm88_vm2, %v22_v2 }
  0xfb   :  { %4184 = vmatmul.msk.bf16.vlgmr.msrb.gmra.mxu2 %vm88_vm2, %v22_v2  ;;  %4185 = vmatmul.msk.bf16.vlgmr.msrb.gmra.mxu3 %vm88_vm2, %v22_v2 }
  0xfc   :  { %905 = vmatpush.bf16.msrb.mxu0 %v868_v6  ;;  %918 = vmatpush.bf16.msrb.mxu1 %v871_v7 }
  0xfd   :  { %931 = vmatpush.bf16.msrb.mxu2 %v874_v8  ;;  %944 = vmatpush.bf16.msrb.mxu3 %v877_v9  ;;  %v1184_v9 = vsel %vm1183_vm8, %v1168_v4, %v1170_v54 }
  0xfe   :  { %v1172_v57 = vpop.permute.xlu0 %1171  ;;  %v1195_v24 = vsel %vm92_vm1, %v1184_v9, 0  ;;  %1996 = vrot.lane.b32.xlu1 %v1980_v16, %s4393_s13 }
  0xff   :  { %v1017_v3 = vpop.permute.xlu1 %1016  ;;  %v1185_v17 = vsel %vm1183_vm8, %v1170_v54, %v1172_v57  ;;  %1833 = vrot.lane.b32.xlu2 %v1817_v22, %s4392_s10 }
 0x100   :  { %v1025_v8 = vsel %vm1018_vm7, %v1015_v42, %v1017_v3  ;;  %vm3328_vm7 = vcmask 392192  }
 0x106   :  { %v1174_v5 = vpop.permute.xlu0 %1173 }
 0x107   :  { %v4673_v23 = vpop.f32.mrf.mxu0  ;;  %v4675_v11 = vpop.f32.mrf.mxu1  ;;  %v1186_v18 = vsel %vm1183_vm8, %v1172_v57, %v1174_v5 }
 0x108   :  { %v1201_v25 = vsel %vm92_vm1, %v1186_v18, 0  ;;  %v1178_v26 = vpop.permute.xlu1 %1177 }
 0x10a   :  { %4186 = vmatmul.msk.bf16.vlgmr.msra.gmra.mxu0 %vm88_vm2, %v22_v2  ;;  %4187 = vmatmul.msk.bf16.vlgmr.msra.gmra.mxu1 %vm88_vm2, %v22_v2 }
 0x10b   :  { %4188 = vmatmul.msk.bf16.vlgmr.msra.gmra.mxu2 %vm88_vm2, %v22_v2  ;;  %4189 = vmatmul.msk.bf16.vlgmr.msra.gmra.mxu3 %vm88_vm2, %v4682_v12  ;;  %v1821_v2 = vld.sshfl [vmem:[#allocation1 + $0x28] sm:$0xff pattern:$0x73625140] }
 0x10c   :  { %957 = vmatpush.bf16.msra.mxu0 %v880_v30  ;;  %1057 = vmatpush.bf16.msra.mxu2 %v1030_v29 }
 0x10d   :  { %1070 = vmatpush.bf16.msra.mxu3 %v1033_v31  ;;  %970 = vmatpush.bf16.msra.mxu1 %v883_v32 }
 0x10e   :  { %v149_v36 = vpop.f32.mrf.mxu2  ;;  %v4695_v37 = vpop.f32.mrf.mxu3  ;;  %1837 = vrot.lane.b32.xlu0 %v1821_v2, %s4392_s10 }
 0x10f   :  { %v125_v38 = vpop.f32.mrf.mxu0  ;;  %v138_v39 = vpop.f32.mrf.mxu1 }
 0x110   :  { %v1176_v34 = vpop.permute.xlu0 %1175  ;;  %v1182_v35 = vpop.permute.xlu1 %1181 }
 0x111   :  { %v1187_v39 = vsel %vm1183_vm8, %v1174_v5, %v1176_v34  ;;  %v1188_v40 = vsel %vm1183_vm8, %v1176_v34, %v1178_v26 }
 0x112   :  { %v1204_v46 = vsel %vm92_vm1, %v1187_v39, 0 }
 0x116   :  { %v151_v43 = vpop.f32.mrf.mxu2  ;;  %v164_v44 = vpop.f32.mrf.mxu3  ;;  %1841 = vrot.lane.b32.xlu0 %v1825_v27, %s4392_s10 }
 0x117   :  { %v4704_v47 = vpop.f32.mrf.mxu0  ;;  %v4706_v48 = vpop.f32.mrf.mxu1 }
 0x118   :  { %v1333_v2 = vpop.permute.xlu1 %1332 }
 0x11a   :  { %4190 = vmatmul.msk.bf16.vlgmr.msrb.gmra.mxu0 %vm88_vm2, %v4682_v12  ;;  %4191 = vmatmul.msk.bf16.vlgmr.msrb.gmra.mxu1 %vm88_vm2, %v4682_v12 }
 0x11b   :  { %4192 = vmatmul.msk.bf16.vlgmr.msrb.gmra.mxu2 %vm88_vm2, %v4682_v12  ;;  %4193 = vmatmul.msk.bf16.vlgmr.msrb.gmra.mxu3 %vm88_vm2, %v4682_v12 }
 0x11c   :  { %1083 = vmatpush.bf16.msrb.mxu0 %v1036_v52  ;;  %1096 = vmatpush.bf16.msrb.mxu1 %v1039_v53  ;;  %v1978_v52 = vld.sshfl [vmem:[#allocation1 + $0x8] sm:$0xff pattern:$0x73625140] }
 0x11d   :  { %1109 = vmatpush.bf16.msrb.mxu2 %v1042_v56  ;;  %1122 = vmatpush.bf16.msrb.mxu3 %v1045_v55 }
 0x11e   :  { %v4724_v59 = vpop.f32.mrf.mxu2  ;;  %v241_v60 = vpop.f32.mrf.mxu3  ;;  %1994 = vrot.lane.b32.xlu1 %v1978_v52, %s4393_s13 }
 0x11f   :  { %v4729_v61 = vadd.f32 %v241_v60, %v4673_v23  ;;  %v177_v62 = vpop.f32.mrf.mxu0  ;;  %v190_v63 = vpop.f32.mrf.mxu1  ;;  %v1048_v23 = vsel %vm92_vm1, %v1025_v8, 0  ;;  %v1976_v60 = vld.sshfl [vmem:[#allocation1] sm:$0xff pattern:$0x73625140]  ;;  %v4805_v8 = vld [vmem:[%s5757_s1 + $0x1c] sm:$0xf] }
 0x120   :  { %1992 = vrot.lane.b32.xlu0 %v1976_v60, %s4393_s13 }
 0x126   :  { %v203_v6 = vpop.f32.mrf.mxu2  ;;  %v243_v7 = vpop.f32.mrf.mxu3 }
 0x127   :  { %v254_v10 = vpop.f32.mrf.mxu0  ;;  %v267_v14 = vpop.f32.mrf.mxu1 }
 0x128   :  { %v4737_v19 = vadd.f32 %v254_v10, %v4675_v11  ;;  %v4739_v20 = vadd.f32 %v267_v14, %v149_v36  ;;  %v1198_v11 = vsel %vm92_vm1, %v1185_v17, 0 }
 0x12a   :  { %4194 = vmatmul.msk.bf16.vlgmr.msra.gmra.mxu0 %vm88_vm2, %v4682_v12  ;;  %4195 = vmatmul.msk.bf16.vlgmr.msra.gmra.mxu1 %vm88_vm2, %v4682_v12  ;;  %v1180_v12 = vpop.permute.xlu2 %1179 }
 0x12b   :  { %4196 = vmatmul.msk.bf16.vlgmr.msra.gmra.mxu2 %vm88_vm2, %v4744_v13  ;;  %4197 = vmatmul.msk.bf16.vlgmr.msra.gmra.mxu3 %vm88_vm2, %v4744_v13  ;;  %v1189_v42 = vsel %vm1183_vm8, %v1178_v26, %v1180_v12  ;;  %v1190_v43 = vsel %vm1183_vm8, %v1180_v12, %v1182_v35  ;;  %vm3493_vm8 = vcmask 384000  }
 0x12c   :  { %1135 = vmatpush.bf16.msra.mxu0 %v1048_v23  ;;  %1222 = vmatpush.bf16.msra.mxu1 %v1195_v24  ;;  %v1210_v50 = vsel %vm92_vm1, %v1189_v42, 0  ;;  %v1213_v51 = vsel %vm92_vm1, %v1190_v43, 0  ;;  %v1982_v23 = vld.sshfl [vmem:[#allocation1 + $0x18] sm:$0xff pattern:$0x73625140] }
 0x12d   :  { %1235 = vmatpush.bf16.msra.mxu2 %v1198_v11  ;;  %1248 = vmatpush.bf16.msra.mxu3 %v1201_v25  ;;  %2138 = vst [vmem:[#allocation1] ss:$4 sm:$0xff] %v4431_v0 }
 0x12e   :  { %v280_v29 = vpop.f32.mrf.mxu2  ;;  %v293_v30 = vpop.f32.mrf.mxu3 }
 0x12f   :  { %v281_v31 = vadd.f32 %v280_v29, %v4695_v37  ;;  %v4764_v32 = vadd.f32 %v293_v30, %v4704_v47  ;;  %v256_v33 = vpop.f32.mrf.mxu0  ;;  %v269_v15 = vpop.f32.mrf.mxu1  ;;  %v1207_v47 = vsel %vm92_vm1, %v1188_v40, 0 }
 0x132   :  { %v1337_v49 = vpop.permute.xlu2 %1336 }
 0x134   :  { %v2143_v15 = vld.sshfl [vmem:[#allocation1 + $0x8] sm:$0xff pattern:$0x73625140]  ;;  %v2141_v34 = vld.sshfl [vmem:[#allocation1] sm:$0xff pattern:$0x73625140] }
 0x135   :  { %v2147_v39 = vld.sshfl [vmem:[#allocation1 + $0x18] sm:$0xff pattern:$0x73625140] }
 0x136   :  { %v282_v36 = vpop.f32.mrf.mxu2  ;;  %v295_v38 = vpop.f32.mrf.mxu3 }
 0x137   :  { %v306_v37 = vpop.f32.mrf.mxu0  ;;  %v319_v41 = vpop.f32.mrf.mxu1 }
 0x138   :  { %v4773_v44 = vadd.f32 %v306_v37, %v4706_v48  ;;  %v4776_v45 = vadd.f32 %v319_v41, %v4724_v59  ;;  %v1339_v48 = vpop.permute.xlu0 %1338  ;;  %v1819_v59 = vld.sshfl [vmem:[#allocation1 + $0x20] sm:$0xff pattern:$0x73625140] }
 0x139   :  { %1835 = vrot.lane.b32.xlu2 %v1819_v59, %s4392_s10  ;;  %1975 = vst [vmem:[#allocation1 + $0x20] ss:$4 sm:$0xff] %v4436_v1  ;;  %v1351_v4 = vsel %vm1348_vm9, %v1337_v49, %v1339_v48  ;;  %s4145_s10 = sshll.u32 %s5759_s3, 4  ;;  %s4146_s10 = int_to_ptr.hbm [resolvable:$true] %s4145_s10 }
 0x13a   :  { %4198 = vmatmul.msk.bf16.vlgmr.msrb.gmra.mxu0 %vm88_vm2, %v4744_v13  ;;  %4199 = vmatmul.msk.bf16.vlgmr.msrb.gmra.mxu1 %vm88_vm2, %v4744_v13  ;;  %v1335_v62 = vpop.permute.xlu2 %1334 }
 0x13b   :  { %4200 = vmatmul.msk.bf16.vlgmr.msrb.gmra.mxu2 %vm88_vm2, %v4744_v13  ;;  %4201 = vmatmul.msk.bf16.vlgmr.msrb.gmra.mxu3 %vm88_vm2, %v4744_v13  ;;  %v1350_v5 = vsel %vm1348_vm9, %v1335_v62, %v1337_v49  ;;  %v1349_v10 = vsel %vm1348_vm9, %v1333_v2, %v1335_v62 }
 0x13c   :  { %1261 = vmatpush.bf16.msrb.mxu0 %v1204_v46  ;;  %1274 = vmatpush.bf16.msrb.mxu1 %v1207_v47  ;;  %v1363_v21 = vsel %vm92_vm1, %v1350_v5, 0  ;;  %v2145_v46 = vld.sshfl [vmem:[#allocation1 + $0x10] sm:$0xff pattern:$0x73625140] }
 0x13d   :  { %1287 = vmatpush.bf16.msrb.mxu2 %v1210_v50  ;;  %1300 = vmatpush.bf16.msrb.mxu3 %v1213_v51  ;;  %2303 = vst [vmem:[#allocation1] ss:$4 sm:$0xff] %v4431_v0 }
 0x13e   :  { %v399_v53 = vpop.f32.mrf.mxu2  ;;  %v412_v54 = vpop.f32.mrf.mxu3 }
 0x13f   :  { %v4792_v55 = vadd.f32 %v399_v53, %v4729_v61  ;;  %v4795_v56 = vadd.f32 %v412_v54, %v4737_v19  ;;  %v308_v57 = vpop.f32.mrf.mxu0  ;;  %v321_v58 = vpop.f32.mrf.mxu1  ;;  %v1366_v19 = vsel %vm92_vm1, %v1351_v4, 0 }
 0x140   :  { %v1341_v63 = vpop.permute.xlu0 %1340  ;;  %v1990_v18 = vld.sshfl [vmem:[#allocation1 + $0x38] sm:$0xff pattern:$0x73625140]  ;;  %v1988_v11 = vld.sshfl [vmem:[#allocation1 + $0x30] sm:$0xff pattern:$0x73625140] }
 0x141   :  { %v1352_v9 = vsel %vm1348_vm9, %v1339_v48, %v1341_v63  ;;  %2006 = vrot.lane.b32.xlu1 %v1990_v18, %s4393_s13  ;;  %1998 = vrot.lane.b32.xlu2 %v1982_v23, %s4393_s13  ;;  %v1984_v30 = vld.sshfl [vmem:[#allocation1 + $0x20] sm:$0xff pattern:$0x73625140] }
 0x142   :  { %v1369_v22 = vsel %vm92_vm1, %v1352_v9, 0  ;;  %v1347_v24 = vpop.permute.xlu2 %1346  ;;  %2004 = vrot.lane.b32.xlu0 %v1988_v11, %s4393_s13 }
 0x144   :  { %v2308_v62 = vld.sshfl [vmem:[#allocation1 + $0x8] sm:$0xff pattern:$0x73625140]  ;;  %v2306_v18 = vld.sshfl [vmem:[#allocation1] sm:$0xff pattern:$0x73625140] }
 0x145   :  { %v2310_v23 = vld.sshfl [vmem:[#allocation1 + $0x10] sm:$0xff pattern:$0x73625140] }
 0x146   :  { %v401_v3 = vpop.f32.mrf.mxu2  ;;  %v414_v61 = vpop.f32.mrf.mxu3 }
 0x147   :  { %v425_v6 = vpop.f32.mrf.mxu0  ;;  %v438_v7 = vpop.f32.mrf.mxu1 }
 0x148   :  { %v4810_v14 = vadd.f32 %v425_v6, %v4739_v20  ;;  %v4812_v17 = vadd.f32 %v438_v7, %v281_v31  ;;  %v1360_v20 = vsel %vm92_vm1, %v1349_v10, 0  ;;  %v1345_v31 = vpop.permute.xlu1 %1344  ;;  %v1343_v33 = vpop.permute.xlu0 %1342  ;;  %v4878_v7 = vld [vmem:[%s5757_s1 + $0x20] sm:$0xf] }
 0x149   :  { %2159 = vrot.lane.b32.xlu1 %v2143_v15, %s4394_s16  ;;  %v1354_v38 = vsel %vm1348_vm9, %v1343_v33, %v1345_v31  ;;  %2000 = vrot.lane.b32.xlu2 %v1984_v30, %s4393_s13  ;;  %v1355_v41 = vsel %vm1348_vm9, %v1345_v31, %v1347_v24 }
 0x14a   :  { %4202 = vmatmul.msk.bf16.vlgmr.msra.gmra.mxu0 %vm88_vm2, %v4744_v13  ;;  %4203 = vmatmul.msk.bf16.vlgmr.msra.gmra.mxu1 %vm88_vm2, %v4805_v8  ;;  %v1986_v13 = vld.sshfl [vmem:[#allocation1 + $0x28] sm:$0xff pattern:$0x73625140]  ;;  %v1500_v16 = vpop.permute.xlu2 %1499  ;;  %v1375_v49 = vsel %vm92_vm1, %v1354_v38, 0  ;;  %v4917_v38 = vld [vmem:[%s5757_s1 + $0x24] sm:$0xf] }
 0x14b   :  { %4204 = vmatmul.msk.bf16.vlgmr.msra.gmra.mxu2 %vm88_vm2, %v4805_v8  ;;  %4205 = vmatmul.msk.bf16.vlgmr.msra.gmra.mxu3 %vm88_vm2, %v4805_v8  ;;  %2140 = vst [vmem:[#allocation1 + $0x20] ss:$4 sm:$0xff] %v4436_v1 }
 0x14c   :  { %1400 = vmatpush.bf16.msra.mxu1 %v1363_v21  ;;  %1413 = vmatpush.bf16.msra.mxu2 %v1366_v19 }
 0x14d   :  { %1426 = vmatpush.bf16.msra.mxu3 %v1369_v22  ;;  %1387 = vmatpush.bf16.msra.mxu0 %v1360_v20 }
 0x14e   :  { %v451_v25 = vpop.f32.mrf.mxu2  ;;  %v464_v26 = vpop.f32.mrf.mxu3  ;;  %2157 = vrot.lane.b32.xlu0 %v2141_v34, %s4394_s16 }
 0x14f   :  { %v4831_v27 = vadd.f32 %v451_v25, %v4764_v32  ;;  %v4834_v28 = vadd.f32 %v464_v26, %v4773_v44  ;;  %v427_v12 = vpop.f32.mrf.mxu0  ;;  %v440_v29 = vpop.f32.mrf.mxu1  ;;  %v1353_v32 = vsel %vm1348_vm9, %v1341_v63, %v1343_v33  ;;  %vm3658_vm9 = vcmask 375808  }
 0x150   :  { %v1498_v44 = vpop.permute.xlu1 %1497  ;;  %v1372_v47 = vsel %vm92_vm1, %v1353_v32, 0  ;;  %v1504_v51 = vpop.permute.xlu0 %1503 }
 0x151   :  { %v1514_v50 = vsel %vm1513_vm10, %v1498_v44, %v1500_v16  ;;  %2161 = vrot.lane.b32.xlu1 %v2145_v46, %s4394_s16  ;;  %2002 = vrot.lane.b32.xlu2 %v1986_v13, %s4393_s13 }
 0x152   :  { %v1525_v48 = vsel %vm92_vm1, %v1514_v50, 0  ;;  %v2149_v52 = vld.sshfl [vmem:[#allocation1 + $0x20] sm:$0xff pattern:$0x73625140]  ;;  %v1502_v60 = vpop.permute.xlu2 %1501 }
 0x153   :  { %v1515_v4 = vsel %vm1513_vm10, %v1500_v16, %v1502_v60  ;;  %v1516_v5 = vsel %vm1513_vm10, %v1502_v60, %v1504_v51  ;;  %v2153_v24 = vld.sshfl [vmem:[#allocation1 + $0x30] sm:$0xff pattern:$0x73625140]  ;;  %v2155_v29 = vld.sshfl [vmem:[#allocation1 + $0x38] sm:$0xff pattern:$0x73625140] }
 0x154   :  { %v1528_v19 = vsel %vm92_vm1, %v1515_v4, 0  ;;  %v1531_v21 = vsel %vm92_vm1, %v1516_v5, 0  ;;  %v2151_v30 = vld.sshfl [vmem:[#allocation1 + $0x28] sm:$0xff pattern:$0x73625140] }
 0x155   :  { %2305 = vst [vmem:[#allocation1 + $0x20] ss:$4 sm:$0xff] %v4436_v1 }
 0x156   :  { %v453_v35 = vpop.f32.mrf.mxu2  ;;  %v466_v36 = vpop.f32.mrf.mxu3  ;;  %2165 = vrot.lane.b32.xlu0 %v2149_v52, %s4394_s16 }
 0x157   :  { %v477_v40 = vpop.f32.mrf.mxu0  ;;  %v564_v37 = vpop.f32.mrf.mxu1 }
 0x158   :  { %v4844_v42 = vadd.f32 %v477_v40, %v4776_v45  ;;  %v4847_v43 = vadd.f32 %v564_v37, %v4792_v55  ;;  %v1378_v45 = vsel %vm92_vm1, %v1355_v41, 0  ;;  %v1508_v63 = vpop.permute.xlu0 %1507  ;;  %v1506_v2 = vpop.permute.xlu1 %1505 }
 0x159   :  { %2324 = vrot.lane.b32.xlu1 %v2308_v62, %s4395_s0  ;;  %v1518_v9 = vsel %vm1513_vm10, %v1506_v2, %v1508_v63  ;;  %2163 = vrot.lane.b32.xlu2 %v2147_v39, %s4394_s16 }
 0x15a   :  { %4206 = vmatmul.msk.bf16.vlgmr.msrb.gmra.mxu0 %vm88_vm2, %v4805_v8  ;;  %4207 = vmatmul.msk.bf16.vlgmr.msrb.gmra.mxu1 %vm88_vm2, %v4805_v8  ;;  %v1665_v20 = vpop.permute.xlu2 %1664 }
 0x15b   :  { %4208 = vmatmul.msk.bf16.vlgmr.msrb.gmra.mxu2 %vm88_vm2, %v4805_v8  ;;  %4209 = vmatmul.msk.bf16.vlgmr.msrb.gmra.mxu3 %vm88_vm2, %v4805_v8  ;;  %v1517_v8 = vsel %vm1513_vm10, %v1504_v51, %v1506_v2 }
 0x15c   :  { %1439 = vmatpush.bf16.msrb.mxu0 %v1372_v47  ;;  %1452 = vmatpush.bf16.msrb.mxu1 %v1375_v49  ;;  %v1534_v22 = vsel %vm92_vm1, %v1517_v8, 0  ;;  %v2316_v44 = vld.sshfl [vmem:[#allocation1 + $0x28] sm:$0xff pattern:$0x73625140] }
 0x15d   :  { %1465 = vmatpush.bf16.msrb.mxu2 %v1378_v45  ;;  %1552 = vmatpush.bf16.msrb.mxu3 %v1525_v48 }
 0x15e   :  { %v577_v53 = vpop.f32.mrf.mxu2  ;;  %v590_v54 = vpop.f32.mrf.mxu3  ;;  %2322 = vrot.lane.b32.xlu0 %v2306_v18, %s4395_s0 }
 0x15f   :  { %v4866_v55 = vadd.f32 %v577_v53, %v4795_v56  ;;  %v4869_v57 = vadd.f32 %v590_v54, %v4810_v14  ;;  %v479_v58 = vpop.f32.mrf.mxu0  ;;  %v566_v59 = vpop.f32.mrf.mxu1 }
 0x160   :  { %v1663_v31 = vpop.permute.xlu1 %1662  ;;  %v1510_v33 = vpop.permute.xlu0 %1509 }
 0x161   :  { %2326 = vrot.lane.b32.xlu1 %v2310_v23, %s4395_s0  ;;  %2167 = vrot.lane.b32.xlu2 %v2151_v30, %s4394_s16  ;;  %v1519_v16 = vsel %vm1513_vm10, %v1508_v63, %v1510_v33  ;;  %v1679_v35 = vsel %vm1678_vm11, %v1663_v31, %v1665_v20  ;;  %v2320_v23 = vld.sshfl [vmem:[#allocation1 + $0x38] sm:$0xff pattern:$0x73625140] }
 0x162   :  { %v1667_v15 = vpop.permute.xlu2 %1666  ;;  %v1540_v46 = vsel %vm92_vm1, %v1519_v16, 0  ;;  %v1690_v47 = vsel %vm92_vm1, %v1679_v35, 0 }
 0x163   :  { %v1680_v39 = vsel %vm1678_vm11, %v1665_v20, %v1667_v15 }
 0x166   :  { %v579_v3 = vpop.f32.mrf.mxu2  ;;  %v592_v61 = vpop.f32.mrf.mxu3  ;;  %2171 = vrot.lane.b32.xlu0 %v2155_v29, %s4394_s16  ;;  %v2318_v29 = vld.sshfl [vmem:[#allocation1 + $0x30] sm:$0xff pattern:$0x73625140] }
 0x167   :  { %v603_v56 = vpop.f32.mrf.mxu0  ;;  %v616_v6 = vpop.f32.mrf.mxu1 }
 0x168   :  { %v4884_v10 = vadd.f32 %v603_v56, %v4812_v17  ;;  %v4887_v14 = vadd.f32 %v616_v6, %v4831_v27  ;;  %v1537_v17 = vsel %vm92_vm1, %v1518_v9, 0  ;;  %v1512_v41 = vpop.permute.xlu1 %1511  ;;  %v1671_v45 = vpop.permute.xlu0 %1670 }
 0x169   :  { %2169 = vrot.lane.b32.xlu2 %v2153_v24, %s4394_s16  ;;  %v1520_v49 = vsel %vm1513_vm10, %v1510_v33, %v1512_v41  ;;  %vm3823_vm10 = vcmask 367616  }
 0x16a   :  { %4211 = vmatmul.msk.bf16.vlgmr.msra.gmra.mxu1 %vm88_vm2, %v4878_v7  ;;  %4210 = vmatmul.msk.bf16.vlgmr.msra.gmra.mxu0 %vm88_vm2, %v4878_v7  ;;  %v1543_v50 = vsel %vm92_vm1, %v1520_v49, 0  ;;  %v1669_v62 = vpop.permute.xlu2 %1668 }
 0x16b   :  { %4212 = vmatmul.msk.bf16.vlgmr.msra.gmra.mxu2 %vm88_vm2, %v4878_v7  ;;  %4213 = vmatmul.msk.bf16.vlgmr.msra.gmra.mxu3 %vm88_vm2, %v4878_v7  ;;  %v1682_v61 = vsel %vm1678_vm11, %v1669_v62, %v1671_v45 }
 0x16c   :  { %1565 = vmatpush.bf16.msra.mxu0 %v1528_v19  ;;  %1578 = vmatpush.bf16.msra.mxu1 %v1531_v21  ;;  %v1699_v18 = vsel %vm92_vm1, %v1682_v61, 0 }
 0x16d   :  { %1591 = vmatpush.bf16.msra.mxu2 %v1534_v22  ;;  %1604 = vmatpush.bf16.msra.mxu3 %v1537_v17  ;;  %v2314_v17 = vld.sshfl [vmem:[#allocation1 + $0x20] sm:$0xff pattern:$0x73625140] }
 0x16e   :  { %v629_v11 = vpop.f32.mrf.mxu2  ;;  %v642_v13 = vpop.f32.mrf.mxu3  ;;  %2332 = vrot.lane.b32.xlu0 %v2316_v44, %s4395_s0  ;;  %2470 = vst [vmem:[#allocation1 + $0x20] ss:$4 sm:$0xff] %v4436_v1 }
 0x16f   :  { %v4904_v25 = vadd.f32 %v629_v11, %v4834_v28  ;;  %v4907_v26 = vadd.f32 %v642_v13, %v4844_v42  ;;  %v605_v27 = vpop.f32.mrf.mxu0  ;;  %v618_v12 = vpop.f32.mrf.mxu1  ;;  %v2312_v42 = vld.sshfl [vmem:[#allocation1 + $0x18] sm:$0xff pattern:$0x73625140] }
 0x170   :  { %2328 = vrot.lane.b32.xlu1 %v2312_v42, %s4395_s0  ;;  %2468 = vst [vmem:[#allocation1] ss:$4 sm:$0xff] %v4431_v0  ;;  %v1673_v58 = vpop.permute.xlu1 %1672  ;;  %v1675_v63 = vpop.permute.xlu0 %1674 }
 0x171   :  { %v1683_v56 = vsel %vm1678_vm11, %v1671_v45, %v1673_v58  ;;  %v1684_v6 = vsel %vm1678_vm11, %v1673_v58, %v1675_v63  ;;  %2330 = vrot.lane.b32.xlu2 %v2314_v17, %s4395_s0 }
 0x172   :  { %v1705_v21 = vsel %vm92_vm1, %v1684_v6, 0  ;;  %v1832_v22 = vpop.permute.xlu2 %1831 }
 0x175   :  { %v2479_v42 = vld.sshfl [vmem:[#allocation1 + $0x20] sm:$0xff pattern:$0x73625140]  ;;  %v2483_v44 = vld.sshfl [vmem:[#allocation1 + $0x30] sm:$0xff pattern:$0x73625140] }
 0x176   :  { %v631_v34 = vpop.f32.mrf.mxu2  ;;  %v644_v28 = vpop.f32.mrf.mxu3 }
 0x177   :  { %v729_v36 = vpop.f32.mrf.mxu0  ;;  %v742_v32 = vpop.f32.mrf.mxu1  ;;  %v2473_v59 = vld.sshfl [vmem:[#allocation1 + $0x8] sm:$0xff pattern:$0x73625140]  ;;  %v2475_v60 = vld.sshfl [vmem:[#allocation1 + $0x10] sm:$0xff pattern:$0x73625140] }
 0x178   :  { %v4921_v40 = vadd.f32 %v729_v36, %v4847_v43  ;;  %v4924_v37 = vadd.f32 %v742_v32, %v4866_v55  ;;  %v1693_v43 = vsel %vm92_vm1, %v1680_v39, 0  ;;  %2489 = vrot.lane.b32.xlu0 %v2473_v59, %s4396_s21  ;;  %2491 = vrot.lane.b32.xlu1 %v2475_v60, %s4396_s21  ;;  %v2471_v9 = vld.sshfl [vmem:[#allocation1] sm:$0xff pattern:$0x73625140]  ;;  %v1830_v19 = vpop.permute.xlu1 %1829  ;;  %v1677_v30 = vpop.permute.xlu0 %1676  ;;  %v4990_v36 = vld [vmem:[%s5757_s1 + $0x28] sm:$0xf] }
 0x179   :  { %v2477_v20 = vld.sshfl [vmem:[#allocation1 + $0x18] sm:$0xff pattern:$0x73625140]  ;;  %v1685_v28 = vsel %vm1678_vm11, %v1675_v63, %v1677_v30  ;;  %2334 = vrot.lane.b32.xlu2 %v2318_v29, %s4395_s0  ;;  %v1845_v32 = vsel %vm1843_vm12, %v1830_v19, %v1832_v22 }
 0x17a   :  { %4214 = vmatmul.msk.bf16.vlgmr.msrb.gmra.mxu0 %vm88_vm2, %v4878_v7  ;;  %4215 = vmatmul.msk.bf16.vlgmr.msrb.gmra.mxu1 %vm88_vm2, %v4878_v7  ;;  %2633 = vst [vmem:[#allocation1] ss:$4 sm:$0xff] %v4431_v0  ;;  %v1834_v33 = vpop.permute.xlu2 %1833 }
 0x17b   :  { %4216 = vmatmul.msk.bf16.vlgmr.msrb.gmra.mxu2 %vm88_vm2, %v4878_v7  ;;  %4217 = vmatmul.msk.bf16.vlgmr.msrb.gmra.mxu3 %vm88_vm2, %v4917_v38  ;;  %v1846_v39 = vsel %vm1843_vm12, %v1832_v22, %v1834_v33  ;;  %v2481_v22 = vld.sshfl [vmem:[#allocation1 + $0x28] sm:$0xff pattern:$0x73625140] }
 0x17c   :  { %1617 = vmatpush.bf16.msrb.mxu0 %v1540_v46  ;;  %1717 = vmatpush.bf16.msrb.mxu2 %v1690_v47  ;;  %v1708_v46 = vsel %vm92_vm1, %v1685_v28, 0  ;;  %v1861_v49 = vsel %vm92_vm1, %v1846_v39, 0 }
 0x17d   :  { %1730 = vmatpush.bf16.msrb.mxu3 %v1693_v43  ;;  %1630 = vmatpush.bf16.msrb.mxu1 %v1543_v50 }
 0x17e   :  { %v755_v51 = vpop.f32.mrf.mxu2  ;;  %v768_v48 = vpop.f32.mrf.mxu3 }
 0x17f   :  { %v4944_v52 = vadd.f32 %v755_v51, %v4869_v57  ;;  %v4947_v53 = vadd.f32 %v768_v48, %v4884_v10  ;;  %v731_v54 = vpop.f32.mrf.mxu0  ;;  %v744_v55 = vpop.f32.mrf.mxu1  ;;  %v1681_v57 = vsel %vm1678_vm11, %v1667_v15, %v1669_v62  ;;  %vm3988_vm11 = vcmask 359424  }
 0x180   :  { %v1696_v10 = vsel %vm92_vm1, %v1681_v57, 0  ;;  %2487 = vrot.lane.b32.xlu0 %v2471_v9, %s4396_s21  ;;  %2493 = vrot.lane.b32.xlu1 %v2477_v20, %s4396_s21  ;;  %v1828_v31 = vpop.permute.xlu1 %1827  ;;  %v1838_v43 = vpop.permute.xlu0 %1837 }
 0x181   :  { %v1844_v16 = vsel %vm1843_vm12, %v1828_v31, %v1830_v19  ;;  %2336 = vrot.lane.b32.xlu2 %v2320_v23, %s4395_s0  ;;  %v2640_v55 = vld.sshfl [vmem:[#allocation1 + $0x10] sm:$0xff pattern:$0x73625140]  ;;  %v2642_v58 = vld.sshfl [vmem:[#allocation1 + $0x18] sm:$0xff pattern:$0x73625140] }
 0x182   :  { %v1855_v47 = vsel %vm92_vm1, %v1844_v16, 0  ;;  %v2638_v9 = vld.sshfl [vmem:[#allocation1 + $0x8] sm:$0xff pattern:$0x73625140] }
 0x186   :  { %v757_v2 = vpop.f32.mrf.mxu2  ;;  %v770_v3 = vpop.f32.mrf.mxu3 }
 0x187   :  { %v781_v4 = vpop.f32.mrf.mxu0  ;;  %v794_v5 = vpop.f32.mrf.mxu1  ;;  %v5025_v3 = vld.sshfl [vmem:[#allocation1] sm:$0xff pattern:$0x73625140] }
 0x188   :  { %v4956_v7 = vadd.f32 %v781_v4, %v4887_v14  ;;  %v4959_v8 = vadd.f32 %v794_v5, %v4904_v25  ;;  %v1702_v14 = vsel %vm92_vm1, %v1683_v56, 0  ;;  %2495 = vrot.lane.b32.xlu1 %v2479_v42, %s4396_s21  ;;  %2499 = vrot.lane.b32.xlu0 %v2483_v44, %s4396_s21  ;;  %v1840_v50 = vpop.permute.xlu1 %1839  ;;  %v1842_v60 = vpop.permute.xlu0 %1841  ;;  %2798 = vst [vmem:[#allocation1] ss:$4 sm:$0xff] %v4431_v0 }
 0x189   :  { %v1849_v4 = vsel %vm1843_vm12, %v1838_v43, %v1840_v50  ;;  %v1850_v5 = vsel %vm1843_vm12, %v1840_v50, %v1842_v60  ;;  %2497 = vrot.lane.b32.xlu2 %v2481_v22, %s4396_s21 }
 0x18a   :  { %4218 = vmatmul.msk.bf16.vlgmr.msra.gmra.mxu0 %vm88_vm2, %v4917_v38  ;;  %4219 = vmatmul.msk.bf16.vlgmr.msra.gmra.mxu1 %vm88_vm2, %v4917_v38 }
 0x18b   :  { %4220 = vmatmul.msk.bf16.vlgmr.msra.gmra.mxu2 %vm88_vm2, %v4917_v38  ;;  %4221 = vmatmul.msk.bf16.vlgmr.msra.gmra.mxu3 %vm88_vm2, %v4917_v38 }
 0x18c   :  { %1743 = vmatpush.bf16.msra.mxu0 %v1696_v10  ;;  %1756 = vmatpush.bf16.msra.mxu1 %v1699_v18 }
 0x18d   :  { %1769 = vmatpush.bf16.msra.mxu2 %v1702_v14  ;;  %1782 = vmatpush.bf16.msra.mxu3 %v1705_v21  ;;  %v1873_v14 = vsel %vm92_vm1, %v1850_v5, 0 }
 0x18e   :  { %v807_v24 = vpop.f32.mrf.mxu2  ;;  %v894_v11 = vpop.f32.mrf.mxu3 }
 0x18f   :  { %v4978_v13 = vadd.f32 %v807_v24, %v4907_v26  ;;  %v4981_v25 = vadd.f32 %v894_v11, %v4921_v40  ;;  %v783_v27 = vpop.f32.mrf.mxu0  ;;  %v796_v12 = vpop.f32.mrf.mxu1 }
 0x190   :  { %2656 = vrot.lane.b32.xlu0 %v2640_v55, %s4397_s24  ;;  %2658 = vrot.lane.b32.xlu1 %v2642_v58, %s4397_s24  ;;  %v1997_v19 = vpop.permute.xlu1 %1996  ;;  %v2807_v58 = vld.sshfl [vmem:[#allocation1 + $0x18] sm:$0xff pattern:$0x73625140] }
 0x192   :  { %v1993_v30 = vpop.permute.xlu0 %1992 }
 0x193   :  { %v1836_v59 = vpop.permute.xlu2 %1835 }
 0x194   :  { %v1847_v2 = vsel %vm1843_vm12, %v1834_v33, %v1836_v59 }
 0x195   :  { %v1864_v10 = vsel %vm92_vm1, %v1847_v2, 0  ;;  %v2801_v2 = vld.sshfl [vmem:[#allocation1] sm:$0xff pattern:$0x73625140] }
 0x196   :  { %v809_v15 = vpop.f32.mrf.mxu2  ;;  %v896_v34 = vpop.f32.mrf.mxu3 }
 0x197   :  { %v907_v26 = vpop.f32.mrf.mxu0  ;;  %v920_v35 = vpop.f32.mrf.mxu1 }
 0x198   :  { %v4995_v40 = vadd.f32 %v907_v26, %v4924_v37  ;;  %v4998_v41 = vadd.f32 %v920_v35, %v4944_v52  ;;  %v1858_v37 = vsel %vm92_vm1, %v1845_v32, 0  ;;  %2654 = vrot.lane.b32.xlu0 %v2638_v9, %s4397_s24  ;;  %v1995_v12 = vpop.permute.xlu1 %1994  ;;  %v5064_v26 = vld [vmem:[%s5757_s1 + $0x2c] sm:$0xf] }
 0x199   :  { %v2010_v34 = vsel %vm2008_vm13, %v1995_v12, %v1997_v19  ;;  %v2009_v32 = vsel %vm2008_vm13, %v1993_v30, %v1995_v12 }
 0x19a   :  { %4222 = vmatmul.msk.bf16.vlgmr.msrb.gmra.mxu0 %vm88_vm2, %v4917_v38  ;;  %4223 = vmatmul.msk.bf16.vlgmr.msrb.gmra.mxu1 %vm88_vm2, %v4917_v38 }
 0x19b   :  { %4224 = vmatmul.msk.bf16.vlgmr.msrb.gmra.mxu2 %vm88_vm2, %v4990_v36  ;;  %4225 = vmatmul.msk.bf16.vlgmr.msrb.gmra.mxu3 %vm88_vm2, %v4990_v36  ;;  %v1999_v21 = vpop.permute.xlu2 %1998 }
 0x19c   :  { %1795 = vmatpush.bf16.msrb.mxu0 %v1708_v46  ;;  %1882 = vmatpush.bf16.msrb.mxu1 %v1855_v47  ;;  %v2011_v15 = vsel %vm2008_vm13, %v1997_v19, %v1999_v21  ;;  %v2023_v47 = vsel %vm92_vm1, %v2010_v34, 0 }
 0x19d   :  { %1895 = vmatpush.bf16.msrb.mxu2 %v1858_v37  ;;  %1908 = vmatpush.bf16.msrb.mxu3 %v1861_v49  ;;  %v2026_v46 = vsel %vm92_vm1, %v2011_v15, 0  ;;  %v2020_v37 = vsel %vm92_vm1, %v2009_v32, 0 }
 0x19e   :  { %v933_v45 = vpop.f32.mrf.mxu2  ;;  %v946_v51 = vpop.f32.mrf.mxu3 }
 0x19f   :  { %v5016_v38 = vadd.f32 %v933_v45, %v4947_v53  ;;  %v5019_v48 = vadd.f32 %v946_v51, %v4956_v7  ;;  %v909_v52 = vpop.f32.mrf.mxu0  ;;  %v922_v54 = vpop.f32.mrf.mxu1  ;;  %v1848_v53 = vsel %vm1843_vm12, %v1836_v59, %v1838_v43  ;;  %v2485_v7 = vld.sshfl [vmem:[#allocation1 + $0x38] sm:$0xff pattern:$0x73625140] }
 0x1a0   :  { %v1867_v18 = vsel %vm92_vm1, %v1848_v53, 0  ;;  %2635 = vst [vmem:[#allocation1 + $0x20] ss:$4 sm:$0xff] %v4436_v1  ;;  %2501 = vrot.lane.b32.xlu2 %v2485_v7, %s4396_s21  ;;  %v2803_v52 = vld.sshfl [vmem:[#allocation1 + $0x8] sm:$0xff pattern:$0x73625140] }
 0x1a3   :  { %v2001_v29 = vpop.permute.xlu2 %2000 }
 0x1a4   :  { %v2012_v35 = vsel %vm2008_vm13, %v1999_v21, %v2001_v29 }
 0x1a6   :  { %v935_v62 = vpop.f32.mrf.mxu2  ;;  %v948_v63 = vpop.f32.mrf.mxu3 }
 0x1a7   :  { %v959_v57 = vpop.f32.mrf.mxu0  ;;  %v972_v61 = vpop.f32.mrf.mxu1  ;;  %v2644_v27 = vld.sshfl [vmem:[#allocation1 + $0x20] sm:$0xff pattern:$0x73625140]  ;;  %v2646_v42 = vld.sshfl [vmem:[#allocation1 + $0x28] sm:$0xff pattern:$0x73625140] }
 0x1a8   :  { %v5030_v56 = vadd.f32 %v959_v57, %v4959_v8  ;;  %v5033_v6 = vadd.f32 %v972_v61, %v4978_v13  ;;  %v1870_v8 = vsel %vm92_vm1, %v1849_v4, 0  ;;  %2660 = vrot.lane.b32.xlu1 %v2644_v27, %s4397_s24  ;;  %v2650_v44 = vld.sshfl [vmem:[#allocation1 + $0x38] sm:$0xff pattern:$0x73625140]  ;;  %2652 = vrot.lane.b32.xlu2 %v5025_v3, %s4397_s24 }
 0x1a9   :  { %2666 = vrot.lane.b32.xlu0 %v2650_v44, %s4397_s24 }
 0x1aa   :  { %4226 = vmatmul.msk.bf16.vlgmr.msra.gmra.mxu0 %vm88_vm2, %v4990_v36  ;;  %4227 = vmatmul.msk.bf16.vlgmr.msra.gmra.mxu1 %vm88_vm2, %v4990_v36 }
 0x1ab   :  { %4228 = vmatmul.msk.bf16.vlgmr.msra.gmra.mxu2 %vm88_vm2, %v4990_v36  ;;  %4229 = vmatmul.msk.bf16.vlgmr.msra.gmra.mxu3 %vm88_vm2, %v4990_v36  ;;  %v2003_v55 = vpop.permute.xlu2 %2002 }
 0x1ac   :  { %1921 = vmatpush.bf16.msra.mxu0 %v1864_v10  ;;  %1934 = vmatpush.bf16.msra.mxu1 %v1867_v18  ;;  %v2013_v63 = vsel %vm2008_vm13, %v2001_v29, %v2003_v55 }
 0x1ad   :  { %1947 = vmatpush.bf16.msra.mxu2 %v1870_v8  ;;  %1960 = vmatpush.bf16.msra.mxu3 %v1873_v14  ;;  %v2032_v7 = vsel %vm92_vm1, %v2013_v63, 0 }
 0x1ae   :  { %v1059_v17 = vpop.f32.mrf.mxu2  ;;  %v1072_v20 = vpop.f32.mrf.mxu3 }
 0x1af   :  { %v5052_v23 = vadd.f32 %v1059_v17, %v4981_v25  ;;  %v5055_v24 = vadd.f32 %v1072_v20, %v4995_v40  ;;  %v961_v11 = vpop.f32.mrf.mxu0  ;;  %v974_v13 = vpop.f32.mrf.mxu1  ;;  %v2648_v25 = vld.sshfl [vmem:[#allocation1 + $0x30] sm:$0xff pattern:$0x73625140] }
 0x1b0   :  { %2800 = vst [vmem:[#allocation1 + $0x20] ss:$4 sm:$0xff] %v4436_v1  ;;  %2662 = vrot.lane.b32.xlu1 %v2646_v42, %s4397_s24  ;;  %2664 = vrot.lane.b32.xlu2 %v2648_v25, %s4397_s24 }
 0x1b1   :  { %2819 = vrot.lane.b32.xlu0 %v2803_v52, %s4398_s27 }
 0x1b3   :  { %v2007_v49 = vpop.permute.xlu1 %2006  ;;  %v2164_v18 = vpop.permute.xlu2 %2163 }
 0x1b4   :  { %v2005_v54 = vpop.permute.xlu0 %2004 }
 0x1b5   :  { %v2015_v57 = vsel %vm2008_vm13, %v2005_v54, %v2007_v49 }
 0x1b6   :  { %v1061_v31 = vpop.f32.mrf.mxu2  ;;  %v1074_v33 = vpop.f32.mrf.mxu3 }
 0x1b7   :  { %v1085_v28 = vpop.f32.mrf.mxu0  ;;  %v1098_v16 = vpop.f32.mrf.mxu1  ;;  %v2811_v8 = vld.sshfl [vmem:[#allocation1 + $0x28] sm:$0xff pattern:$0x73625140]  ;;  %v2809_v29 = vld.sshfl [vmem:[#allocation1 + $0x20] sm:$0xff pattern:$0x73625140] }
 0x1b8   :  { %v5069_v39 = vadd.f32 %v1085_v28, %v4998_v41  ;;  %v5072_v40 = vadd.f32 %v1098_v16, %v5016_v38  ;;  %v2029_v41 = vsel %vm92_vm1, %v2012_v35, 0  ;;  %2823 = vrot.lane.b32.xlu1 %v2807_v58, %s4398_s27  ;;  %2817 = vrot.lane.b32.xlu2 %v2801_v2, %s4398_s27  ;;  %v5135_v15 = vld.sshfl [vmem:[#allocation1 + $0x38] sm:$0xff pattern:$0x73625140]  ;;  %v30_v28 = vld [vmem:[%s5757_s1 + $0x30] sm:$0xf] }
 0x1ba   :  { %4230 = vmatmul.msk.bf16.vlgmr.msrb.gmra.mxu0 %vm88_vm2, %v4990_v36  ;;  %4231 = vmatmul.msk.bf16.vlgmr.msrb.gmra.mxu1 %vm88_vm2, %v5064_v26 }
 0x1bb   :  { %4232 = vmatmul.msk.bf16.vlgmr.msrb.gmra.mxu2 %vm88_vm2, %v5064_v26  ;;  %4233 = vmatmul.msk.bf16.vlgmr.msrb.gmra.mxu3 %vm88_vm2, %v5064_v26  ;;  %v2160_v59 = vpop.permute.xlu1 %2159  ;;  %v2168_v12 = vpop.permute.xlu2 %2167 }
 0x1bc   :  { %2060 = vmatpush.bf16.msrb.mxu1 %v2023_v47  ;;  %2073 = vmatpush.bf16.msrb.mxu2 %v2026_v46 }
 0x1bd   :  { %2086 = vmatpush.bf16.msrb.mxu3 %v2029_v41  ;;  %2047 = vmatpush.bf16.msrb.mxu0 %v2020_v37 }
 0x1be   :  { %v1111_v43 = vpop.f32.mrf.mxu2  ;;  %v1124_v36 = vpop.f32.mrf.mxu3 }
 0x1bf   :  { %v5092_v50 = vadd.f32 %v1111_v43, %v5019_v48  ;;  %v5095_v45 = vadd.f32 %v1124_v36, %v5030_v56  ;;  %v1087_v51 = vpop.f32.mrf.mxu0  ;;  %v1100_v38 = vpop.f32.mrf.mxu1  ;;  %v2014_v48 = vsel %vm2008_vm13, %v2003_v55, %v2005_v54  ;;  %v2805_v56 = vld.sshfl [vmem:[#allocation1 + $0x10] sm:$0xff pattern:$0x73625140] }
 0x1c0   :  { %v2158_v5 = vpop.permute.xlu0 %2157  ;;  %v2035_v9 = vsel %vm92_vm1, %v2014_v48, 0  ;;  %2821 = vrot.lane.b32.xlu0 %v2805_v56, %s4398_s27  ;;  %2963 = vst [vmem:[#allocation1] ss:$4 sm:$0xff] %v4431_v0  ;;  %2827 = vrot.lane.b32.xlu1 %v2811_v8, %s4398_s27 }
 0x1c1   :  { %v2174_v10 = vsel %vm2173_vm14, %v2158_v5, %v2160_v59  ;;  %2825 = vrot.lane.b32.xlu2 %v2809_v29, %s4398_s27 }
 0x1c2   :  { %v2185_v19 = vsel %vm92_vm1, %v2174_v10, 0 }
 0x1c3   :  { %v2162_v27 = vpop.permute.xlu1 %2161  ;;  %v2170_v54 = vpop.permute.xlu2 %2169 }
 0x1c4   :  { %v2175_v33 = vsel %vm2173_vm14, %v2160_v59, %v2162_v27 }
 0x1c5   :  { %v2188_v42 = vsel %vm92_vm1, %v2175_v33, 0 }
 0x1c6   :  { %v1113_v60 = vpop.f32.mrf.mxu2  ;;  %v1126_v62 = vpop.f32.mrf.mxu3 }
 0x1c7   :  { %v1137_v53 = vpop.f32.mrf.mxu0  ;;  %v1224_v3 = vpop.f32.mrf.mxu1  ;;  %v2968_v11 = vld.sshfl [vmem:[#allocation1 + $0x8] sm:$0xff pattern:$0x73625140]  ;;  %v2970_v37 = vld.sshfl [vmem:[#allocation1 + $0x10] sm:$0xff pattern:$0x73625140]  ;;  %v2179_v62 = vsel %vm2173_vm14, %v2168_v12, %v2170_v54 }
 0x1c8   :  { %v5104_v61 = vadd.f32 %v1137_v53, %v5033_v6  ;;  %v5107_v4 = vadd.f32 %v1224_v3, %v5052_v23  ;;  %v2038_v6 = vsel %vm92_vm1, %v2015_v57, 0  ;;  %v2166_v13 = vpop.permute.xlu0 %2165  ;;  %2984 = vrot.lane.b32.xlu0 %v2968_v11, %s4399_s28  ;;  %v2972_v5 = vld.sshfl [vmem:[#allocation1 + $0x18] sm:$0xff pattern:$0x73625140]  ;;  %v2200_v56 = vsel %vm92_vm1, %v2179_v62, 0 }
 0x1c9   :  { %v2177_v16 = vsel %vm2173_vm14, %v2164_v18, %v2166_v13 }
 0x1ca   :  { %4234 = vmatmul.msk.bf16.vlgmr.msra.gmra.mxu0 %vm88_vm2, %v5064_v26  ;;  %4235 = vmatmul.msk.bf16.vlgmr.msra.gmra.mxu1 %vm88_vm2, %v5064_v26  ;;  %v2194_v46 = vsel %vm92_vm1, %v2177_v16, 0 }
 0x1cb   :  { %4236 = vmatmul.msk.bf16.vlgmr.msra.gmra.mxu2 %vm88_vm2, %v5064_v26  ;;  %4237 = vmatmul.msk.bf16.vlgmr.msra.gmra.mxu3 %vm88_vm2, %v5064_v26  ;;  %v2178_v26 = vsel %vm2173_vm14, %v2166_v13, %v2168_v12  ;;  %v2325_v47 = vpop.permute.xlu1 %2324  ;;  %v2331_v10 = vpop.permute.xlu2 %2330 }
 0x1cc   :  { %2099 = vmatpush.bf16.msra.mxu0 %v2032_v7  ;;  %2112 = vmatpush.bf16.msra.mxu1 %v2035_v9 }
 0x1cd   :  { %2125 = vmatpush.bf16.msra.mxu2 %v2038_v6  ;;  %2212 = vmatpush.bf16.msra.mxu3 %v2185_v19 }
 0x1ce   :  { %v1237_v14 = vpop.f32.mrf.mxu2  ;;  %v1250_v21 = vpop.f32.mrf.mxu3 }
 0x1cf   :  { %v5127_v22 = vadd.f32 %v1237_v14, %v5055_v24  ;;  %v5130_v17 = vadd.f32 %v1250_v21, %v5069_v39  ;;  %v1139_v20 = vpop.f32.mrf.mxu0  ;;  %v1226_v23 = vpop.f32.mrf.mxu1  ;;  %v2176_v24 = vsel %vm2173_vm14, %v2162_v27, %v2164_v18  ;;  %v2813_v39 = vld.sshfl [vmem:[#allocation1 + $0x30] sm:$0xff pattern:$0x73625140] }
 0x1d0   :  { %v2191_v44 = vsel %vm92_vm1, %v2176_v24, 0  ;;  %2829 = vrot.lane.b32.xlu1 %v2813_v39, %s4398_s27  ;;  %2965 = vst [vmem:[#allocation1 + $0x20] ss:$4 sm:$0xff] %v4436_v1  ;;  %v2323_v41 = vpop.permute.xlu0 %2322  ;;  %2986 = vrot.lane.b32.xlu0 %v2970_v37, %s4399_s28  ;;  %v2966_v23 = vld.sshfl [vmem:[#allocation1] sm:$0xff pattern:$0x73625140] }
 0x1d1   :  { %v2339_v63 = vsel %vm2338_vm15, %v2323_v41, %v2325_v47  ;;  %2982 = vrot.lane.b32.xlu2 %v2966_v23, %s4399_s28  ;;  %3128 = vst [vmem:[#allocation1] ss:$4 sm:$0xff] %v4431_v0 }
 0x1d2   :  { %v2350_v7 = vsel %vm92_vm1, %v2339_v63, 0 }
 0x1d3   :  { %v2327_v55 = vpop.permute.xlu1 %2326  ;;  %v2335_v13 = vpop.permute.xlu2 %2334 }
 0x1d4   :  { %v2340_v2 = vsel %vm2338_vm15, %v2325_v47, %v2327_v55 }
 0x1d6   :  { %v1239_v30 = vpop.f32.mrf.mxu2  ;;  %v1252_v31 = vpop.f32.mrf.mxu3 }
 0x1d7   :  { %v1263_v34 = vpop.f32.mrf.mxu0  ;;  %v1276_v25 = vpop.f32.mrf.mxu1  ;;  %v2974_v52 = vld.sshfl [vmem:[#allocation1 + $0x20] sm:$0xff pattern:$0x73625140]  ;;  %v2978_v6 = vld.sshfl [vmem:[#allocation1 + $0x30] sm:$0xff pattern:$0x73625140] }
 0x1d8   :  { %v5144_v35 = vadd.f32 %v1263_v34, %v5072_v40  ;;  %v5147_v32 = vadd.f32 %v1276_v25, %v5092_v50  ;;  %v2197_v40 = vsel %vm92_vm1, %v2178_v26, 0  ;;  %2990 = vrot.lane.b32.xlu1 %v2974_v52, %s4399_s28  ;;  %v2172_v58 = vpop.permute.xlu0 %2171  ;;  %2988 = vrot.lane.b32.xlu0 %v2972_v5, %s4399_s28  ;;  %v3135_v34 = vld.sshfl [vmem:[#allocation1 + $0x10] sm:$0xff pattern:$0x73625140] }
 0x1d9   :  { %v2180_v53 = vsel %vm2173_vm14, %v2170_v54, %v2172_v58  ;;  %v2980_v16 = vld.sshfl [vmem:[#allocation1 + $0x38] sm:$0xff pattern:$0x73625140]  ;;  %2831 = vrot.lane.b32.xlu2 %v5135_v15, %s4398_s27 }
 0x1da   :  { %4239 = vmatmul.msk.bf16.vlgmr.msrb.gmra.mxu1 %vm88_vm2, %v30_v28  ;;  %4238 = vmatmul.msk.bf16.vlgmr.msrb.gmra.mxu0 %vm88_vm2, %v30_v28  ;;  %v2203_v9 = vsel %vm92_vm1, %v2180_v53, 0  ;;  %v3137_v15 = vld.sshfl [vmem:[#allocation1 + $0x18] sm:$0xff pattern:$0x73625140] }
 0x1db   :  { %4240 = vmatmul.msk.bf16.vlgmr.msrb.gmra.mxu2 %vm88_vm2, %v30_v28  ;;  %4241 = vmatmul.msk.bf16.vlgmr.msrb.gmra.mxu3 %vm88_vm2, %v30_v28 }
 0x1dc   :  { %2225 = vmatpush.bf16.msrb.mxu0 %v2188_v42  ;;  %2238 = vmatpush.bf16.msrb.mxu1 %v2191_v44 }
 0x1dd   :  { %2251 = vmatpush.bf16.msrb.mxu2 %v2194_v46  ;;  %2264 = vmatpush.bf16.msrb.mxu3 %v2197_v40 }
 0x1de   :  { %v1289_v49 = vpop.f32.mrf.mxu2  ;;  %v1302_v43 = vpop.f32.mrf.mxu3 }
 0x1df   :  { %v1311_v36 = vadd.f32 %v1289_v49, %v5095_v45  ;;  %v5162_v50 = vadd.f32 %v1302_v43, %v5104_v61  ;;  %v1265_v51 = vpop.f32.mrf.mxu0  ;;  %v1278_v38 = vpop.f32.mrf.mxu1  ;;  %v5178_v61 = vld [vmem:[%s5757_s1 + $0x34] sm:$0xf]  ;;  %v2976_v43 = vld.sshfl [vmem:[#allocation1 + $0x28] sm:$0xff pattern:$0x73625140] }
 0x1e0   :  { %v2333_v18 = vpop.permute.xlu0 %2332  ;;  %2994 = vrot.lane.b32.xlu1 %v2978_v6, %s4399_s28  ;;  %3151 = vrot.lane.b32.xlu0 %v3135_v34, %s4400_s6  ;;  %3130 = vst [vmem:[#allocation1 + $0x20] ss:$4 sm:$0xff] %v4436_v1 }
 0x1e1   :  { %v2343_v33 = vsel %vm2338_vm15, %v2331_v10, %v2333_v18  ;;  %v2344_v24 = vsel %vm2338_vm15, %v2333_v18, %v2335_v13  ;;  %2992 = vrot.lane.b32.xlu2 %v2976_v43, %s4399_s28 }
 0x1e2   :  { %v2329_v11 = vpop.permute.xlu1 %2328  ;;  %v2365_v42 = vsel %vm92_vm1, %v2344_v24, 0 }
 0x1e3   :  { %v2341_v29 = vsel %vm2338_vm15, %v2327_v55, %v2329_v11  ;;  %v2342_v30 = vsel %vm2338_vm15, %v2329_v11, %v2331_v10 }
 0x1e4   :  { %v2356_v26 = vsel %vm92_vm1, %v2341_v29, 0 }
 0x1e6   :  { %v1291_v59 = vpop.f32.mrf.mxu2  ;;  %v1304_v60 = vpop.f32.mrf.mxu3 }
 0x1e7   :  { %v1389_v48 = vpop.f32.mrf.mxu0  ;;  %v1402_v45 = vpop.f32.mrf.mxu1  ;;  %v5238_v60 = vld [vmem:[%s5757_s1 + $0x38] sm:$0xf]  ;;  %v3139_v53 = vld.sshfl [vmem:[#allocation1 + $0x20] sm:$0xff pattern:$0x73625140] }
 0x1e8   :  { %v5170_v3 = vadd.f32 %v1389_v48, %v5107_v4  ;;  %v5173_v57 = vadd.f32 %v1402_v45, %v5127_v22  ;;  %v2353_v4 = vsel %vm92_vm1, %v2340_v2, 0  ;;  %2996 = vrot.lane.b32.xlu1 %v2980_v16, %s4399_s28  ;;  %3153 = vrot.lane.b32.xlu0 %v3137_v15, %s4400_s6  ;;  %v3141_v48 = vld.sshfl [vmem:[#allocation1 + $0x28] sm:$0xff pattern:$0x73625140] }
 0x1e9   :  { %v3145_v10 = vld.sshfl [vmem:[#allocation1 + $0x38] sm:$0xff pattern:$0x73625140] }
 0x1ea   :  { %4242 = vmatmul.msk.bf16.vlgmr.msra.gmra.mxu0 %vm88_vm2, %v30_v28  ;;  %4243 = vmatmul.msk.bf16.vlgmr.msra.gmra.mxu1 %vm88_vm2, %v30_v28  ;;  %v2490_v39 = vpop.permute.xlu0 %2489  ;;  %v2492_v44 = vpop.permute.xlu1 %2491 }
 0x1eb   :  { %4244 = vmatmul.msk.bf16.vlgmr.msra.gmra.mxu2 %vm88_vm2, %v30_v28  ;;  %4245 = vmatmul.msk.bf16.vlgmr.msra.gmra.mxu3 %vm88_vm2, %v5178_v61  ;;  %v2505_v62 = vsel %vm2503_vm0, %v2490_v39, %v2492_v44 }
 0x1ec   :  { %2277 = vmatpush.bf16.msra.mxu0 %v2200_v56  ;;  %2377 = vmatpush.bf16.msra.mxu2 %v2350_v7  ;;  %v3143_v7 = vld.sshfl [vmem:[#allocation1 + $0x30] sm:$0xff pattern:$0x73625140] }
 0x1ed   :  { %2390 = vmatpush.bf16.msra.mxu3 %v2353_v4  ;;  %2290 = vmatpush.bf16.msra.mxu1 %v2203_v9  ;;  %3295 = vst [vmem:[#allocation1 + $0x20] ss:$4 sm:$0xff] %v4436_v1 }
 0x1ee   :  { %v1415_v19 = vpop.f32.mrf.mxu2  ;;  %v1428_v8 = vpop.f32.mrf.mxu3 }
 0x1ef   :  { %v5192_v14 = vadd.f32 %v1415_v19, %v5130_v17  ;;  %v5195_v21 = vadd.f32 %v1428_v8, %v5144_v35  ;;  %v1391_v22 = vpop.f32.mrf.mxu0  ;;  %v1404_v20 = vpop.f32.mrf.mxu1  ;;  %v2359_v35 = vsel %vm92_vm1, %v2342_v30, 0 }
 0x1f0   :  { %3157 = vrot.lane.b32.xlu1 %v3141_v48, %s4400_s6  ;;  %3155 = vrot.lane.b32.xlu0 %v3139_v53, %s4400_s6  ;;  %v3131_v20 = vld.sshfl [vmem:[#allocation1] sm:$0xff pattern:$0x73625140] }
 0x1f2   :  { %v2488_v51 = vpop.permute.xlu0 %2487  ;;  %v2494_v38 = vpop.permute.xlu1 %2493 }
 0x1f3   :  { %v2504_v55 = vsel %vm2503_vm0, %v2488_v51, %v2490_v39  ;;  %v2506_v63 = vsel %vm2503_vm0, %v2492_v44, %v2494_v38 }
 0x1f4   :  { %v2515_v56 = vsel %vm92_vm1, %v2504_v55, 0  ;;  %v2521_v4 = vsel %vm92_vm1, %v2506_v63, 0 }
 0x1f6   :  { %v1417_v27 = vpop.f32.mrf.mxu2  ;;  %v1430_v12 = vpop.f32.mrf.mxu3 }
 0x1f7   :  { %v1441_v17 = vpop.f32.mrf.mxu0  ;;  %v1454_v31 = vpop.f32.mrf.mxu1 }
 0x1f8   :  { %v5204_v25 = vadd.f32 %v1441_v17, %v5147_v32  ;;  %v5206_v28 = vadd.f32 %v1454_v31, %v1311_v36  ;;  %v2362_v32 = vsel %vm92_vm1, %v2343_v33, 0  ;;  %v2337_v36 = vpop.permute.xlu2 %2336  ;;  %3161 = vrot.lane.b32.xlu1 %v3145_v10, %s4400_s6 }
 0x1fa   :  { %4246 = vmatmul.msk.bf16.vlgmr.msrb.gmra.mxu0 %vm88_vm2, %v5178_v61  ;;  %4247 = vmatmul.msk.bf16.vlgmr.msrb.gmra.mxu1 %vm88_vm2, %v5178_v61  ;;  %v2500_v6 = vpop.permute.xlu0 %2499  ;;  %v2496_v23 = vpop.permute.xlu1 %2495 }
 0x1fb   :  { %4248 = vmatmul.msk.bf16.vlgmr.msrb.gmra.mxu2 %vm88_vm2, %v5178_v61  ;;  %4249 = vmatmul.msk.bf16.vlgmr.msrb.gmra.mxu3 %vm88_vm2, %v5178_v61  ;;  %v2507_v12 = vsel %vm2503_vm0, %v2494_v38, %v2496_v23 }
 0x1fc   :  { %2403 = vmatpush.bf16.msrb.mxu0 %v2356_v26  ;;  %2416 = vmatpush.bf16.msrb.mxu1 %v2359_v35 }
 0x1fd   :  { %2429 = vmatpush.bf16.msrb.mxu2 %v2362_v32  ;;  %2442 = vmatpush.bf16.msrb.mxu3 %v2365_v42  ;;  %v3304_v32 = vld.sshfl [vmem:[#allocation1 + $0x20] sm:$0xff pattern:$0x73625140] }
 0x1fe   :  { %v1467_v46 = vpop.f32.mrf.mxu2  ;;  %v1554_v40 = vpop.f32.mrf.mxu3 }
 0x1ff   :  { %v5225_v47 = vadd.f32 %v1467_v46, %v5162_v50  ;;  %v5228_v41 = vadd.f32 %v1554_v40, %v5170_v3  ;;  %v1443_v37 = vpop.f32.mrf.mxu0  ;;  %v1456_v49 = vpop.f32.mrf.mxu1  ;;  %v2345_v50 = vsel %vm2338_vm15, %v2335_v13, %v2337_v36  ;;  %v3133_v3 = vld.sshfl [vmem:[#allocation1 + $0x8] sm:$0xff pattern:$0x73625140] }
 0x200   :  { %v2368_v5 = vsel %vm92_vm1, %v2345_v50, 0  ;;  %3149 = vrot.lane.b32.xlu2 %v3133_v3, %s4400_s6  ;;  %v2498_v9 = vpop.permute.xlu2 %2497  ;;  %3293 = vst [vmem:[#allocation1] ss:$4 sm:$0xff] %v4431_v0 }
 0x201   :  { %v2509_v17 = vsel %vm2503_vm0, %v2498_v9, %v2500_v6 }
 0x202   :  { %v2657_v26 = vpop.permute.xlu0 %2656  ;;  %v2659_v39 = vpop.permute.xlu1 %2658 }
 0x206   :  { %v1469_v52 = vpop.f32.mrf.mxu2  ;;  %v1556_v54 = vpop.f32.mrf.mxu3 }
 0x207   :  { %v1567_v58 = vpop.f32.mrf.mxu0  ;;  %v1580_v59 = vpop.f32.mrf.mxu1  ;;  %v3302_v33 = vld.sshfl [vmem:[#allocation1 + $0x18] sm:$0xff pattern:$0x73625140]  ;;  %v3296_v37 = vld.sshfl [vmem:[#allocation1] sm:$0xff pattern:$0x73625140]  ;;  %v2671_v52 = vsel %vm2668_vm3, %v2657_v26, %v2659_v39 }
 0x208   :  { %v5243_v45 = vadd.f32 %v1567_v58, %v5173_v57  ;;  %v5246_v2 = vadd.f32 %v1580_v59, %v5192_v14  ;;  %v2518_v57 = vsel %vm92_vm1, %v2505_v62, 0  ;;  %3147 = vrot.lane.b32.xlu2 %v3131_v20, %s4400_s6  ;;  %v2502_v11 = vpop.permute.xlu2 %2501  ;;  %3318 = vrot.lane.b32.xlu0 %v3302_v33, %s4401_s9  ;;  %v33_v59 = vld [vmem:[%s5757_s1 + $0x3c] sm:$0xf]  ;;  %v3300_v53 = vld.sshfl [vmem:[#allocation1 + $0x10] sm:$0xff pattern:$0x73625140] }
 0x209   :  { %v2510_v31 = vsel %vm2503_vm0, %v2500_v6, %v2502_v11  ;;  %3312 = vrot.lane.b32.xlu1 %v3296_v37, %s4401_s9  ;;  %v3310_v62 = vld.sshfl [vmem:[#allocation1 + $0x38] sm:$0xff pattern:$0x73625140]  ;;  %v2686_v3 = vsel %vm92_vm1, %v2671_v52, 0 }
 0x20a   :  { %4250 = vmatmul.msk.bf16.vlgmr.msra.gmra.mxu0 %vm88_vm2, %v5178_v61  ;;  %4251 = vmatmul.msk.bf16.vlgmr.msra.gmra.mxu1 %vm88_vm2, %v5178_v61  ;;  %v2533_v35 = vsel %vm92_vm1, %v2510_v31, 0  ;;  %v2655_v43 = vpop.permute.xlu0 %2654 }
 0x20b   :  { %4252 = vmatmul.msk.bf16.vlgmr.msra.gmra.mxu2 %vm88_vm2, %v5238_v60  ;;  %4253 = vmatmul.msk.bf16.vlgmr.msra.gmra.mxu3 %vm88_vm2, %v5238_v60 }
 0x20c   :  { %2455 = vmatpush.bf16.msra.mxu0 %v2368_v5  ;;  %2542 = vmatpush.bf16.msra.mxu1 %v2515_v56 }
 0x20d   :  { %2555 = vmatpush.bf16.msra.mxu2 %v2518_v57  ;;  %2568 = vmatpush.bf16.msra.mxu3 %v2521_v4  ;;  %v3298_v57 = vld.sshfl [vmem:[#allocation1 + $0x8] sm:$0xff pattern:$0x73625140] }
 0x20e   :  { %v1593_v61 = vpop.f32.mrf.mxu2  ;;  %v1606_v18 = vpop.f32.mrf.mxu3  ;;  %3458 = vst [vmem:[#allocation1] ss:$4 sm:$0xff] %v4431_v0 }
 0x20f   :  { %v5265_v19 = vadd.f32 %v1593_v61, %v5195_v21  ;;  %v5268_v8 = vadd.f32 %v1606_v18, %v5204_v25  ;;  %v1569_v14 = vpop.f32.mrf.mxu0  ;;  %v1582_v22 = vpop.f32.mrf.mxu1  ;;  %v2508_v21 = vsel %vm2503_vm0, %v2496_v23, %v2498_v9  ;;  %v2524_v25 = vsel %vm92_vm1, %v2507_v12, 0 }
 0x210   :  { %v2527_v16 = vsel %vm92_vm1, %v2508_v21, 0  ;;  %3159 = vrot.lane.b32.xlu2 %v3143_v7, %s4400_s6  ;;  %3320 = vrot.lane.b32.xlu0 %v3304_v32, %s4401_s9  ;;  %v2653_v49 = vpop.permute.xlu2 %2652 }
 0x211   :  { %v2669_v50 = vsel %vm2668_vm3, %v2653_v49, %v2655_v43 }
 0x212   :  { %v2680_v7 = vsel %vm92_vm1, %v2669_v50, 0  ;;  %v34_v50 = vld [vmem:[%s5757_s1 + $0x40] sm:$0xf] }
 0x215   :  { %v3467_v22 = vld.sshfl [vmem:[#allocation1 + $0x18] sm:$0xff pattern:$0x73625140]  ;;  %v3461_v23 = vld.sshfl [vmem:[#allocation1] sm:$0xff pattern:$0x73625140] }
 0x216   :  { %v1595_v13 = vpop.f32.mrf.mxu2  ;;  %v1608_v27 = vpop.f32.mrf.mxu3 }
 0x217   :  { %v1619_v29 = vpop.f32.mrf.mxu0  ;;  %v1632_v30 = vpop.f32.mrf.mxu1 }
 0x218   :  { %v5278_v24 = vadd.f32 %v1619_v29, %v5206_v28  ;;  %v5281_v34 = vadd.f32 %v1632_v30, %v5225_v47  ;;  %v2530_v28 = vsel %vm92_vm1, %v2509_v17, 0  ;;  %3316 = vrot.lane.b32.xlu2 %v3300_v53, %s4401_s9  ;;  %v2665_v9 = vpop.permute.xlu2 %2664 }
 0x21a   :  { %4254 = vmatmul.msk.bf16.vlgmr.msrb.gmra.mxu0 %vm88_vm2, %v5238_v60  ;;  %4255 = vmatmul.msk.bf16.vlgmr.msrb.gmra.mxu1 %vm88_vm2, %v5238_v60  ;;  %v2661_v36 = vpop.permute.xlu1 %2660 }
 0x21b   :  { %4256 = vmatmul.msk.bf16.vlgmr.msrb.gmra.mxu2 %vm88_vm2, %v5238_v60  ;;  %4257 = vmatmul.msk.bf16.vlgmr.msrb.gmra.mxu3 %vm88_vm2, %v5238_v60  ;;  %v2672_v54 = vsel %vm2668_vm3, %v2659_v39, %v2661_v36  ;;  %v2667_v4 = vpop.permute.xlu0 %2666 }
 0x21c   :  { %2581 = vmatpush.bf16.msrb.mxu0 %v2524_v25  ;;  %2594 = vmatpush.bf16.msrb.mxu1 %v2527_v16  ;;  %v2689_v56 = vsel %vm92_vm1, %v2672_v54, 0  ;;  %v2675_v30 = vsel %vm2668_vm3, %v2665_v9, %v2667_v4 }
 0x21d   :  { %2607 = vmatpush.bf16.msrb.mxu2 %v2530_v28  ;;  %2620 = vmatpush.bf16.msrb.mxu3 %v2533_v35  ;;  %v2698_v16 = vsel %vm92_vm1, %v2675_v30, 0  ;;  %v5415_v30 = vld [vmem:[%s5757_s1 + $0x44] sm:$0xf] }
 0x21e   :  { %v1719_v42 = vpop.f32.mrf.mxu2  ;;  %v1732_v44 = vpop.f32.mrf.mxu3 }
 0x21f   :  { %v5298_v15 = vadd.f32 %v1719_v42, %v5228_v41  ;;  %v5301_v46 = vadd.f32 %v1732_v44, %v5243_v45  ;;  %v1621_v40 = vpop.f32.mrf.mxu0  ;;  %v1634_v47 = vpop.f32.mrf.mxu1  ;;  %v2670_v41 = vsel %vm2668_vm3, %v2655_v43, %v2657_v26  ;;  %v3306_v45 = vld.sshfl [vmem:[#allocation1 + $0x28] sm:$0xff pattern:$0x73625140] }
 0x220   :  { %v2683_v5 = vsel %vm92_vm1, %v2670_v41, 0  ;;  %3322 = vrot.lane.b32.xlu0 %v3306_v45, %s4401_s9  ;;  %3314 = vrot.lane.b32.xlu2 %v3298_v57, %s4401_s9  ;;  %v2818_v11 = vpop.permute.xlu2 %2817  ;;  %v3465_v47 = vld.sshfl [vmem:[#allocation1 + $0x10] sm:$0xff pattern:$0x73625140] }
 0x221   :  { %v3463_v43 = vld.sshfl [vmem:[#allocation1 + $0x8] sm:$0xff pattern:$0x73625140] }
 0x222   :  { %v2663_v14 = vpop.permute.xlu1 %2662  ;;  %3623 = vst [vmem:[#allocation1] ss:$4 sm:$0xff] %v4431_v0 }
 0x223   :  { %v2820_v20 = vpop.permute.xlu0 %2819  ;;  %v2674_v12 = vsel %vm2668_vm3, %v2663_v14, %v2665_v9 }
 0x224   :  { %v2834_v17 = vsel %vm2833_vm4, %v2818_v11, %v2820_v20  ;;  %v2695_v25 = vsel %vm92_vm1, %v2674_v12, 0 }
 0x225   :  { %v2845_v28 = vsel %vm92_vm1, %v2834_v17, 0 }
 0x226   :  { %v1721_v51 = vpop.f32.mrf.mxu2  ;;  %v1734_v38 = vpop.f32.mrf.mxu3 }
 0x227   :  { %v1745_v55 = vpop.f32.mrf.mxu0  ;;  %v1758_v58 = vpop.f32.mrf.mxu1 }
 0x228   :  { %v5313_v63 = vadd.f32 %v1745_v55, %v5246_v2  ;;  %v5316_v48 = vadd.f32 %v1758_v58, %v5265_v19  ;;  %v3308_v2 = vld.sshfl [vmem:[#allocation1 + $0x30] sm:$0xff pattern:$0x73625140]  ;;  %3483 = vrot.lane.b32.xlu0 %v3467_v22, %s4402_s12  ;;  %3326 = vrot.lane.b32.xlu2 %v3310_v62, %s4401_s9  ;;  %v2826_v37 = vpop.permute.xlu2 %2825 }
 0x229   :  { %3460 = vst [vmem:[#allocation1 + $0x20] ss:$4 sm:$0xff] %v4436_v1  ;;  %3324 = vrot.lane.b32.xlu1 %v3308_v2, %s4401_s9  ;;  %v3630_v17 = vld.sshfl [vmem:[#allocation1 + $0x10] sm:$0xff pattern:$0x73625140] }
 0x22a   :  { %4258 = vmatmul.msk.bf16.vlgmr.msra.gmra.mxu0 %vm88_vm2, %v5238_v60  ;;  %4259 = vmatmul.msk.bf16.vlgmr.msra.gmra.mxu1 %vm88_vm2, %v33_v59  ;;  %v2824_v26 = vpop.permute.xlu1 %2823 }
 0x22b   :  { %4260 = vmatmul.msk.bf16.vlgmr.msra.gmra.mxu2 %vm88_vm2, %v33_v59  ;;  %4261 = vmatmul.msk.bf16.vlgmr.msra.gmra.mxu3 %vm88_vm2, %v33_v59  ;;  %v2837_v55 = vsel %vm2833_vm4, %v2824_v26, %v2826_v37 }
 0x22c   :  { %2720 = vmatpush.bf16.msra.mxu1 %v2683_v5  ;;  %2733 = vmatpush.bf16.msra.mxu2 %v2686_v3  ;;  %v2854_v3 = vsel %vm92_vm1, %v2837_v55, 0 }
 0x22d   :  { %2746 = vmatpush.bf16.msra.mxu3 %v2689_v56  ;;  %2707 = vmatpush.bf16.msra.mxu0 %v2680_v7  ;;  %v3626_v56 = vld.sshfl [vmem:[#allocation1] sm:$0xff pattern:$0x73625140] }
 0x22e   :  { %v1771_v10 = vpop.f32.mrf.mxu2  ;;  %v1784_v60 = vpop.f32.mrf.mxu3 }
 0x22f   :  { %v5333_v6 = vadd.f32 %v1771_v10, %v5268_v8  ;;  %v5336_v61 = vadd.f32 %v1784_v60, %v5278_v24  ;;  %v1747_v18 = vpop.f32.mrf.mxu0  ;;  %v1760_v19 = vpop.f32.mrf.mxu1  ;;  %v2673_v8 = vsel %vm2668_vm3, %v2661_v36, %v2663_v14 }
 0x230   :  { %v2692_v24 = vsel %vm92_vm1, %v2673_v8, 0  ;;  %v3469_v35 = vld.sshfl [vmem:[#allocation1 + $0x20] sm:$0xff pattern:$0x73625140]  ;;  %3479 = vrot.lane.b32.xlu2 %v3463_v43, %s4402_s12  ;;  %v2983_v7 = vpop.permute.xlu2 %2982 }
 0x231   :  { %3477 = vrot.lane.b32.xlu1 %v3461_v23, %s4402_s12 }
 0x232   :  { %v2822_v49 = vpop.permute.xlu0 %2821  ;;  %v2828_v36 = vpop.permute.xlu1 %2827 }
 0x233   :  { %v2835_v52 = vsel %vm2833_vm4, %v2820_v20, %v2822_v49  ;;  %v2838_v58 = vsel %vm2833_vm4, %v2826_v37, %v2828_v36 }
 0x234   :  { %v2848_v45 = vsel %vm92_vm1, %v2835_v52, 0  ;;  %v2857_v5 = vsel %vm92_vm1, %v2838_v58, 0 }
 0x236   :  { %v1773_v13 = vpop.f32.mrf.mxu2  ;;  %v1786_v27 = vpop.f32.mrf.mxu3 }
 0x237   :  { %v1797_v21 = vpop.f32.mrf.mxu0  ;;  %v1884_v29 = vpop.f32.mrf.mxu1 }
 0x238   :  { %v5346_v31 = vadd.f32 %v1797_v21, %v5281_v34  ;;  %v5349_v33 = vadd.f32 %v1884_v29, %v5298_v15  ;;  %v3471_v34 = vld.sshfl [vmem:[#allocation1 + $0x28] sm:$0xff pattern:$0x73625140]  ;;  %3481 = vrot.lane.b32.xlu2 %v3465_v47, %s4402_s12  ;;  %v2832_v14 = vpop.permute.xlu2 %2831 }
 0x239   :  { %3487 = vrot.lane.b32.xlu0 %v3471_v34, %s4402_s12  ;;  %3485 = vrot.lane.b32.xlu1 %v3469_v35, %s4402_s12  ;;  %v3628_v34 = vld.sshfl [vmem:[#allocation1 + $0x8] sm:$0xff pattern:$0x73625140] }
 0x23a   :  { %4262 = vmatmul.msk.bf16.vlgmr.msrb.gmra.mxu0 %vm88_vm2, %v33_v59  ;;  %4263 = vmatmul.msk.bf16.vlgmr.msrb.gmra.mxu1 %vm88_vm2, %v33_v59 }
 0x23b   :  { %4264 = vmatmul.msk.bf16.vlgmr.msrb.gmra.mxu2 %vm88_vm2, %v33_v59  ;;  %4265 = vmatmul.msk.bf16.vlgmr.msrb.gmra.mxu3 %vm88_vm2, %v33_v59 }
 0x23c   :  { %2759 = vmatpush.bf16.msrb.mxu0 %v2692_v24  ;;  %2772 = vmatpush.bf16.msrb.mxu1 %v2695_v25 }
 0x23d   :  { %2785 = vmatpush.bf16.msrb.mxu2 %v2698_v16  ;;  %2872 = vmatpush.bf16.msrb.mxu3 %v2845_v28 }
 0x23e   :  { %v1897_v39 = vpop.f32.mrf.mxu2  ;;  %v1910_v32 = vpop.f32.mrf.mxu3 }
 0x23f   :  { %v5363_v42 = vadd.f32 %v1897_v39, %v5301_v46  ;;  %v5366_v44 = vadd.f32 %v1910_v32, %v5313_v63  ;;  %v1799_v15 = vpop.f32.mrf.mxu0  ;;  %v1886_v40 = vpop.f32.mrf.mxu1  ;;  %v2836_v46 = vsel %vm2833_vm4, %v2822_v49, %v2824_v26  ;;  %v3473_v63 = vld.sshfl [vmem:[#allocation1 + $0x30] sm:$0xff pattern:$0x73625140] }
 0x240   :  { %v2851_v53 = vsel %vm92_vm1, %v2836_v46, 0  ;;  %v2993_v35 = vpop.permute.xlu2 %2992  ;;  %3644 = vrot.lane.b32.xlu2 %v3628_v34, %s4403_s15 }
 0x241   :  { %3489 = vrot.lane.b32.xlu0 %v3473_v63, %s4402_s12  ;;  %3642 = vrot.lane.b32.xlu1 %v3626_v56, %s4403_s15 }
 0x242   :  { %v2830_v18 = vpop.permute.xlu1 %2829 }
 0x243   :  { %v2839_v23 = vsel %vm2833_vm4, %v2828_v36, %v2830_v18  ;;  %v2840_v8 = vsel %vm2833_vm4, %v2830_v18, %v2832_v14 }
 0x244   :  { %v2860_v24 = vsel %vm92_vm1, %v2839_v23, 0  ;;  %v2863_v16 = vsel %vm92_vm1, %v2840_v8, 0 }
 0x246   :  { %v1899_v51 = vpop.f32.mrf.mxu2  ;;  %v1912_v38 = vpop.f32.mrf.mxu3 }
 0x247   :  { %v1923_v41 = vpop.f32.mrf.mxu0  ;;  %v1936_v54 = vpop.f32.mrf.mxu1 }
 0x248   :  { %v5378_v59 = vadd.f32 %v1923_v41, %v5316_v48  ;;  %v5381_v62 = vadd.f32 %v1936_v54, %v5333_v6  ;;  %v2985_v48 = vpop.permute.xlu0 %2984  ;;  %v3475_v6 = vld.sshfl [vmem:[#allocation1 + $0x38] sm:$0xff pattern:$0x73625140]  ;;  %3646 = vrot.lane.b32.xlu2 %v3630_v17, %s4403_s15 }
 0x249   :  { %3625 = vst [vmem:[#allocation1 + $0x20] ss:$4 sm:$0xff] %v4436_v1  ;;  %v2999_v11 = vsel %vm2998_vm5, %v2983_v7, %v2985_v48  ;;  %3491 = vrot.lane.b32.xlu1 %v3475_v6, %s4402_s12 }
 0x24a   :  { %4267 = vmatmul.msk.bf16.vlgmr.msra.gmra.mxu1 %vm88_vm2, %v34_v50  ;;  %4266 = vmatmul.msk.bf16.vlgmr.msra.gmra.mxu0 %vm88_vm2, %v34_v50  ;;  %v3010_v25 = vsel %vm92_vm1, %v2999_v11, 0  ;;  %v2991_v26 = vpop.permute.xlu1 %2990 }
 0x24b   :  { %4268 = vmatmul.msk.bf16.vlgmr.msra.gmra.mxu2 %vm88_vm2, %v34_v50  ;;  %4269 = vmatmul.msk.bf16.vlgmr.msra.gmra.mxu3 %vm88_vm2, %v34_v50  ;;  %v3003_v54 = vsel %vm2998_vm5, %v2991_v26, %v2993_v35 }
 0x24c   :  { %2885 = vmatpush.bf16.msra.mxu0 %v2848_v45  ;;  %2898 = vmatpush.bf16.msra.mxu1 %v2851_v53 }
 0x24d   :  { %2911 = vmatpush.bf16.msra.mxu2 %v2854_v3  ;;  %2924 = vmatpush.bf16.msra.mxu3 %v2857_v5 }
 0x24e   :  { %v1949_v2 = vpop.f32.mrf.mxu2  ;;  %v1962_v57 = vpop.f32.mrf.mxu3 }
 0x24f   :  { %v5395_v4 = vadd.f32 %v1949_v2, %v5336_v61  ;;  %v5398_v9 = vadd.f32 %v1962_v57, %v5346_v31  ;;  %v1925_v10 = vpop.f32.mrf.mxu0  ;;  %v1938_v60 = vpop.f32.mrf.mxu1  ;;  %v5418_v31 = vld.sshfl [vmem:[#allocation1 + $0x18] sm:$0xff pattern:$0x73625140] }
 0x250   :  { %v2987_v19 = vpop.permute.xlu0 %2986  ;;  %v3634_v12 = vld.sshfl [vmem:[#allocation1 + $0x20] sm:$0xff pattern:$0x73625140]  ;;  %v3636_v28 = vld.sshfl [vmem:[#allocation1 + $0x28] sm:$0xff pattern:$0x73625140]  ;;  %3648 = vrot.lane.b32.xlu2 %v5418_v31, %s4403_s15 }
 0x251   :  { %v3000_v27 = vsel %vm2998_vm5, %v2985_v48, %v2987_v19  ;;  %3650 = vrot.lane.b32.xlu0 %v3634_v12, %s4403_s15  ;;  %3788 = vst [vmem:[#allocation1] ss:$4 sm:$0xff] %v4431_v0  ;;  %v3638_v39 = vld.sshfl [vmem:[#allocation1 + $0x30] sm:$0xff pattern:$0x73625140]  ;;  %3652 = vrot.lane.b32.xlu1 %v3636_v28, %s4403_s15 }
 0x252   :  { %v2995_v36 = vpop.permute.xlu1 %2994  ;;  %v5485_v12 = vld [vmem:[%s5757_s1 + $0x48] sm:$0xf] }
 0x256   :  { %v1951_v22 = vpop.f32.mrf.mxu2  ;;  %v1964_v20 = vpop.f32.mrf.mxu3 }
 0x257   :  { %v2049_v61 = vpop.f32.mrf.mxu0  ;;  %v2062_v13 = vpop.f32.mrf.mxu1 }
 0x258   :  { %v5407_v21 = vadd.f32 %v2049_v61, %v5349_v33  ;;  %v5410_v29 = vadd.f32 %v2062_v13, %v5363_v42  ;;  %v3013_v33 = vsel %vm92_vm1, %v3000_v27, 0  ;;  %v2989_v49 = vpop.permute.xlu0 %2988  ;;  %v3793_v43 = vld.sshfl [vmem:[#allocation1 + $0x8] sm:$0xff pattern:$0x73625140] }
 0x259   :  { %3654 = vrot.lane.b32.xlu0 %v3638_v39, %s4403_s15  ;;  %v3001_v52 = vsel %vm2998_vm5, %v2987_v19, %v2989_v49  ;;  %v3002_v46 = vsel %vm2998_vm5, %v2989_v49, %v2991_v26  ;;  %3809 = vrot.lane.b32.xlu1 %v3793_v43, %s4404_s17  ;;  %v3791_v48 = vld.sshfl [vmem:[#allocation1] sm:$0xff pattern:$0x73625140]  ;;  %v3797_v17 = vld.sshfl [vmem:[#allocation1 + $0x18] sm:$0xff pattern:$0x73625140] }
 0x25a   :  { %4270 = vmatmul.msk.bf16.vlgmr.msrb.gmra.mxu0 %vm88_vm2, %v34_v50  ;;  %4271 = vmatmul.msk.bf16.vlgmr.msrb.gmra.mxu1 %vm88_vm2, %v34_v50  ;;  %v3016_v63 = vsel %vm92_vm1, %v3001_v52, 0  ;;  %v3019_v45 = vsel %vm92_vm1, %v3002_v46, 0  ;;  %v3150_v53 = vpop.permute.xlu2 %3149  ;;  %v2997_v6 = vpop.permute.xlu1 %2996  ;;  %v3795_v26 = vld.sshfl [vmem:[#allocation1 + $0x10] sm:$0xff pattern:$0x73625140] }
 0x25b   :  { %4272 = vmatmul.msk.bf16.vlgmr.msrb.gmra.mxu2 %vm88_vm2, %v34_v50  ;;  %4273 = vmatmul.msk.bf16.vlgmr.msrb.gmra.mxu3 %vm88_vm2, %v5415_v30  ;;  %v3004_v50 = vsel %vm2998_vm5, %v2993_v35, %v2995_v36  ;;  %v3005_v20 = vsel %vm2998_vm5, %v2995_v36, %v2997_v6  ;;  %3953 = vst [vmem:[#allocation1] ss:$4 sm:$0xff] %v4431_v0 }
 0x25c   :  { %2937 = vmatpush.bf16.msrb.mxu0 %v2860_v24  ;;  %3037 = vmatpush.bf16.msrb.mxu2 %v3010_v25  ;;  %v3025_v3 = vsel %vm92_vm1, %v3004_v50, 0  ;;  %v3028_v31 = vsel %vm92_vm1, %v3005_v20, 0 }
 0x25d   :  { %3050 = vmatpush.bf16.msrb.mxu3 %v3013_v33  ;;  %2950 = vmatpush.bf16.msrb.mxu1 %v2863_v16 }
 0x25e   :  { %v2075_v32 = vpop.f32.mrf.mxu2  ;;  %v2088_v42 = vpop.f32.mrf.mxu3  ;;  %3811 = vrot.lane.b32.xlu2 %v3795_v26, %s4404_s17 }
 0x25f   :  { %v2133_v15 = vadd.f32 %v2075_v32, %v5366_v44  ;;  %v5434_v40 = vadd.f32 %v2088_v42, %v5378_v59  ;;  %v2051_v47 = vpop.f32.mrf.mxu0  ;;  %v2064_v37 = vpop.f32.mrf.mxu1  ;;  %v3640_v59 = vld.sshfl [vmem:[#allocation1 + $0x38] sm:$0xff pattern:$0x73625140] }
 0x260   :  { %3790 = vst [vmem:[#allocation1 + $0x20] ss:$4 sm:$0xff] %v4436_v1  ;;  %v3152_v5 = vpop.permute.xlu0 %3151 }
 0x261   :  { %3656 = vrot.lane.b32.xlu0 %v3640_v59, %s4403_s15  ;;  %3807 = vrot.lane.b32.xlu1 %v3791_v48, %s4404_s17  ;;  %v3165_v61 = vsel %vm3163_vm6, %v3150_v53, %v3152_v5 }
 0x262   :  { %v3148_v18 = vpop.permute.xlu2 %3147  ;;  %v3158_v33 = vpop.permute.xlu1 %3157  ;;  %v3960_v47 = vld.sshfl [vmem:[#allocation1 + $0x10] sm:$0xff pattern:$0x73625140] }
 0x263   :  { %v3164_v23 = vsel %vm3163_vm6, %v3148_v18, %v3150_v53 }
 0x264   :  { %v3175_v24 = vsel %vm92_vm1, %v3164_v23, 0 }
 0x266   :  { %v2077_v51 = vpop.f32.mrf.mxu2  ;;  %v2090_v38 = vpop.f32.mrf.mxu3  ;;  %3813 = vrot.lane.b32.xlu2 %v3797_v17, %s4404_s17 }
 0x267   :  { %v2101_v44 = vpop.f32.mrf.mxu0  ;;  %v2114_v41 = vpop.f32.mrf.mxu1  ;;  %v3801_v60 = vld.sshfl [vmem:[#allocation1 + $0x28] sm:$0xff pattern:$0x73625140]  ;;  %v3805_v16 = vld.sshfl [vmem:[#allocation1 + $0x38] sm:$0xff pattern:$0x73625140] }
 0x268   :  { %v5444_v55 = vadd.f32 %v2101_v44, %v5381_v62  ;;  %v5447_v58 = vadd.f32 %v2114_v41, %v5395_v4  ;;  %v3022_v62 = vsel %vm92_vm1, %v3003_v54, 0  ;;  %v3154_v19 = vpop.permute.xlu0 %3153 }
 0x269   :  { %3817 = vrot.lane.b32.xlu0 %v3801_v60, %s4404_s17  ;;  %v3166_v13 = vsel %vm3163_vm6, %v3152_v5, %v3154_v19 }
 0x26a   :  { %4274 = vmatmul.msk.bf16.vlgmr.msra.gmra.mxu0 %vm88_vm2, %v5415_v30  ;;  %4275 = vmatmul.msk.bf16.vlgmr.msra.gmra.mxu1 %vm88_vm2, %v5415_v30  ;;  %v3181_v25 = vsel %vm92_vm1, %v3166_v13, 0  ;;  %v3162_v37 = vpop.permute.xlu1 %3161 }
 0x26b   :  { %4276 = vmatmul.msk.bf16.vlgmr.msra.gmra.mxu2 %vm88_vm2, %v5415_v30  ;;  %4277 = vmatmul.msk.bf16.vlgmr.msra.gmra.mxu3 %vm88_vm2, %v5415_v30 }
 0x26c   :  { %3063 = vmatpush.bf16.msra.mxu0 %v3016_v63  ;;  %3076 = vmatpush.bf16.msra.mxu1 %v3019_v45  ;;  %v3958_v63 = vld.sshfl [vmem:[#allocation1 + $0x8] sm:$0xff pattern:$0x73625140] }
 0x26d   :  { %3089 = vmatpush.bf16.msra.mxu2 %v3022_v62  ;;  %3102 = vmatpush.bf16.msra.mxu3 %v3025_v3 }
 0x26e   :  { %v2127_v56 = vpop.f32.mrf.mxu2  ;;  %v2214_v7 = vpop.f32.mrf.mxu3 }
 0x26f   :  { %v5467_v2 = vadd.f32 %v2127_v56, %v5398_v9  ;;  %v5470_v57 = vadd.f32 %v2214_v7, %v5407_v21  ;;  %v2103_v4 = vpop.f32.mrf.mxu0  ;;  %v2116_v10 = vpop.f32.mrf.mxu1  ;;  %v3803_v21 = vld.sshfl [vmem:[#allocation1 + $0x30] sm:$0xff pattern:$0x73625140]  ;;  %v3799_v56 = vld.sshfl [vmem:[#allocation1 + $0x20] sm:$0xff pattern:$0x73625140] }
 0x270   :  { %3819 = vrot.lane.b32.xlu1 %v3803_v21, %s4404_s17  ;;  %v3956_v7 = vld.sshfl [vmem:[#allocation1] sm:$0xff pattern:$0x73625140]  ;;  %3815 = vrot.lane.b32.xlu2 %v3799_v56, %s4404_s17  ;;  %3955 = vst [vmem:[#allocation1 + $0x20] ss:$4 sm:$0xff] %v4436_v1 }
 0x271   :  { %3821 = vrot.lane.b32.xlu0 %v3805_v16, %s4404_s17  ;;  %v3962_v21 = vld.sshfl [vmem:[#allocation1 + $0x18] sm:$0xff pattern:$0x73625140] }
 0x276   :  { %v2129_v14 = vpop.f32.mrf.mxu2  ;;  %v2216_v22 = vpop.f32.mrf.mxu3 }
 0x277   :  { %v2227_v9 = vpop.f32.mrf.mxu0  ;;  %v2240_v11 = vpop.f32.mrf.mxu1  ;;  %v37_v22 = vld [vmem:[%s5757_s1 + $0x4c] sm:$0xf]  ;;  %v3970_v17 = vld.sshfl [vmem:[#allocation1 + $0x38] sm:$0xff pattern:$0x73625140] }
 0x278   :  { %v5478_v27 = vadd.f32 %v2227_v9, %v5410_v29  ;;  %v5480_v8 = vadd.f32 %v2240_v11, %v2133_v15  ;;  %v3178_v29 = vsel %vm92_vm1, %v3165_v61, 0  ;;  %v3156_v15 = vpop.permute.xlu0 %3155  ;;  %3976 = vrot.lane.b32.xlu1 %v3960_v47, %s4405_s20  ;;  %3978 = vrot.lane.b32.xlu2 %v3962_v21, %s4405_s20 }
 0x279   :  { %v3167_v43 = vsel %vm3163_vm6, %v3154_v19, %v3156_v15  ;;  %v3168_v36 = vsel %vm3163_vm6, %v3156_v15, %v3158_v33  ;;  %3972 = vrot.lane.b32.xlu0 %v3956_v7, %s4405_s20 }
 0x27a   :  { %4278 = vmatmul.msk.bf16.vlgmr.msrb.gmra.mxu0 %vm88_vm2, %v5415_v30  ;;  %4279 = vmatmul.msk.bf16.vlgmr.msrb.gmra.mxu1 %vm88_vm2, %v5415_v30  ;;  %v3160_v30 = vpop.permute.xlu2 %3159  ;;  %v3184_v41 = vsel %vm92_vm1, %v3167_v43, 0  ;;  %v3187_v54 = vsel %vm92_vm1, %v3168_v36, 0 }
 0x27b   :  { %4280 = vmatmul.msk.bf16.vlgmr.msrb.gmra.mxu2 %vm88_vm2, %v5485_v12  ;;  %4281 = vmatmul.msk.bf16.vlgmr.msrb.gmra.mxu3 %vm88_vm2, %v5485_v12  ;;  %v3169_v38 = vsel %vm3163_vm6, %v3158_v33, %v3160_v30  ;;  %v3170_v52 = vsel %vm3163_vm6, %v3160_v30, %v3162_v37  ;;  %v3313_v10 = vpop.permute.xlu1 %3312 }
 0x27c   :  { %3115 = vmatpush.bf16.msrb.mxu0 %v3028_v31  ;;  %3202 = vmatpush.bf16.msrb.mxu1 %v3175_v24  ;;  %v3193_v59 = vsel %vm92_vm1, %v3170_v52, 0  ;;  %v3968_v31 = vld.sshfl [vmem:[#allocation1 + $0x30] sm:$0xff pattern:$0x73625140] }
 0x27d   :  { %3215 = vmatpush.bf16.msrb.mxu2 %v3178_v29  ;;  %3228 = vmatpush.bf16.msrb.mxu3 %v3181_v25 }
 0x27e   :  { %v2253_v28 = vpop.f32.mrf.mxu2  ;;  %v2266_v34 = vpop.f32.mrf.mxu3 }
 0x27f   :  { %v2299_v35 = vadd.f32 %v2253_v28, %v5434_v40  ;;  %v5505_v39 = vadd.f32 %v2266_v34, %v5444_v55  ;;  %v2229_v32 = vpop.f32.mrf.mxu0  ;;  %v2242_v42 = vpop.f32.mrf.mxu1  ;;  %v3190_v55 = vsel %vm92_vm1, %v3169_v38, 0  ;;  %v3964_v28 = vld.sshfl [vmem:[#allocation1 + $0x20] sm:$0xff pattern:$0x73625140] }
 0x280   :  { %3974 = vrot.lane.b32.xlu1 %v3958_v63, %s4405_s20  ;;  %3980 = vrot.lane.b32.xlu2 %v3964_v28, %s4405_s20 }
 0x281   :  { %3984 = vrot.lane.b32.xlu0 %v3968_v31, %s4405_s20 }
 0x282   :  { %v3317_v50 = vpop.permute.xlu2 %3316 }
 0x286   :  { %v2255_v0 = vpop.f32.mrf.mxu2  ;;  %v2268_v49 = vpop.f32.mrf.mxu3 }
 0x287   :  { %v2279_v40 = vpop.f32.mrf.mxu0  ;;  %v2292_v51 = vpop.f32.mrf.mxu1 }
 0x288   :  { %v5514_v46 = vadd.f32 %v2279_v40, %v5447_v58  ;;  %v5517_v44 = vadd.f32 %v2292_v51, %v5467_v2  ;;  %v3319_v58 = vpop.permute.xlu0 %3318  ;;  %3986 = vrot.lane.b32.xlu1 %v3970_v17, %s4405_s20 }
 0x289   :  { %v3331_v6 = vsel %vm3328_vm7, %v3317_v50, %v3319_v58 }
 0x28a   :  { %4282 = vmatmul.msk.bf16.vlgmr.msra.gmra.mxu0 %vm88_vm2, %v5485_v12  ;;  %4283 = vmatmul.msk.bf16.vlgmr.msra.gmra.mxu1 %vm88_vm2, %v5485_v12  ;;  %v3315_v2 = vpop.permute.xlu2 %3314  ;;  %v3346_v11 = vsel %vm92_vm1, %v3331_v6, 0 }
 0x28b   :  { %4284 = vmatmul.msk.bf16.vlgmr.msra.gmra.mxu2 %vm88_vm2, %v5485_v12  ;;  %4285 = vmatmul.msk.bf16.vlgmr.msra.gmra.mxu3 %vm88_vm2, %v5485_v12  ;;  %v3330_v18 = vsel %vm3328_vm7, %v3315_v2, %v3317_v50  ;;  %v3329_v20 = vsel %vm3328_vm7, %v3313_v10, %v3315_v2 }
 0x28c   :  { %3241 = vmatpush.bf16.msra.mxu0 %v3184_v41  ;;  %3254 = vmatpush.bf16.msra.mxu1 %v3187_v54  ;;  %v3343_v61 = vsel %vm92_vm1, %v3330_v18, 0 }
 0x28d   :  { %3267 = vmatpush.bf16.msra.mxu2 %v3190_v55  ;;  %3280 = vmatpush.bf16.msra.mxu3 %v3193_v59 }
 0x28e   :  { %v2379_v45 = vpop.f32.mrf.mxu2  ;;  %v2392_v53 = vpop.f32.mrf.mxu3 }
 0x28f   :  { %v5533_v62 = vadd.f32 %v2379_v45, %v5470_v57  ;;  %v5536_v3 = vadd.f32 %v2392_v53, %v5478_v27  ;;  %v2281_v5 = vpop.f32.mrf.mxu0  ;;  %v2294_v48 = vpop.f32.mrf.mxu1  ;;  %v3340_v27 = vsel %vm92_vm1, %v3329_v20, 0 }
 0x290   :  { %v3321_v4 = vpop.permute.xlu0 %3320 }
 0x291   :  { %v3332_v1 = vsel %vm3328_vm7, %v3319_v58, %v3321_v4  ;;  %v3966_v58 = vld.sshfl [vmem:[#allocation1 + $0x28] sm:$0xff pattern:$0x73625140] }
 0x292   :  { %v3349_v13 = vsel %vm92_vm1, %v3332_v1, 0  ;;  %3982 = vrot.lane.b32.xlu2 %v3966_v58, %s4405_s20 }
 0x296   :  { %v2381_v60 = vpop.f32.mrf.mxu2  ;;  %v2394_v57 = vpop.f32.mrf.mxu3 }
 0x297   :  { %v2405_v19 = vpop.f32.mrf.mxu0  ;;  %v2418_v14 = vpop.f32.mrf.mxu1 }
 0x298   :  { %v2463_v23 = vadd.f32 %v2405_v19, %v5480_v8  ;;  %v5549_v9 = vadd.f32 %v2418_v14, %v2299_v35  ;;  %v3327_v8 = vpop.permute.xlu2 %3326  ;;  %v3323_v30 = vpop.permute.xlu0 %3322 }
 0x299   :  { %v3333_v42 = vsel %vm3328_vm7, %v3321_v4, %v3323_v30 }
 0x29a   :  { %4286 = vmatmul.msk.bf16.vlgmr.msrb.gmra.mxu0 %vm88_vm2, %v5485_v12  ;;  %4287 = vmatmul.msk.bf16.vlgmr.msrb.gmra.mxu1 %vm88_vm2, %v37_v22  ;;  %v3352_v36 = vsel %vm92_vm1, %v3333_v42, 0 }
 0x29b   :  { %4288 = vmatmul.msk.bf16.vlgmr.msrb.gmra.mxu2 %vm88_vm2, %v37_v22  ;;  %4289 = vmatmul.msk.bf16.vlgmr.msrb.gmra.mxu3 %vm88_vm2, %v37_v22  ;;  %v3325_v26 = vpop.permute.xlu1 %3324 }
 0x29c   :  { %3380 = vmatpush.bf16.msrb.mxu1 %v3343_v61  ;;  %3393 = vmatpush.bf16.msrb.mxu2 %v3346_v11  ;;  %v3334_v15 = vsel %vm3328_vm7, %v3323_v30, %v3325_v26  ;;  %v3335_v37 = vsel %vm3328_vm7, %v3325_v26, %v3327_v8  ;;  %v5618_v26 = vld [vmem:[%s5757_s1 + $0x54] sm:$0xf] }
 0x29d   :  { %3406 = vmatpush.bf16.msrb.mxu3 %v3349_v13  ;;  %3367 = vmatpush.bf16.msrb.mxu0 %v3340_v27  ;;  %v3355_v40 = vsel %vm92_vm1, %v3334_v15, 0  ;;  %v3358_v38 = vsel %vm92_vm1, %v3335_v37, 0 }
 0x29e   :  { %v2431_v24 = vpop.f32.mrf.mxu2  ;;  %v2444_v12 = vpop.f32.mrf.mxu3 }
 0x29f   :  { %v2465_v29 = vadd.f32 %v2431_v24, %v5505_v39  ;;  %v5564_v25 = vadd.f32 %v2444_v12, %v5514_v46  ;;  %v2407_v33 = vpop.f32.mrf.mxu0  ;;  %v2420_v16 = vpop.f32.mrf.mxu1 }
 0x2a0   :  { %v3480_v34 = vpop.permute.xlu2 %3479  ;;  %v3484_v52 = vpop.permute.xlu0 %3483 }
 0x2a3   :  { %v3478_v43 = vpop.permute.xlu1 %3477 }
 0x2a4   :  { %v3494_v51 = vsel %vm3493_vm8, %v3478_v43, %v3480_v34 }
 0x2a5   :  { %v3505_v46 = vsel %vm92_vm1, %v3494_v51, 0 }
 0x2a6   :  { %v2433_v35 = vpop.f32.mrf.mxu2  ;;  %v2446_v32 = vpop.f32.mrf.mxu3 }
 0x2a7   :  { %v2457_v39 = vpop.f32.mrf.mxu0  ;;  %v2544_v47 = vpop.f32.mrf.mxu1 }
 0x2a8   :  { %v2467_v0 = vadd.f32 %v2457_v39, %v5517_v44  ;;  %v5573_v49 = vadd.f32 %v2544_v47, %v5533_v62  ;;  %v3482_v63 = vpop.permute.xlu2 %3481 }
 0x2a9   :  { %v3495_v48 = vsel %vm3493_vm8, %v3480_v34, %v3482_v63  ;;  %v3496_v56 = vsel %vm3493_vm8, %v3482_v63, %v3484_v52 }
 0x2aa   :  { %4290 = vmatmul.msk.bf16.vlgmr.msra.gmra.mxu0 %vm88_vm2, %v37_v22  ;;  %4291 = vmatmul.msk.bf16.vlgmr.msra.gmra.mxu1 %vm88_vm2, %v37_v22  ;;  %v3508_v6 = vsel %vm92_vm1, %v3495_v48, 0  ;;  %v3511_v18 = vsel %vm92_vm1, %v3496_v56, 0 }
 0x2ab   :  { %4292 = vmatmul.msk.bf16.vlgmr.msra.gmra.mxu2 %vm88_vm2, %v37_v22  ;;  %4293 = vmatmul.msk.bf16.vlgmr.msra.gmra.mxu3 %vm88_vm2, %v37_v22  ;;  %v3488_v45 = vpop.permute.xlu0 %3487  ;;  %v3486_v53 = vpop.permute.xlu1 %3485 }
 0x2ac   :  { %3419 = vmatpush.bf16.msra.mxu0 %v3352_v36  ;;  %3432 = vmatpush.bf16.msra.mxu1 %v3355_v40  ;;  %v3497_v4 = vsel %vm3493_vm8, %v3484_v52, %v3486_v53  ;;  %v3498_v10 = vsel %vm3493_vm8, %v3486_v53, %v3488_v45 }
 0x2ad   :  { %3445 = vmatpush.bf16.msra.mxu2 %v3358_v38  ;;  %3532 = vmatpush.bf16.msra.mxu3 %v3505_v46  ;;  %v3514_v19 = vsel %vm92_vm1, %v3497_v4, 0  ;;  %v3517_v14 = vsel %vm92_vm1, %v3498_v10, 0 }
 0x2ae   :  { %v2557_v44 = vpop.f32.mrf.mxu2  ;;  %v2570_v41 = vpop.f32.mrf.mxu3 }
 0x2af   :  { %v2627_v54 = vadd.f32 %v2557_v44, %v5536_v3  ;;  %v5585_v50 = vadd.f32 %v2570_v41, %v2463_v23  ;;  %v2459_v55 = vpop.f32.mrf.mxu0  ;;  %v2546_v59 = vpop.f32.mrf.mxu1  ;;  %v38_v3 = vld [vmem:[%s5757_s1 + $0x50] sm:$0xf] }
 0x2b0   :  { %v3645_v22 = vpop.permute.xlu2 %3644 }
 0x2b3   :  { %v3643_v13 = vpop.permute.xlu1 %3642  ;;  %v3490_v27 = vpop.permute.xlu0 %3489 }
 0x2b4   :  { %v3499_v31 = vsel %vm3493_vm8, %v3488_v45, %v3490_v27  ;;  %v3659_v24 = vsel %vm3658_vm9, %v3643_v13, %v3645_v22  ;;  %v5665_v13 = vld [vmem:[%s5757_s1 + $0x58] sm:$0xf] }
 0x2b5   :  { %v3520_v28 = vsel %vm92_vm1, %v3499_v31, 0  ;;  %v3670_v34 = vsel %vm92_vm1, %v3659_v24, 0 }
 0x2b6   :  { %v2559_v62 = vpop.f32.mrf.mxu2  ;;  %v2572_v5 = vpop.f32.mrf.mxu3 }
 0x2b7   :  { %v2583_v7 = vpop.f32.mrf.mxu0  ;;  %v2596_v2 = vpop.f32.mrf.mxu1 }
 0x2b8   :  { %v2629_v60 = vadd.f32 %v2583_v7, %v5549_v9  ;;  %v5596_v57 = vadd.f32 %v2596_v2, %v2465_v29  ;;  %v3647_v8 = vpop.permute.xlu2 %3646 }
 0x2b9   :  { %v3660_v33 = vsel %vm3658_vm9, %v3645_v22, %v3647_v8 }
 0x2ba   :  { %4295 = vmatmul.msk.bf16.vlgmr.msrb.gmra.mxu1 %vm88_vm2, %v38_v3  ;;  %4294 = vmatmul.msk.bf16.vlgmr.msrb.gmra.mxu0 %vm88_vm2, %v38_v3  ;;  %v3673_v32 = vsel %vm92_vm1, %v3660_v33, 0 }
 0x2bb   :  { %4296 = vmatmul.msk.bf16.vlgmr.msrb.gmra.mxu2 %vm88_vm2, %v38_v3  ;;  %4297 = vmatmul.msk.bf16.vlgmr.msrb.gmra.mxu3 %vm88_vm2, %v38_v3  ;;  %v3492_v30 = vpop.permute.xlu1 %3491 }
 0x2bc   :  { %3545 = vmatpush.bf16.msrb.mxu0 %v3508_v6  ;;  %3558 = vmatpush.bf16.msrb.mxu1 %v3511_v18  ;;  %v3500_v35 = vsel %vm3493_vm8, %v3490_v27, %v3492_v30 }
 0x2bd   :  { %3571 = vmatpush.bf16.msrb.mxu2 %v3514_v19  ;;  %3584 = vmatpush.bf16.msrb.mxu3 %v3517_v14  ;;  %v3523_v42 = vsel %vm92_vm1, %v3500_v35, 0 }
 0x2be   :  { %v2609_v1 = vpop.f32.mrf.mxu2  ;;  %v2622_v20 = vpop.f32.mrf.mxu3 }
 0x2bf   :  { %v2631_v23 = vadd.f32 %v2609_v1, %v5564_v25  ;;  %v5607_v9 = vadd.f32 %v2622_v20, %v2467_v0  ;;  %v2585_v11 = vpop.f32.mrf.mxu0  ;;  %v2598_v61 = vpop.f32.mrf.mxu1 }
 0x2c0   :  { %v3649_v40 = vpop.permute.xlu2 %3648 }
 0x2c1   :  { %v3661_v46 = vsel %vm3658_vm9, %v3647_v8, %v3649_v40 }
 0x2c2   :  { %v3676_v63 = vsel %vm92_vm1, %v3661_v46, 0 }
 0x2c3   :  { %v3651_v15 = vpop.permute.xlu0 %3650  ;;  %v3653_v36 = vpop.permute.xlu1 %3652 }
 0x2c4   :  { %v3662_v44 = vsel %vm3658_vm9, %v3649_v40, %v3651_v15  ;;  %v3663_v55 = vsel %vm3658_vm9, %v3651_v15, %v3653_v36 }
 0x2c5   :  { %v3679_v45 = vsel %vm92_vm1, %v3662_v44, 0  ;;  %v3682_v62 = vsel %vm92_vm1, %v3663_v55, 0 }
 0x2c6   :  { %v2611_v21 = vpop.f32.mrf.mxu2  ;;  %v2624_v17 = vpop.f32.mrf.mxu3 }
 0x2c7   :  { %v2709_v12 = vpop.f32.mrf.mxu0  ;;  %v2722_v29 = vpop.f32.mrf.mxu1 }
 0x2c8   :  { %v2791_v25 = vadd.f32 %v2709_v12, %v5573_v49  ;;  %v5613_v16 = vadd.f32 %v2722_v29, %v2627_v54  ;;  %v3812_v48 = vpop.permute.xlu2 %3811 }
 0x2ca   :  { %4298 = vmatmul.msk.bf16.vlgmr.msra.gmra.mxu0 %vm88_vm2, %v38_v3  ;;  %4299 = vmatmul.msk.bf16.vlgmr.msra.gmra.mxu1 %vm88_vm2, %v38_v3 }
 0x2cb   :  { %4300 = vmatmul.msk.bf16.vlgmr.msra.gmra.mxu2 %vm88_vm2, %v38_v3  ;;  %4301 = vmatmul.msk.bf16.vlgmr.msra.gmra.mxu3 %vm88_vm2, %v5618_v26  ;;  %v3655_v51 = vpop.permute.xlu0 %3654  ;;  %v3810_v53 = vpop.permute.xlu1 %3809 }
 0x2cc   :  { %3597 = vmatpush.bf16.msra.mxu0 %v3520_v28  ;;  %3697 = vmatpush.bf16.msra.mxu2 %v3670_v34  ;;  %v3664_v59 = vsel %vm3658_vm9, %v3653_v36, %v3655_v51 }
 0x2cd   :  { %3710 = vmatpush.bf16.msra.mxu3 %v3673_v32  ;;  %3610 = vmatpush.bf16.msra.mxu1 %v3523_v42  ;;  %v3685_v5 = vsel %vm92_vm1, %v3664_v59, 0 }
 0x2ce   :  { %v2735_v39 = vpop.f32.mrf.mxu2  ;;  %v2748_v47 = vpop.f32.mrf.mxu3 }
 0x2cf   :  { %v2793_v37 = vadd.f32 %v2735_v39, %v5585_v50  ;;  %v5631_v0 = vadd.f32 %v2748_v47, %v2629_v60  ;;  %v2711_v49 = vpop.f32.mrf.mxu0  ;;  %v2724_v43 = vpop.f32.mrf.mxu1 }
 0x2d0   :  { %v3814_v6 = vpop.permute.xlu2 %3813 }
 0x2d3   :  { %v3657_v60 = vpop.permute.xlu0 %3656 }
 0x2d4   :  { %v3665_v14 = vsel %vm3658_vm9, %v3655_v51, %v3657_v60 }
 0x2d5   :  { %v3688_v27 = vsel %vm92_vm1, %v3665_v14, 0 }
 0x2d6   :  { %v2737_v38 = vpop.f32.mrf.mxu2  ;;  %v2750_v52 = vpop.f32.mrf.mxu3 }
 0x2d7   :  { %v2761_v41 = vpop.f32.mrf.mxu0  ;;  %v2774_v54 = vpop.f32.mrf.mxu1 }
 0x2d8   :  { %v2795_v50 = vadd.f32 %v2761_v41, %v5596_v57  ;;  %v5638_v58 = vadd.f32 %v2774_v54, %v2631_v23  ;;  %v3808_v57 = vpop.permute.xlu1 %3807  ;;  %v3825_v23 = vsel %vm3823_vm10, %v3810_v53, %v3812_v48  ;;  %v3816_v30 = vpop.permute.xlu2 %3815 }
 0x2d9   :  { %v3824_v22 = vsel %vm3823_vm10, %v3808_v57, %v3810_v53  ;;  %v3838_v21 = vsel %vm92_vm1, %v3825_v23, 0  ;;  %v3827_v32 = vsel %vm3823_vm10, %v3814_v6, %v3816_v30 }
 0x2da   :  { %4302 = vmatmul.msk.bf16.vlgmr.msrb.gmra.mxu0 %vm88_vm2, %v5618_v26  ;;  %4303 = vmatmul.msk.bf16.vlgmr.msrb.gmra.mxu1 %vm88_vm2, %v5618_v26  ;;  %v3835_v8 = vsel %vm92_vm1, %v3824_v22, 0  ;;  %v3844_v43 = vsel %vm92_vm1, %v3827_v32, 0 }
 0x2db   :  { %4304 = vmatmul.msk.bf16.vlgmr.msrb.gmra.mxu2 %vm88_vm2, %v5618_v26  ;;  %4305 = vmatmul.msk.bf16.vlgmr.msrb.gmra.mxu3 %vm88_vm2, %v5618_v26  ;;  %v3818_v31 = vpop.permute.xlu0 %3817 }
 0x2dc   :  { %3723 = vmatpush.bf16.msrb.mxu0 %v3676_v63  ;;  %3736 = vmatpush.bf16.msrb.mxu1 %v3679_v45  ;;  %v3828_v42 = vsel %vm3823_vm10, %v3816_v30, %v3818_v31 }
 0x2dd   :  { %3749 = vmatpush.bf16.msrb.mxu2 %v3682_v62  ;;  %3762 = vmatpush.bf16.msrb.mxu3 %v3685_v5  ;;  %v3847_v36 = vsel %vm92_vm1, %v3828_v42, 0 }
 0x2de   :  { %v2787_v56 = vpop.f32.mrf.mxu2  ;;  %v2874_v7 = vpop.f32.mrf.mxu3 }
 0x2df   :  { %v2797_v2 = vadd.f32 %v2787_v56, %v5607_v9  ;;  %v5653_v3 = vadd.f32 %v2874_v7, %v2791_v25  ;;  %v2763_v4 = vpop.f32.mrf.mxu0  ;;  %v2776_v10 = vpop.f32.mrf.mxu1  ;;  %v3826_v9 = vsel %vm3823_vm10, %v3812_v48, %v3814_v6  ;;  %v41_v7 = vld [vmem:[%s5757_s1 + $0x5c] sm:$0xf] }
 0x2e0   :  { %v3841_v17 = vsel %vm92_vm1, %v3826_v9, 0  ;;  %v3979_v52 = vpop.permute.xlu2 %3978 }
 0x2e2   :  { %v3820_v24 = vpop.permute.xlu1 %3819 }
 0x2e3   :  { %v3822_v28 = vpop.permute.xlu0 %3821  ;;  %v3829_v47 = vsel %vm3823_vm10, %v3818_v31, %v3820_v24 }
 0x2e4   :  { %v3850_v51 = vsel %vm92_vm1, %v3829_v47, 0 }
 0x2e6   :  { %v2789_v18 = vpop.f32.mrf.mxu2  ;;  %v2876_v19 = vpop.f32.mrf.mxu3 }
 0x2e7   :  { %v2887_v1 = vpop.f32.mrf.mxu0  ;;  %v2900_v20 = vpop.f32.mrf.mxu1 }
 0x2e8   :  { %v2957_v11 = vadd.f32 %v2887_v1, %v5613_v16  ;;  %v5660_v61 = vadd.f32 %v2900_v20, %v2793_v37  ;;  %v3830_v37 = vsel %vm3823_vm10, %v3820_v24, %v3822_v28 }
 0x2e9   :  { %v3853_v38 = vsel %vm92_vm1, %v3830_v37, 0 }
 0x2ea   :  { %4306 = vmatmul.msk.bf16.vlgmr.msra.gmra.mxu0 %vm88_vm2, %v5618_v26  ;;  %4307 = vmatmul.msk.bf16.vlgmr.msra.gmra.mxu1 %vm88_vm2, %v5618_v26  ;;  %v3977_v40 = vpop.permute.xlu1 %3976 }
 0x2eb   :  { %4308 = vmatmul.msk.bf16.vlgmr.msra.gmra.mxu2 %vm88_vm2, %v5665_v13  ;;  %4309 = vmatmul.msk.bf16.vlgmr.msra.gmra.mxu3 %vm88_vm2, %v5665_v13  ;;  %v3973_v63 = vpop.permute.xlu0 %3972  ;;  %v3991_v62 = vsel %vm3988_vm11, %v3977_v40, %v3979_v52 }
 0x2ec   :  { %3775 = vmatpush.bf16.msra.mxu0 %v3688_v27  ;;  %3862 = vmatpush.bf16.msra.mxu1 %v3835_v8  ;;  %v4006_v60 = vsel %vm92_vm1, %v3991_v62, 0 }
 0x2ed   :  { %3875 = vmatpush.bf16.msra.mxu2 %v3838_v21  ;;  %3888 = vmatpush.bf16.msra.mxu3 %v3841_v17 }
 0x2ee   :  { %v2913_v12 = vpop.f32.mrf.mxu2  ;;  %v2926_v29 = vpop.f32.mrf.mxu3 }
 0x2ef   :  { %v2959_v33 = vadd.f32 %v2913_v12, %v5631_v0  ;;  %v5680_v25 = vadd.f32 %v2926_v29, %v2795_v50  ;;  %v2889_v16 = vpop.f32.mrf.mxu0  ;;  %v2902_v26 = vpop.f32.mrf.mxu1  ;;  %v4406_v12 = vmov 0   ;;  %v4118_v29 = vld [vmem:[%s5758_s2] sm:$0xff] }
 0x2f0   :  { %4355 = vset.pattern.permute.xlu0 %v4406_v12 }
 0x2f1   :  { %4121 = vperm.xlu0 %4355, %v4118_v29  }
 0x2f2   :  { %v3975_v50 = vpop.permute.xlu1 %3974 }
 0x2f3   :  { %v3990_v5 = vsel %vm3988_vm11, %v3975_v50, %v3977_v40 }
 0x2f4   :  { %v4003_v57 = vsel %vm92_vm1, %v3990_v5, 0 }
 0x2f6   :  { %v2915_v34 = vpop.f32.mrf.mxu2  ;;  %v2928_v35 = vpop.f32.mrf.mxu3 }
 0x2f7   :  { %v2939_v15 = vpop.f32.mrf.mxu0  ;;  %v2952_v39 = vpop.f32.mrf.mxu1 }
 0x2f8   :  { %v2961_v0 = vadd.f32 %v2939_v15, %v5638_v58  ;;  %v5687_v49 = vadd.f32 %v2952_v39, %v2797_v2  ;;  %v3981_v58 = vpop.permute.xlu2 %3980 }
 0x2f9   :  { %v3992_v2 = vsel %vm3988_vm11, %v3979_v52, %v3981_v58 }
 0x2fa   :  { %4310 = vmatmul.msk.bf16.vlgmr.msrb.gmra.mxu0 %vm88_vm2, %v5665_v13  ;;  %4311 = vmatmul.msk.bf16.vlgmr.msrb.gmra.mxu1 %vm88_vm2, %v5665_v13  ;;  %v4009_v6 = vsel %vm92_vm1, %v3992_v2, 0 }
 0x2fb   :  { %4312 = vmatmul.msk.bf16.vlgmr.msrb.gmra.mxu2 %vm88_vm2, %v5665_v13  ;;  %4313 = vmatmul.msk.bf16.vlgmr.msrb.gmra.mxu3 %vm88_vm2, %v5665_v13 }
 0x2fc   :  { %3901 = vmatpush.bf16.msrb.mxu0 %v3844_v43  ;;  %3914 = vmatpush.bf16.msrb.mxu1 %v3847_v36 }
 0x2fd   :  { %3927 = vmatpush.bf16.msrb.mxu2 %v3850_v51  ;;  %3940 = vmatpush.bf16.msrb.mxu3 %v3853_v38 }
 0x2fe   :  { %v3039_v46 = vpop.f32.mrf.mxu2  ;;  %v3052_v44 = vpop.f32.mrf.mxu3 }
 0x2ff   :  { %v3121_v41 = vadd.f32 %v3039_v46, %v5653_v3  ;;  %v5702_v54 = vadd.f32 %v3052_v44, %v2957_v11  ;;  %v2941_v55 = vpop.f32.mrf.mxu0  ;;  %v2954_v59 = vpop.f32.mrf.mxu1  ;;  %v3989_v3 = vsel %vm3988_vm11, %v3973_v63, %v3975_v50 }
 0x300   :  { %v4000_v18 = vsel %vm92_vm1, %v3989_v3, 0  ;;  %v3983_v9 = vpop.permute.xlu2 %3982  ;;  %v3985_v11 = vpop.permute.xlu0 %3984 }
 0x301   :  { %v3993_v8 = vsel %vm3988_vm11, %v3981_v58, %v3983_v9  ;;  %v3994_v21 = vsel %vm3988_vm11, %v3983_v9, %v3985_v11 }
 0x302   :  { %v4012_v16 = vsel %vm92_vm1, %v3993_v8, 0  ;;  %v4015_v26 = vsel %vm92_vm1, %v3994_v21, 0 }
 0x306   :  { %v3041_v45 = vpop.f32.mrf.mxu2  ;;  %v3054_v53 = vpop.f32.mrf.mxu3 }
 0x307   :  { %v3065_v48 = vpop.f32.mrf.mxu0  ;;  %v3078_v56 = vpop.f32.mrf.mxu1 }
 0x308   :  { %v3123_v4 = vadd.f32 %v3065_v48, %v5660_v61  ;;  %v3124_v10 = vadd.f32 %v3078_v56, %v2959_v33  ;;  %v3987_v61 = vpop.permute.xlu1 %3986 }
 0x309   :  { %v3995_v24 = vsel %vm3988_vm11, %v3985_v11, %v3987_v61 }
 0x30a   :  { %4314 = vmatmul.msk.bf16.vlgmr.msra.gmra.mxu0 %vm88_vm2, %v5665_v13  ;;  %4315 = vmatmul.msk.bf16.vlgmr.msra.gmra.mxu1 %vm88_vm2, %v41_v7  ;;  %v4018_v30 = vsel %vm92_vm1, %v3995_v24, 0 }
 0x30b   :  { %4316 = vmatmul.msk.bf16.vlgmr.msra.gmra.mxu2 %vm88_vm2, %v41_v7  ;;  %4317 = vmatmul.msk.bf16.vlgmr.msra.gmra.mxu3 %vm88_vm2, %v41_v7 }
 0x30c   :  { %4040 = vmatpush.bf16.msra.mxu1 %v4003_v57  ;;  %4053 = vmatpush.bf16.msra.mxu2 %v4006_v60 }
 0x30d   :  { %4066 = vmatpush.bf16.msra.mxu3 %v4009_v6  ;;  %4027 = vmatpush.bf16.msra.mxu0 %v4000_v18 }
 0x30e   :  { %v3091_v19 = vpop.f32.mrf.mxu2  ;;  %v3104_v14 = vpop.f32.mrf.mxu3 }
 0x30f   :  { %v3125_v22 = vadd.f32 %v3091_v19, %v5680_v25  ;;  %v3126_v1 = vadd.f32 %v3104_v14, %v2961_v0  ;;  %v3067_v20 = vpop.f32.mrf.mxu0  ;;  %v3080_v23 = vpop.f32.mrf.mxu1 }
 0x316   :  { %v3093_v13 = vpop.f32.mrf.mxu2  ;;  %v3106_v27 = vpop.f32.mrf.mxu3 }
 0x317   :  { %v3117_v17 = vpop.f32.mrf.mxu0  ;;  %v3204_v31 = vpop.f32.mrf.mxu1 }
 0x318   :  { %v3127_v33 = vadd.f32 %v3117_v17, %v5687_v49  ;;  %v3286_v25 = vadd.f32 %v3204_v31, %v3121_v41  ;;  %v42_v49 = vld [vmem:[%s5757_s1 + $0x60] sm:$0xf]  ;;  %s4407_s1 = smov [#allocation2]  }
 0x319   :  { %s4143_s7 = sshll.u32 %s4407_s1, 4  ;;  %s4144_s7 = int_to_ptr.vmem [resolvable:$true] %s4143_s7 }
 0x31a   :  { %4318 = vmatmul.msk.bf16.vlgmr.msrb.gmra.mxu0 %vm88_vm2, %v41_v7  ;;  %4319 = vmatmul.msk.bf16.vlgmr.msrb.gmra.mxu1 %vm88_vm2, %v41_v7 }
 0x31b   :  { %4320 = vmatmul.msk.bf16.vlgmr.msrb.gmra.mxu2 %vm88_vm2, %v41_v7  ;;  %4321 = vmatmul.msk.bf16.vlgmr.msrb.gmra.mxu3 %vm88_vm2, %v41_v7 }
 0x31c   :  { %4079 = vmatpush.bf16.msrb.mxu0 %v4012_v16  ;;  %4092 = vmatpush.bf16.msrb.mxu1 %v4015_v26 }
 0x31d   :  { %4105 = vmatpush.bf16.msrb.mxu2 %v4018_v30 }
 0x31e   :  { %v3217_v28 = vpop.f32.mrf.mxu2  ;;  %v3230_v34 = vpop.f32.mrf.mxu3 }
 0x31f   :  { %v3287_v35 = vadd.f32 %v3217_v28, %v5702_v54  ;;  %v3288_v32 = vadd.f32 %v3230_v34, %v3123_v4  ;;  %v3119_v42 = vpop.f32.mrf.mxu0  ;;  %v3206_v15 = vpop.f32.mrf.mxu1 }
 0x326   :  { %v3219_v39 = vpop.f32.mrf.mxu2  ;;  %v3232_v47 = vpop.f32.mrf.mxu3 }
 0x327   :  { %v3243_v37 = vpop.f32.mrf.mxu0  ;;  %v3256_v0 = vpop.f32.mrf.mxu1 }
 0x328   :  { %v3289_v43 = vadd.f32 %v3243_v37, %v3124_v10  ;;  %v3290_v36 = vadd.f32 %v3256_v0, %v3125_v22 }
 0x32a   :  { %4322 = vmatmul.msk.bf16.vlgmr.msra.gmra.mxu0 %vm88_vm2, %v42_v49  ;;  %4323 = vmatmul.msk.bf16.vlgmr.msra.gmra.mxu1 %vm88_vm2, %v42_v49 }
 0x32b   :  { %4324 = vmatmul.msk.bf16.vlgmr.msra.gmra.mxu2 %vm88_vm2, %v42_v49  ;;  %4325 = vmatmul.msk.bf16.vlgmr.msra.gmra.mxu3 %vm88_vm2, %v42_v49 }
 0x32e   :  { %v3269_v40 = vpop.f32.mrf.mxu2  ;;  %v3282_v51 = vpop.f32.mrf.mxu3 }
 0x32f   :  { %v3291_v38 = vadd.f32 %v3269_v40, %v3126_v1  ;;  %v3292_v52 = vadd.f32 %v3282_v51, %v3127_v33  ;;  %v3245_v46 = vpop.f32.mrf.mxu0  ;;  %v3258_v44 = vpop.f32.mrf.mxu1 }
 0x336   :  { %v3271_v41 = vpop.f32.mrf.mxu2  ;;  %v3284_v54 = vpop.f32.mrf.mxu3 }
 0x337   :  { %v3369_v55 = vpop.f32.mrf.mxu0  ;;  %v3382_v59 = vpop.f32.mrf.mxu1 }
 0x338   :  { %v3451_v50 = vadd.f32 %v3369_v55, %v3286_v25  ;;  %v3452_v58 = vadd.f32 %v3382_v59, %v3287_v35 }
 0x33a   :  { %4326 = vmatmul.msk.bf16.vlgmr.msrb.gmra.mxu0 %vm88_vm2, %v42_v49  ;;  %4327 = vmatmul.msk.bf16.vlgmr.msrb.gmra.mxu1 %vm88_vm2, %v42_v49 }
 0x33b   :  { %4328 = vmatmul.msk.bf16.vlgmr.msrb.gmra.mxu2 %vm88_vm2, %v42_v49 }
 0x33e   :  { %v3395_v63 = vpop.f32.mrf.mxu2  ;;  %v3408_v45 = vpop.f32.mrf.mxu3 }
 0x33f   :  { %v3453_v53 = vadd.f32 %v3395_v63, %v3288_v32  ;;  %v3454_v62 = vadd.f32 %v3408_v45, %v3289_v43  ;;  %v3371_v5 = vpop.f32.mrf.mxu0  ;;  %v3384_v48 = vpop.f32.mrf.mxu1 }
 0x346   :  { %v3397_v56 = vpop.f32.mrf.mxu2  ;;  %v3410_v7 = vpop.f32.mrf.mxu3 }
 0x347   :  { %v3421_v2 = vpop.f32.mrf.mxu0  ;;  %v3434_v3 = vpop.f32.mrf.mxu1 }
 0x348   :  { %v3455_v4 = vadd.f32 %v3421_v2, %v3290_v36  ;;  %v3456_v10 = vadd.f32 %v3434_v3, %v3291_v38 }
 0x34e   :  { %v3447_v60 = vpop.f32.mrf.mxu2  ;;  %v3534_v57 = vpop.f32.mrf.mxu3 }
 0x34f   :  { %v3457_v6 = vadd.f32 %v3447_v60, %v3292_v52  ;;  %v3616_v18 = vadd.f32 %v3534_v57, %v3451_v50  ;;  %v3423_v19 = vpop.f32.mrf.mxu0  ;;  %v3436_v14 = vpop.f32.mrf.mxu1 }
 0x356   :  { %v3449_v22 = vpop.f32.mrf.mxu2  ;;  %v3536_v1 = vpop.f32.mrf.mxu3 }
 0x357   :  { %v3547_v20 = vpop.f32.mrf.mxu0  ;;  %v3560_v23 = vpop.f32.mrf.mxu1 }
 0x358   :  { %v3617_v9 = vadd.f32 %v3547_v20, %v3452_v58  ;;  %v3618_v11 = vadd.f32 %v3560_v23, %v3453_v53 }
 0x35e   :  { %v3573_v61 = vpop.f32.mrf.mxu2  ;;  %v3586_v13 = vpop.f32.mrf.mxu3 }
 0x35f   :  { %v3619_v27 = vadd.f32 %v3573_v61, %v3454_v62  ;;  %v5747_v8 = vadd.f32 %v3586_v13, %v3455_v4  ;;  %v3549_v21 = vpop.f32.mrf.mxu0  ;;  %v3562_v17 = vpop.f32.mrf.mxu1 }
 0x363   :  { %v4122_v53 = vpop.permute.xlu0 %4121 }
 0x366   :  { %v3575_v31 = vpop.f32.mrf.mxu2  ;;  %v3588_v24 = vpop.f32.mrf.mxu3 }
 0x367   :  { %v3599_v12 = vpop.f32.mrf.mxu0  ;;  %v3612_v29 = vpop.f32.mrf.mxu1 }
 0x368   :  { %v3621_v33 = vadd.f32 %v3599_v12, %v3456_v10  ;;  %v5749_v25 = vadd.f32 %v3612_v29, %v3457_v6 }
 0x36e   :  { %v3699_v16 = vpop.f32.mrf.mxu2  ;;  %v3712_v26 = vpop.f32.mrf.mxu3 }
 0x36f   :  { %v3601_v30 = vpop.f32.mrf.mxu0  ;;  %v3614_v28 = vpop.f32.mrf.mxu1  ;;  %v3781_v63 = vadd.f32 %v3699_v16, %v3616_v18  ;;  %v3782_v45 = vadd.f32 %v3712_v26, %v3617_v9 }
 0x376   :  { %v3701_v34 = vpop.f32.mrf.mxu2  ;;  %v3714_v35 = vpop.f32.mrf.mxu3 }
 0x377   :  { %v3725_v32 = vpop.f32.mrf.mxu0  ;;  %v3738_v42 = vpop.f32.mrf.mxu1 }
 0x378   :  { %v3783_v57 = vadd.f32 %v3725_v32, %v3618_v11  ;;  %v3784_v6 = vadd.f32 %v3738_v42, %v3619_v27 }
 0x37e   :  { %v3751_v15 = vpop.f32.mrf.mxu2  ;;  %v3764_v39 = vpop.f32.mrf.mxu3 }
 0x37f   :  { %v3727_v47 = vpop.f32.mrf.mxu0  ;;  %v3740_v37 = vpop.f32.mrf.mxu1  ;;  %v3785_v21 = vadd.f32 %v3751_v15, %v5747_v8  ;;  %v3786_v17 = vadd.f32 %v3764_v39, %v3621_v33 }
 0x386   :  { %v3753_v0 = vpop.f32.mrf.mxu2  ;;  %v3766_v49 = vpop.f32.mrf.mxu3 }
 0x387   :  { %v3777_v43 = vpop.f32.mrf.mxu0  ;;  %v3864_v36 = vpop.f32.mrf.mxu1 }
 0x388   :  { %v3946_v62 = vadd.f32 %v3864_v36, %v3781_v63  ;;  %v3787_v34 = vadd.f32 %v3777_v43, %v5749_v25 }
 0x38e   :  { %v3877_v40 = vpop.f32.mrf.mxu2  ;;  %v3890_v51 = vpop.f32.mrf.mxu3 }
 0x38f   :  { %v3779_v38 = vpop.f32.mrf.mxu0  ;;  %v3866_v52 = vpop.f32.mrf.mxu1  ;;  %v3947_v5 = vadd.f32 %v3877_v40, %v3782_v45  ;;  %v3948_v19 = vadd.f32 %v3890_v51, %v3783_v57 }
 0x396   :  { %v3879_v46 = vpop.f32.mrf.mxu2  ;;  %v3892_v44 = vpop.f32.mrf.mxu3 }
 0x397   :  { %v3903_v41 = vpop.f32.mrf.mxu0  ;;  %v3916_v54 = vpop.f32.mrf.mxu1 }
 0x398   :  { %v3949_v14 = vadd.f32 %v3903_v41, %v3784_v6  ;;  %v3950_v31 = vadd.f32 %v3916_v54, %v3785_v21 }
 0x39e   :  { %v3929_v55 = vpop.f32.mrf.mxu2  ;;  %v3942_v59 = vpop.f32.mrf.mxu3 }
 0x39f   :  { %v3905_v50 = vpop.f32.mrf.mxu0  ;;  %v3918_v58 = vpop.f32.mrf.mxu1  ;;  %v3951_v11 = vadd.f32 %v3929_v55, %v3786_v17  ;;  %v3952_v35 = vadd.f32 %v3942_v59, %v3787_v34 }
 0x3a6   :  { %v3931_v48 = vpop.f32.mrf.mxu2  ;;  %v3944_v56 = vpop.f32.mrf.mxu3 }
 0x3a7   :  { %v4029_v7 = vpop.f32.mrf.mxu0  ;;  %v4042_v2 = vpop.f32.mrf.mxu1 }
 0x3a8   :  { %v4111_v3 = vadd.f32 %v4029_v7, %v3946_v62  ;;  %v4112_v4 = vadd.f32 %v4042_v2, %v3947_v5 }
 0x3aa   :  { %v4124_v10 = vadd.f32 %v4122_v53, %v4111_v3  ;;  %v4125_v60 = vadd.f32 %v4122_v53, %v4112_v4 }
 0x3ac   :  { %4131 = vst [vmem:[#allocation2] sm:$0xff] %v4124_v10 }
 0x3ad   :  { %4132 = vst [vmem:[#allocation2 + $0x8] sm:$0xff] %v4125_v60 }
 0x3ae   :  { %v4055_v22 = vpop.f32.mrf.mxu2  ;;  %v4068_v18 = vpop.f32.mrf.mxu3 }
 0x3af   :  { %v4113_v1 = vadd.f32 %v4055_v22, %v3948_v19  ;;  %v4114_v20 = vadd.f32 %v4068_v18, %v3949_v14  ;;  %v4031_v23 = vpop.f32.mrf.mxu0  ;;  %v4044_v9 = vpop.f32.mrf.mxu1 }
 0x3b1   :  { %v4126_v61 = vadd.f32 %v4122_v53, %v4113_v1  ;;  %v4127_v13 = vadd.f32 %v4122_v53, %v4114_v20 }
 0x3b3   :  { %4133 = vst [vmem:[#allocation2 + $0x10] sm:$0xff] %v4126_v61 }
 0x3b4   :  { %4134 = vst [vmem:[#allocation2 + $0x18] sm:$0xff] %v4127_v13 }
 0x3b6   :  { %v4057_v27 = vpop.f32.mrf.mxu2  ;;  %v4070_v24 = vpop.f32.mrf.mxu3 }
 0x3b7   :  { %v4081_v12 = vpop.f32.mrf.mxu0  ;;  %v4094_v29 = vpop.f32.mrf.mxu1 }
 0x3b8   :  { %v4115_v16 = vadd.f32 %v4081_v12, %v3950_v31  ;;  %v4116_v26 = vadd.f32 %v4094_v29, %v3951_v11 }
 0x3ba   :  { %v4128_v30 = vadd.f32 %v4122_v53, %v4115_v16  ;;  %v4129_v28 = vadd.f32 %v4122_v53, %v4116_v26 }
 0x3bc   :  { %4135 = vst [vmem:[#allocation2 + $0x20] sm:$0xff] %v4128_v30 }
 0x3bd   :  { %4136 = vst [vmem:[#allocation2 + $0x28] sm:$0xff] %v4129_v28 }
 0x3be   :  { %v4107_v32 = vpop.f32.mrf.mxu2 }
 0x3bf   :  { %v4117_v8 = vadd.f32 %v4107_v32, %v3952_v35  ;;  %v4083_v33 = vpop.f32.mrf.mxu0  ;;  %v4096_v42 = vpop.f32.mrf.mxu1 }
 0x3c1   :  { %v4130_v15 = vadd.f32 %v4122_v53, %v4117_v8 }
 0x3c3   :  { %4137 = vst [vmem:[#allocation2 + $0x30] sm:$0xff] %v4130_v15 }
 0x3c4   :  { %4148 = dma.vmem_to_hbm [thread:$0]  %s4144_s7, 896, %s4146_s10, [#allocation3]  }
 0x3c6   :  { %v4109_v39 = vpop.f32.mrf.mxu2 }
 0x3c7   :  { %4380 = dma.done.wait [#allocation3], 896  }
 0x3c8   :  { %4381 = vsyncadd [#allocation3], 4294966400 }
 0x3c9   :  { %4153 = vsyncpa [#allocation3], 1 }

</bundles_post_ra>
